<compile_context>
chip_gen: v5e
topology: v5e:2x2
jax: 0.10.0
libtpu: 0.0.40
codegen_flags: <defaults>
</compile_context>

<pallas_src>
import jax
import jax.numpy as jnp
from jax.experimental import pallas as pl
from jax.experimental.pallas import tpu as pltpu


def _pos_embed_kernel(x_ref, w1_ref, bshift_ref, w2_ref, b2_ref, o_ref):
    # x_ref:      (C, Nt)   positions for one (batch, N-tile), channel-major
    # w1_ref:     (Fp, C)   conv1 weight with BN scale folded in
    # bshift_ref: (Fp, 1)   folded conv1 bias + BN shift
    # w2_ref:     (Fp, Fp)  conv2 weight, bf16
    # b2_ref:     (Fp, 1)   conv2 bias
    # o_ref:      (Fp, Nt)  output tile, already in the module's NCW layout
    x = x_ref[...]                               # (C, Nt), C is tiny (2..3)
    C = x.shape[0]

    # conv1 (kernel_size=1): C broadcast-FMAs on the VPU (MXU would be ~2/256
    # utilized for this K), keeps the MXU free for the dominant matmul.
    h = w1_ref[:, 0:1] * x[0:1, :]               # (Fp, Nt)
    for c in range(1, C):                        # static unroll, C = 2..3
        h = h + w1_ref[:, c:c + 1] * x[c:c + 1, :]
    h = jnp.maximum(h + bshift_ref[...], 0.0)    # folded bias/shift + ReLU

    # conv2 (kernel_size=1): Fp x Fp matmul on the MXU, bf16 in, f32 accumulate.
    o = jnp.dot(w2_ref[...], h.astype(jnp.bfloat16),
                preferred_element_type=jnp.float32)
    o_ref[...] = (o + b2_ref[...]).astype(o_ref.dtype)


def position_embedding_learned(xyz, params, *, bn_eps=1e-5, n_tile=512):
    """xyz: (BS, n_q, C) float32.  Returns (BS, num_pos_feats, n_q)."""
    w1, b1, gamma, beta, rm, rv, w2, b2 = (
        params["w1"], params["b1"], params["gamma"], params["beta"],
        params["run_mean"], params["run_var"], params["w2"], params["b2"])

    BS, N, C = xyz.shape
    F = w1.shape[0]
    LANE = 128
    f32 = jnp.float32

    # --- pad F (num_pos_feats) up to a 128-multiple (sublane axis of output) --
    Fp = pl.cdiv(F, LANE) * LANE

    # --- choose the n_q tile (multiple of 128, <= n_tile) ---------------------
    if N <= n_tile:
        Nt = max(pl.cdiv(N, LANE) * LANE, LANE)
    else:
        Nt = n_tile
    Np = pl.cdiv(N, Nt) * Nt

    # --- fold BatchNorm (eval) + conv1 bias into conv1 weight / one shift -----
    scale = gamma / jnp.sqrt(rv + bn_eps)                     # (F,)
    w1_fold = (w1 * scale[:, None]).astype(f32)               # (F, C)
    bshift = (scale * b1 + (beta - rm * scale)).astype(f32)   # (F,)

    def pad_f(a, axes):
        pads = [(0, 0)] * a.ndim
        for ax in axes:
            pads[ax] = (0, Fp - F)
        return jnp.pad(a, pads)

    w1p = pad_f(w1_fold, [0])                                   # (Fp, C)  f32
    bshift_p = pad_f(bshift.reshape(F, 1), [0])                 # (Fp, 1)  f32
    w2p = pad_f(w2.astype(f32), [0, 1]).astype(jnp.bfloat16)    # (Fp, Fp) bf16
    b2p = pad_f(b2.reshape(F, 1).astype(f32), [0])              # (Fp, 1)  f32

    # --- tiny input transpose to channel-major + pad n_q to a tile multiple ---
    x = jnp.transpose(xyz.astype(f32), (0, 2, 1))               # (BS, C, N)
    if Np != N:
        x = jnp.pad(x, ((0, 0), (0, 0), (0, Np - N)))

    grid = (BS, Np // Nt)
    out = pl.pallas_call(
        _pos_embed_kernel,
        out_shape=jax.ShapeDtypeStruct((BS, Fp, Np), f32),
        grid_spec=pltpu.PrefetchScalarGridSpec(
            num_scalar_prefetch=0,
            grid=grid,
            in_specs=[
                pl.BlockSpec((None, C, Nt), lambda b, n: (b, 0, n)),  # x tile
                pl.BlockSpec((Fp, C), lambda b, n: (0, 0)),           # folded W1
                pl.BlockSpec((Fp, 1), lambda b, n: (0, 0)),           # bias+shift
                pl.BlockSpec((Fp, Fp), lambda b, n: (0, 0)),          # W2 (bf16)
                pl.BlockSpec((Fp, 1), lambda b, n: (0, 0)),           # b2
            ],
            out_specs=pl.BlockSpec((None, Fp, Nt), lambda b, n: (b, 0, n)),
        ),
        compiler_params=pltpu.CompilerParams(
            dimension_semantics=("parallel", "parallel")),
    )(x, w1p, bshift_p, w2p, b2p)

    # glue: drop the F / n_q padding; output is already (BS, F, N) layout.
    return out[:, :F, :N]


def _reference(xyz, params, bn_eps=1e-5):
    """Pure-JAX (f32) reference matching the PyTorch module."""
    w1, b1, gamma, beta, rm, rv, w2, b2 = (
        params["w1"], params["b1"], params["gamma"], params["beta"],
        params["run_mean"], params["run_var"], params["w2"], params["b2"])
    x = jnp.transpose(xyz, (0, 2, 1))                           # (BS, C, N)
    h = jnp.einsum("fc,bcn->bfn", w1, x) + b1[None, :, None]
    h = (h - rm[None, :, None]) / jnp.sqrt(rv[None, :, None] + bn_eps)
    h = h * gamma[None, :, None] + beta[None, :, None]
    h = jnp.maximum(h, 0.0)
    o = jnp.einsum("gf,bfn->bgn", w2, h) + b2[None, :, None]
    return o


def init_params(key, input_channel, num_pos_feats):
    ks = jax.random.split(key, 8)
    F, C = num_pos_feats, input_channel
    return {
        "w1": jax.random.normal(ks[0], (F, C), jnp.float32) * 0.1,
        "b1": jax.random.normal(ks[1], (F,), jnp.float32) * 0.1,
        "gamma": jnp.ones((F,), jnp.float32)
                 + 0.05 * jax.random.normal(ks[2], (F,), jnp.float32),
        "beta": 0.05 * jax.random.normal(ks[3], (F,), jnp.float32),
        "run_mean": 0.1 * jax.random.normal(ks[4], (F,), jnp.float32),
        "run_var": jnp.abs(jax.random.normal(ks[5], (F,), jnp.float32)) + 0.5,
        "w2": jax.random.normal(ks[6], (F, F), jnp.float32) * 0.1,
        "b2": jax.random.normal(ks[7], (F,), jnp.float32) * 0.1,
    }


if __name__ == "__main__":
    # xyz: (BS, n_q, 2); num_pos_feats=288 is the module default (exercises
    # both the F->384 and n_q->256 padding paths).
    BS, N_Q, C_IN, NUM_POS_FEATS = 2, 200, 2, 288

    key = jax.random.PRNGKey(0)
    k_x, k_p = jax.random.split(key)
    xyz = jax.random.normal(k_x, (BS, N_Q, C_IN), jnp.float32)
    params = init_params(k_p, C_IN, NUM_POS_FEATS)

    out = position_embedding_learned(xyz, params)
    out = jax.block_until_ready(out)

    ref = _reference(xyz, params)
    assert out.shape == (BS, NUM_POS_FEATS, N_Q), out.shape
    # second matmul runs with bf16 operands (f32 accumulation) -> loose tol
    assert jnp.allclose(out, ref, atol=2e-2, rtol=2e-2), \
        float(jnp.max(jnp.abs(out - ref)))

    print("KERNEL_OK")
</pallas_src>

<mosaic_0001>
module attributes {stable_mosaic.version = 11 : i64} {
  func.func @_pos_embed_kernel(%arg0: i32, %arg1: i32, %arg2: memref<1x2x256xf32, #tpu.memory_space<vmem>>, %arg3: memref<384x2xf32, #tpu.memory_space<vmem>>, %arg4: memref<384x1xf32, #tpu.memory_space<vmem>>, %arg5: memref<384x384xbf16, #tpu.memory_space<vmem>>, %arg6: memref<384x1xf32, #tpu.memory_space<vmem>>, %arg7: memref<1x384x256xf32, #tpu.memory_space<vmem>>) attributes {dimension_semantics = [#tpu.dimension_semantics<parallel>, #tpu.dimension_semantics<parallel>], iteration_bounds = array<i64: 2, 1>, scalar_prefetch = 0 : i64, scratch_operands = 0 : i64, tpu.core_type = #tpu.core_type<tc>, window_params = [{transform_indices = @transform_0, window_bounds = array<i64: 1, 2, 256>}, {pipeline_mode = #tpu.pipeline_mode<synchronous>, transform_indices = @transform_1, window_bounds = array<i64: 384, 2>}, {pipeline_mode = #tpu.pipeline_mode<synchronous>, transform_indices = @transform_2, window_bounds = array<i64: 384, 1>}, {pipeline_mode = #tpu.pipeline_mode<synchronous>, transform_indices = @transform_3, window_bounds = array<i64: 384, 384>}, {pipeline_mode = #tpu.pipeline_mode<synchronous>, transform_indices = @transform_4, window_bounds = array<i64: 384, 1>}, {transform_indices = @transform_5, window_bounds = array<i64: 1, 384, 256>}]} {
    %c0 = arith.constant 0 : index
    %c0_0 = arith.constant 0 : index
    %c0_1 = arith.constant 0 : index
    %0 = vector.load %arg2[%c0, %c0_0, %c0_1] : memref<1x2x256xf32, #tpu.memory_space<vmem>>, vector<1x2x256xf32>
    %1 = vector.shape_cast %0 : vector<1x2x256xf32> to vector<2x256xf32>
    %c0_2 = arith.constant 0 : index
    %c0_3 = arith.constant 0 : index
    %2 = vector.load %arg3[%c0_2, %c0_3] : memref<384x2xf32, #tpu.memory_space<vmem>>, vector<384x1xf32>
    %3 = vector.extract_strided_slice %1 {offsets = [0, 0], sizes = [1, 256], strides = [1, 1]} : vector<2x256xf32> to vector<1x256xf32>
    %4 = vector.broadcast %2 : vector<384x1xf32> to vector<384x256xf32>
    %5 = vector.broadcast %3 : vector<1x256xf32> to vector<384x256xf32>
    %6 = arith.mulf %4, %5 : vector<384x256xf32>
    %c0_4 = arith.constant 0 : index
    %c1 = arith.constant 1 : index
    %7 = vector.load %arg3[%c0_4, %c1] : memref<384x2xf32, #tpu.memory_space<vmem>>, vector<384x1xf32>
    %8 = vector.extract_strided_slice %1 {offsets = [1, 0], sizes = [1, 256], strides = [1, 1]} : vector<2x256xf32> to vector<1x256xf32>
    %9 = vector.broadcast %7 : vector<384x1xf32> to vector<384x256xf32>
    %10 = vector.broadcast %8 : vector<1x256xf32> to vector<384x256xf32>
    %11 = arith.mulf %9, %10 : vector<384x256xf32>
    %12 = arith.addf %6, %11 : vector<384x256xf32>
    %c0_5 = arith.constant 0 : index
    %c0_6 = arith.constant 0 : index
    %13 = vector.load %arg4[%c0_5, %c0_6] : memref<384x1xf32, #tpu.memory_space<vmem>>, vector<384x1xf32>
    %14 = vector.broadcast %13 : vector<384x1xf32> to vector<384x256xf32>
    %15 = arith.addf %12, %14 : vector<384x256xf32>
    %cst = arith.constant 0.000000e+00 : f32
    %16 = vector.broadcast %cst : f32 to vector<384x256xf32>
    %17 = arith.maximumf %15, %16 : vector<384x256xf32>
    %c0_7 = arith.constant 0 : index
    %c0_8 = arith.constant 0 : index
    %18 = vector.load %arg5[%c0_7, %c0_8] : memref<384x384xbf16, #tpu.memory_space<vmem>>, vector<384x384xbf16>
    %19 = arith.truncf %17 : vector<384x256xf32> to vector<384x256xbf16>
    %cst_9 = arith.constant dense<0.000000e+00> : vector<384x256xf32>
    %20 = tpu.matmul %18, %19, %cst_9 {dimension_numbers = #tpu.dot_dimension_numbers<[1], [0], [0], [1], [0, 0, 1, 1], [], []>} : vector<384x384xbf16>, vector<384x256xbf16>, vector<384x256xf32> -> vector<384x256xf32>
    %c0_10 = arith.constant 0 : index
    %c0_11 = arith.constant 0 : index
    %21 = vector.load %arg6[%c0_10, %c0_11] : memref<384x1xf32, #tpu.memory_space<vmem>>, vector<384x1xf32>
    %22 = vector.broadcast %21 : vector<384x1xf32> to vector<384x256xf32>
    %23 = arith.addf %20, %22 : vector<384x256xf32>
    %c0_12 = arith.constant 0 : index
    %c0_13 = arith.constant 0 : index
    %c0_14 = arith.constant 0 : index
    %24 = vector.load %arg7[%c0_12, %c0_13, %c0_14] : memref<1x384x256xf32, #tpu.memory_space<vmem>>, vector<1x384x256xf32>
    %25 = vector.shape_cast %24 : vector<1x384x256xf32> to vector<384x256xf32>
    %26 = vector.shape_cast %23 : vector<384x256xf32> to vector<1x384x256xf32>
    tpu.vector_store %arg7[%c0_12, %c0_13, %c0_14], %26 {strides = array<i32>} : memref<1x384x256xf32, #tpu.memory_space<vmem>>, vector<1x384x256xf32>,
    return
  }
  func.func @transform_0(%arg0: i32, %arg1: i32) -> (i32, i32, i32) {
    %c0_i32 = arith.constant 0 : i32
    %c0_i32_0 = arith.constant 0 : i32
    return %arg0, %c0_i32, %arg1 : i32, i32, i32
  }
  func.func @transform_1(%arg0: i32, %arg1: i32) -> (i32, i32) {
    %c0_i32 = arith.constant 0 : i32
    %c0_i32_0 = arith.constant 0 : i32
    %c0_i32_1 = arith.constant 0 : i32
    return %c0_i32, %c0_i32_0 : i32, i32
  }
  func.func @transform_2(%arg0: i32, %arg1: i32) -> (i32, i32) {
    %c0_i32 = arith.constant 0 : i32
    %c0_i32_0 = arith.constant 0 : i32
    %c0_i32_1 = arith.constant 0 : i32
    return %c0_i32, %c0_i32_0 : i32, i32
  }
  func.func @transform_3(%arg0: i32, %arg1: i32) -> (i32, i32) {
    %c0_i32 = arith.constant 0 : i32
    %c0_i32_0 = arith.constant 0 : i32
    %c0_i32_1 = arith.constant 0 : i32
    return %c0_i32, %c0_i32_0 : i32, i32
  }
  func.func @transform_4(%arg0: i32, %arg1: i32) -> (i32, i32) {
    %c0_i32 = arith.constant 0 : i32
    %c0_i32_0 = arith.constant 0 : i32
    %c0_i32_1 = arith.constant 0 : i32
    return %c0_i32, %c0_i32_0 : i32, i32
  }
  func.func @transform_5(%arg0: i32, %arg1: i32) -> (i32, i32, i32) {
    %c0_i32 = arith.constant 0 : i32
    %c0_i32_0 = arith.constant 0 : i32
    return %arg0, %c0_i32, %arg1 : i32, i32, i32
  }
}

</mosaic_0001>

<bundles_post_ra>
// kernel: tpu_custom_call.1
= control target key start
LH: loop header
LB: loop body
LE: loop exit
PB: predicated region body
PF: predicated region fallthrough
CT: control target
= control target key end

     0   :  { %10 = vsyncpa [#allocation3], 0  ;;  %s6436_s0 = inlined_call_operand.vmem [shape: f32[2,2,256], index: 0, kind: input, shape index: {}]   ;;  %s6437_s1 = inlined_call_operand.vmem [shape: f32[384,2], index: 1, kind: input, shape index: {}]   ;;  %s6438_s2 = inlined_call_operand.vmem [shape: f32[384,1], index: 2, kind: input, shape index: {}]   ;;  %s6439_s3 = inlined_call_operand.vmem [shape: bf16[384,384], index: 3, kind: input, shape index: {}]   ;;  %s6440_s4 = inlined_call_operand.vmem [shape: f32[384,1], index: 4, kind: input, shape index: {}]   ;;  %s6441_s5 = inlined_call_operand.hbm [shape: f32[2,384,256], index: 5, kind: output, shape index: {}]  }
   0x1   :  { %12 = vsyncpa [#allocation3 + $0x1], 0  ;;  %s3906_s18 = smov 0   ;;  %s3908_s19 = smov 0  }
   0x2   :  { %s3910_s20 = smov 0   ;;  %s3912_s21 = smov 0  }
   0x3   :  { %s3914_s22 = smov 0   ;;  %s3916_s23 = smov 0  }
   0x4 LB: > { %s3299_s24 = sadd.s32 4294967295, %s3870_s23   ;;  %s3300_s25 = sadd.s32 4294967294, %s3870_s23   ;;  %s3870_s23 = sphi %s3916_s23, %s18_s23   ;;  %s3866_s22 = sphi %s3914_s22, %s6816_s22   ;;  %s3862_s21 = sphi %s3912_s21, %s6815_s21   ;;  %s3858_s20 = sphi %s3910_s20, %s6814_s20   ;;  %s3854_s19 = sphi %s3908_s19, %s6813_s19   ;;  %s3850_s18 = sphi %s3906_s18, %s6812_s18  }
   0x5   : > { %s30_s26 = sadd.s32 1, %s3866_s22  ;;  %s151_s27 = sadd.s32 1, %s3858_s20 }
   0x6   : > { %p32_p0 = scmp.ge.s32.totalorder %s30_s26, 2  ;;  %p161_p1 = scmp.ne.s32.totalorder %s3858_s20, %s3854_s19 }
   0x7   : > { %p162_p2 = scmp.eq.s32.totalorder %s3299_s24, 1  ;;  %p167_p3 = scmp.ne.s32.totalorder %s3854_s19, %s3850_s18 }
   0x8   : > { %s6818_s26 = smov (%p32_p0, %s30_s26), 0  ;;  %p168_p5 = scmp.eq.s32.totalorder %s3300_s25, 1 }
   0x9   : > { %p3946_p4 = por %p162_p2, %p161_p1  ;;  %s146_s29 = ssub.s32 %s3866_s22, %s6818_s26 }
   0xa   : > { %p3303_p6 = scmp.ge.s32.totalorder %s3870_s23, 1  ;;  %p149_p7 = scmp.eq.s32.totalorder %s146_s29, 0 }
   0xb   : > { %p3953_p8 = por %p168_p5, %p167_p3  ;;  %p211_p9 = scmp.lt.s32.totalorder %s3870_s23, 3 }
   0xc   : > { %s3959_s6 = scalar_select %p149_p7, %s3858_s20, %s151_s27  }
   0xd   : > { %p212_p10 = pnand %p3303_p6, %p211_p9 }
   0xf   : > { %215 = sbr.rel (%p212_p10) target bundleno = 1173 (0x495), region = 40 }
  0x14   : > { %v3964_v0 = vld [vmem:[%s6437_s1 + $0x20] sm:$0xff]  ;;  %v3969_v1 = vld [vmem:[%s6437_s1 + $0x10] sm:$0xff]  ;;  %v6442_v3 = vmov 1   ;;  %v6445_v4 = vmov 0   ;;  %v260_v5 = vld [vmem:[%s6437_s1 + $0x28] sm:$0xff]  ;;  %p244_p11 = scmp.lt.s32.totalorder %s3862_s21, 1 }
  0x15   : > { %v255_v2 = vld [vmem:[%s6437_s1] sm:$0xff]  ;;  %3749 = vset.pattern.permute.xlu0 %v6442_v3  ;;  %3748 = vset.pattern.permute.xlu2 %v6445_v4  ;;  %v3985_v6 = vld [vmem:[%s6437_s1 + $0x18] sm:$0xff]  ;;  %v4003_v10 = vld [vmem:[%s6437_s1 + $0x50] sm:$0xff]  ;;  %s240_s9 = sand.u32 1, %s3854_s19   ;;  %s3687_s27 = smul.u32 768, %s3862_s21 }
  0x16   : > { %3747 = vset.pattern.permute.xlu1 %v6445_v4  ;;  %325 = vperm.xlu2 %3748, %v3964_v0   ;;  %v263_v7 = vld [vmem:[%s6437_s1 + $0x40] sm:$0xff]  ;;  %v3994_v8 = vld [vmem:[%s6437_s1 + $0x38] sm:$0xff]  ;;  %v4009_v11 = vld [vmem:[%s6437_s1 + $0x70] sm:$0xff]  ;;  %s245_s13 = scalar_select %p244_p11, %s3862_s21, 1 }
  0x17   : > { %315 = vperm.xlu1 %3747, %v3969_v1   ;;  %647 = vperm.xlu0 %3749, %v255_v2   ;;  %v266_v9 = vld [vmem:[%s6437_s1 + $0x58] sm:$0xff]  ;;  %v4014_v12 = vld [vmem:[%s6437_s1 + $0x68] sm:$0xff]  ;;  %v4029_v15 = vld [vmem:[%s6437_s1 + $0x80] sm:$0xff]  ;;  %s3686_s10 = smul.u32 768, %s240_s9  ;;  %s3216_s8 = scalar_lea.hbm %s6441_s5, %s3687_s27 }
  0x18   : > { %v286_v13 = vld [vmem:[%s6437_s1 + $0xf8] sm:$0xff]  ;;  %v4024_v14 = vld [vmem:[%s6437_s1 + $0x88] sm:$0xff]  ;;  %v283_v16 = vld [vmem:[%s6437_s1 + $0xe0] sm:$0xff]  ;;  %s3597_s16 = sshll.u32 %s245_s13, 2  ;;  %s3219_s12 = sshll.u32 %s3216_s8, 4  ;;  %s3220_s12 = int_to_ptr.hbm [resolvable:$true] %s3219_s12 }
  0x19   : > { %v4039_v17 = vld [vmem:[%s6437_s1 + $0xa0] sm:$0xff]  ;;  %v4044_v18 = vld [vmem:[%s6437_s1 + $0x98] sm:$0xff]  ;;  %v4062_v21 = vld [vmem:[%s6437_s1 + $0xb0] sm:$0xff]  ;;  %s251_s29 = scalar_lea.vmem %s6436_s0, %s3597_s16  ;;  %s6084_s11 = scalar_lea.vmem [#allocation2], %s3686_s10 }
  0x1a   : > { %v4049_v19 = vld [vmem:[%s6437_s1 + $0xc0] sm:$0xff]  ;;  %v4057_v20 = vld [vmem:[%s6437_s1 + $0xb8] sm:$0xff]  ;;  %v276_v22 = vld [vmem:[%s6437_s1 + $0xa8] sm:$0xff]  ;;  %s3217_s10 = sshll.u32 %s6084_s11, 4  ;;  %s3203_s21 = scalar_lea.sflag [#allocation3], %s240_s9  ;;  %s3218_s10 = int_to_ptr.vmem [resolvable:$true] %s3217_s10 }
  0x1b   : > { %v4072_v23 = vld [vmem:[%s6437_s1 + $0xd0] sm:$0xff]  ;;  %v4077_v24 = vld [vmem:[%s6437_s1 + $0xc8] sm:$0xff]  ;;  %v4094_v27 = vld [vmem:[%s6437_s1 + $0x100] sm:$0xff]  ;;  %s3806_s13 = sshra.s32 %s3220_s12, 4  ;;  %s3812_s17 = scalar_lea.hbm %s6441_s5, 1536  ;;  %s3807_s13 = int_to_ptr.hbm [resolvable:$true] %s3806_s13 }
  0x1c   : > { %v273_v25 = vld [vmem:[%s6437_s1 + $0x90] sm:$0xff]  ;;  %v4087_v26 = vld [vmem:[%s6437_s1 + $0xe8] sm:$0xff]  ;;  %v4103_v29 = vld [vmem:[%s6437_s1 + $0x118] sm:$0xff]  ;;  %s3808_s14 = scalar_lea.hbm %s3807_s13, 768  ;;  %p3813_p1 = scmp.lt.s32.totalorder %s3807_s13, %s6441_s5 }
  0x1d   : > { %v256_v28 = vld [vmem:[%s6437_s1 + $0x8] sm:$0xff]  ;;  %v289_v30 = vld [vmem:[%s6437_s1 + $0x110] sm:$0xff]  ;;  %v4136_v38 = vld [vmem:[%s6437_s1 + $0x140] sm:$0xff]  ;;  %p3809_p12 = scmp.ne.s32.totalorder %s3807_s13, %s3808_s14  ;;  %p3814_p2 = scmp.lt.s32.totalorder %s3812_s17, %s3808_s14 }
  0x1e   : > { %330 = vperm.xlu2 %3748, %v260_v5   ;;  %v261_v31 = vld [vmem:[%s6437_s1 + $0x30] sm:$0xff]  ;;  %v292_v34 = vld [vmem:[%s6437_s1 + $0x128] sm:$0xff]  ;;  %v267_v39 = vld [vmem:[%s6437_s1 + $0x60] sm:$0xff] }
  0x1f   : > { %320 = vperm.xlu1 %3747, %v3985_v6   ;;  %667 = vperm.xlu0 %3749, %v260_v5   ;;  %v4117_v33 = vld [vmem:[%s6437_s1 + $0x130] sm:$0xff]  ;;  %v264_v35 = vld [vmem:[%s6437_s1 + $0x48] sm:$0xff]  ;;  %v4148_v41 = vld [vmem:[%s6437_s1 + $0x160] sm:$0xff]  ;;  %p3810_p13 = pnand %p3809_p12, %p3946_p4  ;;  %p3815_p3 = por %p3814_p2, %p3813_p1 }
  0x20   : > { %6551 = vst [vmem:[#allocation6_spill] sm:$0xff] %v4117_v33  ;;  %v4131_v37 = vld [vmem:[%s6437_s1 + $0x148] sm:$0xff]  ;;  %v4153_v42 = vld [vmem:[%s6437_s1 + $0x158] sm:$0xff]  ;;  %v4174_v48 = vld [vmem:[%s6437_s1 + $0x170] sm:$0xff] }
  0x21   : > { %6553 = vst [vmem:[#allocation8_spill] sm:$0xff] %v4131_v37  ;;  %v270_v43 = vld [vmem:[%s6437_s1 + $0x78] sm:$0xff]  ;;  %v285_v62 = vld [vmem:[%s6437_s1 + $0xf0] sm:$0xff]  ;;  %p3811_p0 = pneg %p3810_p13 }
  0x22   : > { %v4169_v47 = vld [vmem:[%s6437_s1 + $0x178] sm:$0xff] }
  0x23   : > { %v282_v58 = vld [vmem:[%s6437_s1 + $0xd8] sm:$0xff]  ;;  %p3816_p5 = pnand %p3815_p3, %p3811_p0 }
  0x26   : > { %345 = vperm.xlu2 %3748, %v263_v7  }
  0x27   : > { %340 = vperm.xlu1 %3747, %v3994_v8   ;;  %679 = vperm.xlu0 %3749, %v263_v7  }
  0x2e   : > { %360 = vperm.xlu2 %3748, %v266_v9  }
  0x2f   : > { %355 = vperm.xlu1 %3747, %v4003_v10   ;;  %691 = vperm.xlu0 %3749, %v266_v9  }
  0x36   : > { %375 = vperm.xlu2 %3748, %v4009_v11  }
  0x37   : > { %370 = vperm.xlu1 %3747, %v4014_v12   ;;  %771 = vperm.xlu0 %3749, %v286_v13  }
  0x3e   : > { %390 = vperm.xlu2 %3748, %v4024_v14  }
  0x3f   : > { %385 = vperm.xlu1 %3747, %v4029_v15   ;;  %759 = vperm.xlu0 %3749, %v283_v16  }
  0x46   : > { %405 = vperm.xlu2 %3748, %v4039_v17  }
  0x47   : > { %400 = vperm.xlu1 %3747, %v4044_v18   ;;  %743 = vperm.xlu0 %3749, %v4049_v19  }
  0x4e   : > { %420 = vperm.xlu2 %3748, %v4057_v20  }
  0x4f   : > { %415 = vperm.xlu1 %3747, %v4062_v21   ;;  %731 = vperm.xlu0 %3749, %v276_v22  }
  0x56   : > { %435 = vperm.xlu2 %3748, %v4072_v23  }
  0x57   : > { %430 = vperm.xlu1 %3747, %v4077_v24   ;;  %719 = vperm.xlu0 %3749, %v273_v25  }
  0x5e   : > { %450 = vperm.xlu2 %3748, %v4087_v26  }
  0x5f   : > { %445 = vperm.xlu1 %3747, %v283_v16   ;;  %3764 = vset.pattern.permute.xlu0 %v6445_v4  ;;  %v4247_v16 = vld [vmem:[%s6437_s1 + $0x138] sm:$0xff] }
  0x60   : > { %305 = vperm.xlu0 %3764, %v255_v2   ;;  %v288_v2 = vld [vmem:[%s6437_s1 + $0x108] sm:$0xff]  ;;  %6572 = vst [vmem:[#allocation27_spill] sm:$0xff] %v4247_v16 }
  0x66   : > { %465 = vperm.xlu2 %3748, %v4094_v27  }
  0x67   : > { %460 = vperm.xlu1 %3747, %v286_v13  }
  0x68   : > { %310 = vperm.xlu0 %3764, %v256_v28  }
  0x6e   : > { %480 = vperm.xlu2 %3748, %v4103_v29  }
  0x6f   : > { %475 = vperm.xlu1 %3747, %v289_v30  }
  0x70   : > { %335 = vperm.xlu0 %3764, %v261_v31   ;;  %v4112_v32 = vpop.permute.xlu2 %325 }
  0x71   : > { %6550 = vst [vmem:[#allocation5_spill] sm:$0xff] %v4112_v32 }
  0x76   : > { %495 = vperm.xlu2 %3748, %v4117_v33  }
  0x77   : > { %490 = vperm.xlu1 %3747, %v292_v34   ;;  %v4279_v34 = vld [vmem:[%s6437_s1 + $0x168] sm:$0xff] }
  0x78   : > { %350 = vperm.xlu0 %3764, %v264_v35   ;;  %v4126_v36 = vpop.permute.xlu2 %330 }
  0x79   : > { %6552 = vst [vmem:[#allocation7_spill] sm:$0xff] %v4126_v36 }
  0x7e   : > { %510 = vperm.xlu2 %3748, %v4131_v37  }
  0x7f   : > { %505 = vperm.xlu1 %3747, %v4136_v38  }
  0x80   : > { %365 = vperm.xlu0 %3764, %v267_v39   ;;  %v4143_v40 = vpop.permute.xlu2 %345 }
  0x81   : > { %6554 = vst [vmem:[#allocation9_spill] sm:$0xff] %v4143_v40 }
  0x86   : > { %525 = vperm.xlu2 %3748, %v4148_v41  }
  0x87   : > { %520 = vperm.xlu1 %3747, %v4153_v42  }
  0x88   : > { %380 = vperm.xlu0 %3764, %v270_v43   ;;  %v4160_v44 = vpop.permute.xlu2 %360 }
  0x89   : > { %6555 = vst [vmem:[#allocation10_spill] sm:$0xff] %v4160_v44  ;;  %v4162_v45 = vpop.permute.xlu1 %315  ;;  %v4164_v46 = vpop.permute.xlu0 %647 }
  0x8a   : > { %6556 = vst [vmem:[#allocation11_spill] sm:$0xff] %v4162_v45 }
  0x8b   : > { %6557 = vst [vmem:[#allocation12_spill] sm:$0xff] %v4164_v46 }
  0x8e   : > { %540 = vperm.xlu2 %3748, %v4169_v47  }
  0x8f   : > { %535 = vperm.xlu1 %3747, %v4174_v48  }
  0x90   : > { %395 = vperm.xlu0 %3764, %v273_v25   ;;  %v4178_v49 = vpop.permute.xlu2 %375 }
  0x91   : > { %v4180_v50 = vpop.permute.xlu1 %320  ;;  %v4182_v51 = vpop.permute.xlu0 %667 }
  0x92   : > { %6558 = vst [vmem:[#allocation13_spill] sm:$0xff] %v4180_v50 }
  0x93   : > { %6559 = vst [vmem:[#allocation14_spill] sm:$0xff] %v4182_v51  ;;  %v1045_v51 = vld [vmem:[%s6438_s2 + $0x48] sm:$0xff] }
  0x96   : > { %3751 = vset.pattern.permute.xlu2 %v6442_v3 }
  0x97   : > { %3750 = vset.pattern.permute.xlu1 %v6442_v3  ;;  %655 = vperm.xlu2 %3751, %v3969_v1  }
  0x98   : > { %651 = vperm.xlu1 %3750, %v256_v28   ;;  %410 = vperm.xlu0 %3764, %v276_v22   ;;  %v4187_v52 = vpop.permute.xlu2 %390  ;;  %v4264_v28 = vld [vmem:[%s6437_s1 + $0x150] sm:$0xff] }
  0x99   : > { %6560 = vst [vmem:[#allocation15_spill] sm:$0xff] %v4187_v52  ;;  %v4189_v53 = vpop.permute.xlu1 %340  ;;  %v4191_v54 = vpop.permute.xlu0 %679 }
  0x9a   : > { %6561 = vst [vmem:[#allocation16_spill] sm:$0xff] %v4189_v53 }
  0x9b   : > { %6562 = vst [vmem:[#allocation17_spill] sm:$0xff] %v4191_v54 }
  0x9f   : > { %663 = vperm.xlu2 %3751, %v3964_v0  }
  0xa0   : > { %659 = vperm.xlu1 %3750, %v3985_v6   ;;  %425 = vperm.xlu0 %3764, %v4049_v19   ;;  %v4196_v55 = vpop.permute.xlu2 %405  ;;  %v1066_v19 = vld [vmem:[%s6438_s2 + $0xf0] sm:$0xff] }
  0xa1   : > { %6563 = vst [vmem:[#allocation18_spill] sm:$0xff] %v4196_v55  ;;  %v4198_v56 = vpop.permute.xlu1 %355  ;;  %v4200_v57 = vpop.permute.xlu0 %691 }
  0xa2   : > { %6564 = vst [vmem:[#allocation19_spill] sm:$0xff] %v4198_v56 }
  0xa3   : > { %6565 = vst [vmem:[#allocation20_spill] sm:$0xff] %v4200_v57 }
  0xa7   : > { %675 = vperm.xlu2 %3751, %v3994_v8   ;;  %v4234_v8 = vld [vmem:[%s6437_s1 + $0x120] sm:$0xff] }
  0xa8   : > { %671 = vperm.xlu1 %3750, %v261_v31   ;;  %440 = vperm.xlu0 %3764, %v282_v58   ;;  %v4206_v59 = vpop.permute.xlu2 %420 }
  0xa9   : > { %6566 = vst [vmem:[#allocation21_spill] sm:$0xff] %v4206_v59  ;;  %v4208_v60 = vpop.permute.xlu1 %370  ;;  %v4210_v61 = vpop.permute.xlu0 %771 }
  0xaf   : > { %687 = vperm.xlu2 %3751, %v4003_v10  }
  0xb0   : > { %683 = vperm.xlu1 %3750, %v264_v35   ;;  %455 = vperm.xlu0 %3764, %v285_v62   ;;  %v4216_v63 = vpop.permute.xlu2 %435  ;;  %v1050_v35 = vld [vmem:[%s6438_s2 + $0x70] sm:$0xff] }
  0xb1   : > { %v4218_v0 = vpop.permute.xlu1 %385  ;;  %v4220_v1 = vpop.permute.xlu0 %759 }
  0xb2   : > { %6567 = vst [vmem:[#allocation22_spill] sm:$0xff] %v4218_v0  ;;  %v1061_v0 = vld [vmem:[%s6438_s2 + $0xc8] sm:$0xff] }
  0xb7   : > { %767 = vperm.xlu2 %3751, %v285_v62  }
  0xb8   : > { %695 = vperm.xlu1 %3750, %v267_v39   ;;  %470 = vperm.xlu0 %3764, %v288_v2   ;;  %v4225_v5 = vpop.permute.xlu2 %450  ;;  %v1065_v2 = vld [vmem:[%s6438_s2 + $0xe8] sm:$0xff] }
  0xb9   : > { %v4227_v6 = vpop.permute.xlu1 %400  ;;  %v4229_v7 = vpop.permute.xlu0 %743 }
  0xba   : > { %6568 = vst [vmem:[#allocation23_spill] sm:$0xff] %v4227_v6  ;;  %v1037_v6 = vld [vmem:[%s6438_s2 + $0x8] sm:$0xff] }
  0xbf   : > { %707 = vperm.xlu2 %3751, %v270_v43   ;;  %v1067_v43 = vld [vmem:[%s6438_s2 + $0xf8] sm:$0xff] }
  0xc0   : > { %703 = vperm.xlu1 %3750, %v4009_v11   ;;  %485 = vperm.xlu0 %3764, %v4234_v8   ;;  %v4238_v9 = vpop.permute.xlu2 %465 }
  0xc1   : > { %6569 = vst [vmem:[#allocation24_spill] sm:$0xff] %v4238_v9  ;;  %v4240_v10 = vpop.permute.xlu1 %415  ;;  %v4242_v13 = vpop.permute.xlu0 %731 }
  0xc2   : > { %6570 = vst [vmem:[#allocation25_spill] sm:$0xff] %v4240_v10 }
  0xc3   : > { %6571 = vst [vmem:[#allocation26_spill] sm:$0xff] %v4242_v13 }
  0xc7   : > { %3752 = vset.pattern.permute.xlu2 %v6445_v4 }
  0xc8   : > { %763 = vperm.xlu1 %3750, %v4087_v26   ;;  %500 = vperm.xlu0 %3764, %v4247_v16   ;;  %v4255_v11 = vpop.permute.xlu2 %480 }
  0xc9   : > { %6573 = vst [vmem:[#allocation28_spill] sm:$0xff] %v4255_v11  ;;  %1236 = vperm.xlu2 %3752, %v1066_v19   ;;  %v4257_v22 = vpop.permute.xlu1 %430  ;;  %v4259_v25 = vpop.permute.xlu0 %719  ;;  %v6584_v11 = vmov 1  }
  0xca   : > { %6574 = vst [vmem:[#allocation29_spill] sm:$0xff] %v4257_v22 }
  0xcb   : > { %6575 = vst [vmem:[#allocation30_spill] sm:$0xff] %v4259_v25 }
  0xd0   : > { %699 = vperm.xlu1 %3750, %v4014_v12   ;;  %515 = vperm.xlu0 %3764, %v4264_v28   ;;  %v4268_v30 = vpop.permute.xlu2 %495 }
  0xd1   : > { %6576 = vst [vmem:[#allocation31_spill] sm:$0xff] %v4268_v30  ;;  %3753 = vset.pattern.permute.xlu2 %v6442_v3  ;;  %v4271_v26 = vpop.permute.xlu1 %445  ;;  %v1051_v3 = vld [vmem:[%s6438_s2 + $0x78] sm:$0xff] }
  0xd2   : > { %751 = vperm.xlu2 %3753, %v4072_v23   ;;  %v4274_v31 = vpop.permute.xlu0 %305 }
  0xd3   : > { %6577 = vst [vmem:[#allocation32_spill] sm:$0xff] %v4274_v31 }
  0xd8   : > { %755 = vperm.xlu1 %3750, %v282_v58   ;;  %530 = vperm.xlu0 %3764, %v4279_v34   ;;  %v4282_v12 = vpop.permute.xlu2 %510  ;;  %v1064_v58 = vld [vmem:[%s6438_s2 + $0xe0] sm:$0xff] }
  0xd9   : > { %6578 = vst [vmem:[#allocation33_spill] sm:$0xff] %v4282_v12  ;;  %v4287_v39 = vpop.permute.xlu1 %460 }
  0xda   : > { %3754 = vset.pattern.permute.xlu2 %v6445_v4  ;;  %v4290_v23 = vpop.permute.xlu0 %310 }
  0xdb   : > { %6579 = vst [vmem:[#allocation34_spill] sm:$0xff] %v4290_v23  ;;  %1156 = vperm.xlu2 %3754, %v1050_v35  }
  0xe0   : > { %3755 = vset.pattern.permute.xlu1 %v6445_v4  ;;  %1241 = vperm.xlu0 %3764, %v1067_v43   ;;  %v4299_v62 = vpop.permute.xlu2 %525  ;;  %v1048_v43 = vld [vmem:[%s6438_s2 + $0x60] sm:$0xff] }
  0xe1   : > { %6580 = vst [vmem:[#allocation35_spill] sm:$0xff] %v4299_v62  ;;  %v4304_v19 = vpop.permute.xlu1 %475  ;;  %1226 = vperm.xlu1 %3755, %v1064_v58  }
  0xe2   : > { %6581 = vst [vmem:[#allocation36_spill] sm:$0xff] %v4304_v19  ;;  %v4306_v35 = vpop.permute.xlu0 %335  ;;  %v1049_v19 = vld [vmem:[%s6438_s2 + $0x68] sm:$0xff] }
  0xe3   : > { %1231 = vperm.xlu2 %3754, %v1065_v2   ;;  %v1063_v2 = vld [vmem:[%s6438_s2 + $0xd8] sm:$0xff] }
  0xe8   : > { %1161 = vperm.xlu0 %3764, %v1051_v3   ;;  %v4311_v9 = vpop.permute.xlu2 %540  ;;  %v1062_v3 = vld [vmem:[%s6438_s2 + $0xd0] sm:$0xff] }
  0xe9   : > { %6582 = vst [vmem:[#allocation37_spill] sm:$0xff] %v4311_v9  ;;  %v4316_v4 = vpop.permute.xlu1 %490  ;;  %3756 = vset.pattern.permute.xlu1 %v6584_v11 }
  0xea   : > { %6583 = vst [vmem:[#allocation38_spill] sm:$0xff] %v4316_v4  ;;  %747 = vperm.xlu1 %3756, %v4077_v24   ;;  %v4320_v58 = vpop.permute.xlu0 %350  ;;  %v6587_v24 = vmov 0  }
  0xeb   : > { %1146 = vperm.xlu2 %3754, %v1048_v43  }
  0xf0   : > { %1221 = vperm.xlu0 %3764, %v1063_v2   ;;  %v1060_v2 = vld [vmem:[%s6438_s2 + $0xc0] sm:$0xff] }
  0xf1   : > { %v4331_v4 = vpop.permute.xlu1 %505  ;;  %v4333_v30 = vpop.permute.xlu2 %655 }
  0xf2   : > { %6585 = vst [vmem:[#allocation39_spill] sm:$0xff] %v4331_v4  ;;  %3757 = vset.pattern.permute.xlu1 %v6587_v24  ;;  %v4336_v43 = vpop.permute.xlu0 %365 }
  0xf3   : > { %6586 = vst [vmem:[#allocation40_spill] sm:$0xff] %v4333_v30  ;;  %1216 = vperm.xlu2 %3754, %v1062_v3   ;;  %1151 = vperm.xlu1 %3757, %v1049_v19   ;;  %v1043_v19 = vld [vmem:[%s6438_s2 + $0x38] sm:$0xff] }
  0xf8   : > { %1206 = vperm.xlu0 %3764, %v1060_v2  }
  0xf9   : > { %v4341_v12 = vpop.permute.xlu1 %520  ;;  %v4343_v9 = vpop.permute.xlu2 %663 }
  0xfa   : > { %6588 = vst [vmem:[#allocation41_spill] sm:$0xff] %v4341_v12  ;;  %v4345_v62 = vpop.permute.xlu0 %380  ;;  %v1047_v12 = vld [vmem:[%s6438_s2 + $0x58] sm:$0xff] }
  0xfb   : > { %6589 = vst [vmem:[#allocation42_spill] sm:$0xff] %v4343_v9  ;;  %3759 = vset.pattern.permute.xlu2 %v6584_v11  ;;  %3758 = vset.pattern.permute.xlu1 %v6584_v11 }
  0xfc   : > { %739 = vperm.xlu2 %3759, %v4057_v20   ;;  %735 = vperm.xlu1 %3758, %v4062_v21   ;;  %v1046_v20 = vld [vmem:[%s6438_s2 + $0x50] sm:$0xff]  ;;  %v1040_v21 = vld [vmem:[%s6438_s2 + $0x20] sm:$0xff] }
 0x100   : > { %1121 = vperm.xlu0 %3764, %v1043_v19  }
 0x101   : > { %v4354_v3 = vpop.permute.xlu1 %535  ;;  %v4356_v2 = vpop.permute.xlu2 %675 }
 0x102   : > { %6590 = vst [vmem:[#allocation43_spill] sm:$0xff] %v4354_v3  ;;  %v4358_v4 = vpop.permute.xlu0 %395 }
 0x103   : > { %6591 = vst [vmem:[#allocation44_spill] sm:$0xff] %v4358_v4 }
 0x104   : > { %3761 = vset.pattern.permute.xlu2 %v6587_v24  ;;  %3760 = vset.pattern.permute.xlu1 %v6587_v24 }
 0x105   : > { %1141 = vperm.xlu2 %3761, %v1047_v12   ;;  %1136 = vperm.xlu1 %3760, %v1046_v20   ;;  %v1055_v12 = vld [vmem:[%s6438_s2 + $0x98] sm:$0xff]  ;;  %v254_v20 = vld [vmem:[%s251_s29] sm:$0xf] }
 0x106   : > { %v545_v50 = vperm.slane %v254_v20, 2  ;;  %v839_v36 = vperm.slane %v254_v20, 3  ;;  %v544_v32 = vperm.slane %v254_v20, 0 }
 0x108   : > { %1106 = vperm.xlu0 %3764, %v1040_v21   ;;  %v4408_v9 = vperm.slane %v839_v36, 1  ;;  %v4410_v46 = vperm.slane %v544_v32, 0  ;;  %v1058_v36 = vld [vmem:[%s6438_s2 + $0xb0] sm:$0xff] }
 0x109   : > { %v4373_v19 = vpop.permute.xlu2 %687 }
 0x10a   : > { %6592 = vst [vmem:[#allocation45_spill] sm:$0xff] %v4373_v19  ;;  %v4375_v3 = vpop.permute.xlu1 %651  ;;  %v4377_v52 = vpop.permute.xlu0 %410  ;;  %v562_v32 = vmul.f32 %v4410_v46, %v4306_v35 }
 0x10b   : > { %6593 = vst [vmem:[#allocation46_spill] sm:$0xff] %v4375_v3 }
 0x10c   : > { %6594 = vst [vmem:[#allocation47_spill] sm:$0xff] %v4377_v52 }
 0x10d   : > { %3762 = vset.pattern.permute.xlu2 %v6584_v11  ;;  %1211 = vperm.xlu1 %3760, %v1061_v0   ;;  %v1044_v0 = vld [vmem:[%s6438_s2 + $0x40] sm:$0xff] }
 0x10e   : > { %727 = vperm.xlu2 %3762, %v4039_v17   ;;  %v838_v17 = vperm.slane %v254_v20, 1 }
 0x110   : > { %1181 = vperm.xlu0 %3764, %v1055_v12   ;;  %v1052_v12 = vld [vmem:[%s6438_s2 + $0x80] sm:$0xff]  ;;  %v4412_v23 = vperm.slane %v838_v17, 1 }
 0x111   : > { %v4390_v21 = vpop.permute.xlu2 %767 }
 0x112   : > { %v4392_v45 = vpop.permute.xlu1 %659  ;;  %v4394_v30 = vpop.permute.xlu0 %425 }
 0x113   : > { %6595 = vst [vmem:[#allocation48_spill] sm:$0xff] %v4392_v45  ;;  %v4406_v45 = vperm.slane %v545_v50, 0 }
 0x115   : > { %1126 = vperm.xlu1 %3760, %v1044_v0   ;;  %v581_v20 = vmul.f32 %v4406_v45, %v4345_v62  ;;  %v563_v50 = vmul.f32 %v4406_v45, %v4306_v35  ;;  %v568_v35 = vmul.f32 %v4410_v46, %v4320_v58  ;;  %v607_v37 = vmul.f32 %v4406_v45, %v4271_v26 }
 0x116   : > { %3763 = vset.pattern.permute.xlu2 %v6587_v24 }
 0x117   : > { %1131 = vperm.xlu2 %3763, %v1045_v51  }
 0x118   : > { %1166 = vperm.xlu0 %3764, %v1052_v12   ;;  %v1059_v12 = vld [vmem:[%s6438_s2 + $0xb8] sm:$0xff] }
 0x119   : > { %v4414_v31 = vpop.permute.xlu2 %707 }
 0x11a   : > { %v875_v0 = vmul.f32 %v4408_v9, %v4414_v31  ;;  %v672_v3 = vpop.permute.xlu1 %671  ;;  %v4420_v55 = vpop.permute.xlu0 %440 }
 0x11b   : > { %v856_v51 = vmul.f32 %v4412_v23, %v672_v3  ;;  %v857_v17 = vmul.f32 %v4408_v9, %v672_v3  ;;  %v569_v3 = vmul.f32 %v4406_v45, %v4320_v58  ;;  %v1079_v58 = vld [vmem:[%s6438_s2 + $0x158] sm:$0xff] }
 0x11c   : > { %v4434_v25 = vadd.f32 %v875_v0, %v581_v20  ;;  %v905_v0 = vmul.f32 %v4408_v9, %v4390_v21 }
 0x11d   : > { %1196 = vperm.xlu1 %3760, %v1058_v36   ;;  %v4439_v4 = vadd.f32 %v856_v51, %v562_v32  ;;  %v4441_v10 = vadd.f32 %v857_v17, %v563_v50 }
 0x11f   : > { %6596 = vst [vmem:[#allocation49_spill] sm:$0xff] %v4439_v4  ;;  %1201 = vperm.xlu2 %3763, %v1059_v12   ;;  %v605_v4 = vmul.f32 %v4406_v45, %v4420_v55 }
 0x120   : > { %6597 = vst [vmem:[#allocation50_spill] sm:$0xff] %v4441_v10  ;;  %1091 = vperm.xlu0 %3764, %v1037_v6   ;;  %v1042_v6 = vld [vmem:[%s6438_s2 + $0x30] sm:$0xff]  ;;  %v904_v10 = vmul.f32 %v4412_v23, %v4390_v21  ;;  %v606_v21 = vmul.f32 %v4410_v46, %v4271_v26  ;;  %v900_v26 = vmul.f32 %v4412_v23, %v4220_v1 }
 0x122   : > { %v684_v16 = vpop.permute.xlu1 %683  ;;  %v456_v20 = vpop.permute.xlu0 %455  ;;  %v996_v44 = vadd.f32 %v900_v26, %v606_v21 }
 0x123   : > { %v862_v36 = vmul.f32 %v4412_v23, %v684_v16  ;;  %v863_v32 = vmul.f32 %v4408_v9, %v684_v16  ;;  %v611_v50 = vmul.f32 %v4406_v45, %v456_v20  ;;  %v4452_v51 = vpop.permute.xlu2 %1236 }
 0x125   : > { %v1001_v17 = vadd.f32 %v905_v0, %v611_v50  ;;  %3765 = vset.pattern.permute.xlu1 %v6584_v11  ;;  %v4461_v12 = vadd.f32 %v862_v36, %v568_v35  ;;  %v4463_v33 = vadd.f32 %v863_v32, %v569_v3  ;;  %v575_v50 = vmul.f32 %v4406_v45, %v4336_v43  ;;  %v1056_v3 = vld [vmem:[%s6438_s2 + $0xa0] sm:$0xff] }
 0x126   : > { %723 = vperm.xlu1 %3765, %v4044_v18   ;;  %v1057_v18 = vld [vmem:[%s6438_s2 + $0xa8] sm:$0xff] }
 0x127   : > { %6598 = vst [vmem:[#allocation51_spill] sm:$0xff] %v4461_v12  ;;  %v4467_v16 = vadd.f32 %v4452_v51, %v1001_v17  ;;  %1116 = vperm.xlu2 %3763, %v1042_v6  }
 0x128   : > { %6599 = vst [vmem:[#allocation52_spill] sm:$0xff] %v4463_v33  ;;  %1301 = vperm.xlu0 %3764, %v1079_v58   ;;  %v579_v58 = vmul.f32 %v4406_v45, %v4178_v49 }
 0x12a   : > { %v4469_v13 = vpop.permute.xlu1 %695  ;;  %v4471_v0 = vpop.permute.xlu0 %470 }
 0x12b   : > { %6600 = vst [vmem:[#allocation53_spill] sm:$0xff] %v4471_v0  ;;  %v869_v35 = vmul.f32 %v4408_v9, %v4469_v13 }
 0x12c   : > { %v4477_v36 = vpop.permute.xlu2 %751 }
 0x12d   : > { %v965_v32 = vadd.f32 %v869_v35, %v575_v50 }
 0x12e   : > { %3766 = vset.pattern.permute.xlu1 %v6587_v24 }
 0x12f   : > { %1191 = vperm.xlu2 %3763, %v1057_v18   ;;  %1186 = vperm.xlu1 %3766, %v1056_v3   ;;  %v609_v18 = vmul.f32 %v4406_v45, %v4225_v5 }
 0x130   : > { %3778 = vset.pattern.permute.xlu0 %v6584_v11 }
 0x131   : > { %823 = vperm.xlu0 %3778, %v4148_v41  }
 0x132   : > { %v704_v6 = vpop.permute.xlu1 %703  ;;  %v4488_v17 = vpop.permute.xlu0 %485 }
 0x133   : > { %6601 = vst [vmem:[#allocation54_spill] sm:$0xff] %v4488_v17  ;;  %v873_v0 = vmul.f32 %v4408_v9, %v704_v6 }
 0x135   : > { %v4493_v12 = vpop.permute.xlu2 %1156  ;;  %v969_v52 = vadd.f32 %v873_v0, %v579_v58  ;;  %v1054_v58 = vld [vmem:[%s6438_s2 + $0x90] sm:$0xff] }
 0x137   : > { %v4496_v50 = vadd.f32 %v4493_v12, %v969_v52  ;;  %3768 = vset.pattern.permute.xlu2 %v6584_v11  ;;  %3767 = vset.pattern.permute.xlu1 %v6584_v11 }
 0x138   : > { %715 = vperm.xlu2 %3768, %v4024_v14   ;;  %711 = vperm.xlu1 %3767, %v4029_v15   ;;  %v1041_v14 = vld [vmem:[%s6438_s2 + $0x28] sm:$0xff] }
 0x139   : > { %819 = vperm.xlu0 %3778, %v4153_v42   ;;  %v1449_v26 = vmax.f32 %v4496_v50, 0.0  ;;  %v574_v50 = vmul.f32 %v4410_v46, %v4336_v43  ;;  %v576_v43 = vmul.f32 %v4410_v46, %v4208_v60 }
 0x13a   : > { %v764_v41 = vpop.permute.xlu1 %763  ;;  %v4503_v35 = vpop.permute.xlu0 %500 }
 0x13b   : > { %6602 = vst [vmem:[#allocation55_spill] sm:$0xff] %v4503_v35  ;;  %v903_v0 = vmul.f32 %v4408_v9, %v764_v41  ;;  %v603_v35 = vmul.f32 %v4406_v45, %v4216_v63  ;;  %v902_v22 = vmul.f32 %v4412_v23, %v764_v41  ;;  %v901_v41 = vmul.f32 %v4408_v9, %v4220_v1 }
 0x13d   : > { %v4508_v52 = vpop.permute.xlu2 %1231  ;;  %v999_v3 = vadd.f32 %v903_v0, %v609_v18  ;;  %v997_v1 = vadd.f32 %v901_v41, %v607_v37 }
 0x13f   : > { %v4517_v15 = vadd.f32 %v4508_v52, %v999_v3  ;;  %v1039_v3 = vld [vmem:[%s6438_s2 + $0x18] sm:$0xff] }
 0x140   : > { %3770 = vset.pattern.permute.xlu2 %v6587_v24  ;;  %3769 = vset.pattern.permute.xlu1 %v6587_v24 }
 0x141   : > { %1176 = vperm.xlu2 %3770, %v1054_v58   ;;  %1111 = vperm.xlu1 %3769, %v1041_v14   ;;  %v1038_v58 = vld [vmem:[%s6438_s2 + $0x10] sm:$0xff]  ;;  %v610_v14 = vmul.f32 %v4410_v46, %v456_v20 }
 0x142   : > { %807 = vperm.xlu0 %3778, %v4136_v38   ;;  %v4522_v42 = vpop.permute.xlu1 %699  ;;  %v4524_v18 = vpop.permute.xlu0 %515  ;;  %v897_v38 = vmul.f32 %v4408_v9, %v4477_v36 }
 0x143   : > { %6603 = vst [vmem:[#allocation56_spill] sm:$0xff] %v4524_v18  ;;  %v1000_v54 = vadd.f32 %v904_v10, %v610_v14  ;;  %v906_v10 = vmul.f32 %v4412_v23, %v4210_v61  ;;  %v608_v14 = vmul.f32 %v4410_v46, %v4225_v5 }
 0x145   : > { %v4526_v0 = vpop.permute.xlu2 %1146  ;;  %v998_v33 = vadd.f32 %v902_v22, %v608_v14 }
 0x146   : > { %v4529_v17 = vadd.f32 %v4526_v0, %v965_v32 }
 0x147   : > { %v1382_v22 = vadd.f32 %v4508_v52, %v998_v33  ;;  %v602_v52 = vmul.f32 %v4410_v46, %v4216_v63  ;;  %v604_v63 = vmul.f32 %v4410_v46, %v4420_v55  ;;  %v1071_v55 = vld [vmem:[%s6438_s2 + $0x118] sm:$0xff] }
 0x149   : > { %1101 = vperm.xlu2 %3770, %v1039_v3   ;;  %1096 = vperm.xlu1 %3769, %v1038_v58   ;;  %v993_v3 = vadd.f32 %v897_v38, %v603_v35  ;;  %v612_v58 = vmul.f32 %v4410_v46, %v4287_v39  ;;  %v907_v38 = vmul.f32 %v4408_v9, %v4210_v61 }
 0x14a   : > { %791 = vperm.xlu0 %3778, %v4234_v8   ;;  %v4543_v32 = vpop.permute.xlu1 %755  ;;  %v4545_v18 = vpop.permute.xlu0 %530  ;;  %v613_v8 = vmul.f32 %v4406_v45, %v4287_v39  ;;  %v1036_v39 = vld [vmem:[%s6438_s2] sm:$0xff]  ;;  %v578_v61 = vmul.f32 %v4410_v46, %v4178_v49 }
 0x14b   : > { %6604 = vst [vmem:[#allocation57_spill] sm:$0xff] %v4545_v18  ;;  %v899_v20 = vmul.f32 %v4408_v9, %v4543_v32  ;;  %v1002_v59 = vadd.f32 %v906_v10, %v612_v58 }
 0x14c   : > { %v1003_v56 = vadd.f32 %v907_v38, %v613_v8  ;;  %v1481_v8 = vmax.f32 %v4467_v16, 0.0 }
 0x14d   : > { %v4557_v40 = vpop.permute.xlu2 %1216  ;;  %v4559_v18 = vadd.f32 %v899_v20, %v605_v4  ;;  %v1053_v4 = vld [vmem:[%s6438_s2 + $0x88] sm:$0xff]  ;;  %v872_v20 = vmul.f32 %v4412_v23, %v704_v6  ;;  %v874_v6 = vmul.f32 %v4412_v23, %v4414_v31 }
 0x14e   : > { %v4567_v35 = vadd.f32 %v4557_v40, %v993_v3  ;;  %v1384_v3 = vadd.f32 %v4452_v51, %v1000_v54 }
 0x14f   : > { %v968_v54 = vadd.f32 %v872_v20, %v578_v61 }
 0x150   : > { %v1480_v58 = vmax.f32 %v1384_v3, 0.0 }
 0x151   : > { %1086 = vperm.xlu2 %3770, %v1036_v39   ;;  %1171 = vperm.xlu1 %3769, %v1053_v4  }
 0x152   : > { %787 = vperm.xlu0 %3778, %v4103_v29   ;;  %v1242_v19 = vpop.permute.xlu0 %1241  ;;  %v1479_v29 = vmax.f32 %v4517_v15, 0.0 }
 0x153   : > { %v1386_v57 = vadd.f32 %v1242_v19, %v1002_v59  ;;  %v1387_v53 = vadd.f32 %v1242_v19, %v1003_v56  ;;  %v1227_v5 = vpop.permute.xlu1 %1226  ;;  %v580_v56 = vmul.f32 %v4410_v46, %v4345_v62  ;;  %v896_v62 = vmul.f32 %v4412_v23, %v4477_v36 }
 0x154   : > { %v1380_v51 = vadd.f32 %v1227_v5, %v996_v44  ;;  %v1381_v39 = vadd.f32 %v1227_v5, %v997_v1  ;;  %v1352_v44 = vadd.f32 %v4493_v12, %v968_v54  ;;  %v898_v36 = vmul.f32 %v4412_v23, %v4543_v32  ;;  %v1082_v5 = vld [vmem:[%s6438_s2 + $0x170] sm:$0xff] }
 0x155   : > { %v1482_v4 = vmax.f32 %v1386_v57, 0.0  ;;  %v1483_v49 = vmax.f32 %v1387_v53, 0.0  ;;  %v970_v33 = vadd.f32 %v874_v6, %v580_v56  ;;  %v1478_v53 = vmax.f32 %v1382_v22, 0.0 }
 0x156   : > { %v1477_v21 = vmax.f32 %v1381_v39, 0.0  ;;  %v4595_v37 = vpop.permute.xlu2 %739  ;;  %v1476_v19 = vmax.f32 %v1380_v51, 0.0  ;;  %v1448_v15 = vmax.f32 %v1352_v44, 0.0  ;;  %v870_v32 = vmul.f32 %v4412_v23, %v4522_v42 }
 0x157   : > { %v1642_v59 = vpack.c.bf16 %v1482_v4, %v1480_v58  ;;  %v4599_v31 = vpack.c.bf16 %v1483_v49, %v1481_v8  ;;  %v994_v1 = vadd.f32 %v898_v36, %v604_v63  ;;  %v577_v6 = vmul.f32 %v4406_v45, %v4208_v60  ;;  %v6605_v36 = vld [vmem:[#allocation16_spill] sm:$0xff] }
 0x158   : > { %v4602_v10 = vpack.c.bf16 %v1479_v29, %v1477_v21  ;;  %v966_v8 = vadd.f32 %v870_v32, %v576_v43  ;;  %v1473_v49 = vmax.f32 %v4567_v35, 0.0  ;;  %v893_v44 = vmul.f32 %v4408_v9, %v4229_v7  ;;  %v1662_v35 = vld [vmem:[%s6440_s4 + $0x10] sm:$0xff] }
 0x159   : > { %3772 = vset.pattern.permute.xlu2 %v6584_v11  ;;  %3771 = vset.pattern.permute.xlu1 %v6584_v11 }
 0x15a   : > { %775 = vperm.xlu0 %3778, %v4094_v27   ;;  %2461 = vmatpush.bf16.msra.mxu1 %v1642_v59  ;;  %v1162_v57 = vpop.permute.xlu0 %1161  ;;  %v1640_v27 = vpack.c.bf16 %v1478_v53, %v1476_v19 }
 0x15b   : > { %3678 = vmatpush.bf16.msra.mxu3 %v1642_v59  ;;  %835 = vperm.xlu2 %3772, %v4169_v47   ;;  %v1354_v12 = vadd.f32 %v1162_v57, %v970_v33  ;;  %v1355_v16 = vadd.f32 %v1162_v57, %v4434_v25  ;;  %v868_v47 = vmul.f32 %v4412_v23, %v4469_v13 }
 0x15c   : > { %831 = vperm.xlu1 %3771, %v4174_v48   ;;  %v4614_v38 = vpop.permute.xlu1 %747  ;;  %v992_v25 = vadd.f32 %v896_v62, %v602_v52  ;;  %v871_v13 = vmul.f32 %v4408_v9, %v4522_v42 }
 0x15d   : > { %v1450_v41 = vmax.f32 %v1354_v12, 0.0  ;;  %v1451_v14 = vmax.f32 %v1355_v16, 0.0  ;;  %v964_v42 = vadd.f32 %v868_v47, %v574_v50  ;;  %v1083_v16 = vld [vmem:[%s6438_s2 + $0x178] sm:$0xff] }
 0x15e   : > { %2462 = vmatpush.bf16.msra.mxu1 %v1640_v27  ;;  %v1376_v61 = vadd.f32 %v4557_v40, %v992_v25  ;;  %v599_v40 = vmul.f32 %v4406_v45, %v4394_v30  ;;  %v967_v60 = vadd.f32 %v871_v13, %v577_v6  ;;  %v1665_v25 = vld [vmem:[%s6440_s4 + $0x28] sm:$0xff] }
 0x15f   : > { %3679 = vmatpush.bf16.msra.mxu3 %v1640_v27  ;;  %v4623_v48 = vpop.permute.xlu2 %1141  ;;  %v1626_v20 = vpack.c.bf16 %v1450_v41, %v1448_v15  ;;  %v4625_v3 = vpack.c.bf16 %v1451_v14, %v1449_v26  ;;  %v1348_v58 = vadd.f32 %v4526_v0, %v964_v42  ;;  %v859_v27 = vmul.f32 %v4408_v9, %v4356_v2  ;;  %v6606_v14 = vld [vmem:[#allocation20_spill] sm:$0xff]  ;;  %v1080_v42 = vld [vmem:[%s6438_s2 + $0x160] sm:$0xff] }
 0x160   : > { %v1472_v4 = vmax.f32 %v1376_v61, 0.0  ;;  %v989_v62 = vadd.f32 %v893_v44, %v599_v40  ;;  %v565_v41 = vmul.f32 %v4406_v45, %v6605_v36  ;;  %v866_v47 = vmul.f32 %v4412_v23, %v6606_v14 }
 0x161   : > { %2332 = vmatpush.bf16.msra.mxu0 %v1626_v20  ;;  %3670 = vmatpush.bf16.msra.mxu2 %v1626_v20  ;;  %v1444_v0 = vmax.f32 %v1348_v58, 0.0  ;;  %v867_v63 = vmul.f32 %v4408_v9, %v6606_v14  ;;  %v6607_v20 = vld [vmem:[#allocation10_spill] sm:$0xff]  ;;  %v598_v44 = vmul.f32 %v4410_v46, %v4394_v30  ;;  %v895_v30 = vmul.f32 %v4408_v9, %v4614_v38 }
 0x162   : > { %3787 = vset.pattern.permute.xlu0 %v6587_v24  ;;  %v1222_v54 = vpop.permute.xlu0 %1221  ;;  %v955_v32 = vadd.f32 %v859_v27, %v565_v41  ;;  %v573_v13 = vmul.f32 %v4406_v45, %v6607_v20 }
 0x163   : > { %3773 = vset.pattern.permute.xlu2 %v6587_v24  ;;  %1261 = vperm.xlu0 %3787, %v1071_v55   ;;  %v1378_v51 = vadd.f32 %v1222_v54, %v994_v1  ;;  %v1379_v39 = vadd.f32 %v1222_v54, %v4559_v18  ;;  %v6608_v55 = vld [vmem:[#allocation45_spill] sm:$0xff] }
 0x164   : > { %827 = vperm.xlu1 %3771, %v4279_v34   ;;  %1316 = vperm.xlu2 %3773, %v1082_v5   ;;  %v1445_v34 = vmax.f32 %v4529_v17, 0.0  ;;  %v864_v61 = vmul.f32 %v4412_v23, %v6608_v55  ;;  %v865_v1 = vmul.f32 %v4408_v9, %v6608_v55  ;;  %v6609_v5 = vld [vmem:[#allocation52_spill] sm:$0xff] }
 0x165   : > { %v1474_v22 = vmax.f32 %v1378_v51, 0.0  ;;  %v1475_v29 = vmax.f32 %v1379_v39, 0.0  ;;  %v1152_v21 = vpop.permute.xlu1 %1151  ;;  %v1081_v51 = vld [vmem:[%s6438_s2 + $0x168] sm:$0xff]  ;;  %v6610_v39 = vld [vmem:[#allocation19_spill] sm:$0xff] }
 0x166   : > { %v1350_v56 = vadd.f32 %v1152_v21, %v966_v8  ;;  %v1351_v59 = vadd.f32 %v1152_v21, %v967_v60  ;;  %v570_v58 = vmul.f32 %v4410_v46, %v6610_v39  ;;  %v571_v8 = vmul.f32 %v4406_v45, %v6610_v39 }
 0x167   : > { %v1638_v19 = vpack.c.bf16 %v1474_v22, %v1472_v4  ;;  %v4654_v18 = vpack.c.bf16 %v1475_v29, %v1473_v49  ;;  %v891_v60 = vmul.f32 %v4408_v9, %v4595_v37  ;;  %v963_v4 = vadd.f32 %v867_v63, %v573_v13  ;;  %v6611_v22 = vld [vmem:[#allocation21_spill] sm:$0xff] }
 0x168   : > { %v1446_v33 = vmax.f32 %v1350_v56, 0.0  ;;  %v1447_v53 = vmax.f32 %v1351_v59, 0.0  ;;  %v4657_v57 = vpop.permute.xlu2 %727  ;;  %v597_v29 = vmul.f32 %v4406_v45, %v6611_v22  ;;  %v960_v56 = vadd.f32 %v864_v61, %v570_v58 }
 0x169   : > { %2463 = vmatpush.bf16.msra.mxu1 %v1638_v19  ;;  %3680 = vmatpush.bf16.msra.mxu3 %v1638_v19  ;;  %v1347_v21 = vadd.f32 %v4623_v48, %v963_v4  ;;  %v961_v59 = vadd.f32 %v865_v1, %v571_v8  ;;  %v6615_v8 = vld [vmem:[#allocation17_spill] sm:$0xff] }
 0x16a   : > { %v4662_v12 = vpop.permute.xlu0 %1206  ;;  %v1624_v52 = vpack.c.bf16 %v1446_v33, %v1444_v0  ;;  %v4667_v15 = vpack.c.bf16 %v1447_v53, %v1445_v34  ;;  %v892_v0 = vmul.f32 %v4412_v23, %v4229_v7  ;;  %v987_v53 = vadd.f32 %v891_v60, %v597_v29 }
 0x16b   : > { %v4670_v17 = vadd.f32 %v4662_v12, %v989_v62  ;;  %1720 = vperm.xlu0 %3787, %v1662_v35   ;;  %v1668_v35 = vld [vmem:[%s6440_s4 + $0x40] sm:$0xff]  ;;  %v894_v62 = vmul.f32 %v4412_v23, %v4614_v38  ;;  %v1443_v7 = vmax.f32 %v1347_v21, 0.0  ;;  %v860_v60 = vmul.f32 %v4412_v23, %v6615_v8 }
 0x16c   : > { %3774 = vset.pattern.permute.xlu1 %v6587_v24  ;;  %3775 = vset.pattern.permute.xlu2 %v6584_v11  ;;  %v988_v63 = vadd.f32 %v892_v0, %v598_v44  ;;  %v861_v4 = vmul.f32 %v4408_v9, %v6615_v8 }
 0x16d   : > { %1321 = vperm.xlu1 %3774, %v1083_v16   ;;  %815 = vperm.xlu2 %3775, %v4264_v28   ;;  %v572_v28 = vmul.f32 %v4410_v46, %v6607_v20 }
 0x16e   : > { %2333 = vmatpush.bf16.msra.mxu0 %v1624_v52  ;;  %3671 = vmatpush.bf16.msra.mxu2 %v1624_v52  ;;  %v4677_v26 = vpop.permute.xlu1 %735  ;;  %v1372_v13 = vadd.f32 %v4662_v12, %v988_v63  ;;  %v1671_v12 = vld [vmem:[%s6440_s4 + $0x58] sm:$0xff]  ;;  %v6620_v63 = vld [vmem:[#allocation26_spill] sm:$0xff] }
 0x16f   : > { %v962_v54 = vadd.f32 %v866_v47, %v572_v28  ;;  %v564_v47 = vmul.f32 %v4410_v46, %v6605_v36  ;;  %v6613_v36 = vld [vmem:[#allocation8_spill] sm:$0xff] }
 0x171   : > { %v4690_v50 = vpop.permute.xlu2 %1131  ;;  %v1346_v49 = vadd.f32 %v4623_v48, %v962_v54  ;;  %v858_v48 = vmul.f32 %v4412_v23, %v4356_v2  ;;  %v1078_v2 = vld [vmem:[%s6438_s2 + $0x150] sm:$0xff]  ;;  %v6614_v54 = vld [vmem:[#allocation9_spill] sm:$0xff] }
 0x172   : > { %v4700_v43 = vadd.f32 %v4690_v50, %v6609_v5  ;;  %v1122_v6 = vpop.permute.xlu0 %1121 }
 0x173   : > { %v4705_v40 = vadd.f32 %v1122_v6, %v955_v32  ;;  %1735 = vperm.xlu0 %3787, %v1665_v25   ;;  %v1442_v16 = vmax.f32 %v1346_v49, 0.0  ;;  %v6612_v25 = vld [vmem:[#allocation29_spill] sm:$0xff]  ;;  %v954_v55 = vadd.f32 %v858_v48, %v564_v47  ;;  %v1468_v49 = vmax.f32 %v1372_v13, 0.0 }
 0x174   : > { %v600_v38 = vmul.f32 %v4410_v46, %v6612_v25  ;;  %v601_v20 = vmul.f32 %v4406_v45, %v6612_v25  ;;  %v6621_v25 = vld [vmem:[#allocation6_spill] sm:$0xff]  ;;  %v890_v13 = vmul.f32 %v4412_v23, %v4595_v37 }
 0x175   : > { %1306 = vperm.xlu1 %3774, %v1080_v42   ;;  %3776 = vset.pattern.permute.xlu2 %v6587_v24  ;;  %v1338_v5 = vadd.f32 %v1122_v6, %v954_v55  ;;  %v1469_v6 = vmax.f32 %v4670_v17, 0.0  ;;  %v1435_v48 = vmax.f32 %v4705_v40, 0.0 }
 0x176   : > { %1311 = vperm.xlu2 %3776, %v1081_v51   ;;  %v990_v61 = vadd.f32 %v894_v62, %v600_v38  ;;  %v991_v1 = vadd.f32 %v895_v30, %v601_v20  ;;  %v566_v51 = vmul.f32 %v4410_v46, %v6614_v54  ;;  %v6622_v20 = vld [vmem:[#allocation27_spill] sm:$0xff] }
 0x177   : > { %v1137_v19 = vpop.permute.xlu1 %1136 }
 0x178   : > { %v1344_v34 = vadd.f32 %v1137_v19, %v960_v56  ;;  %v1345_v33 = vadd.f32 %v1137_v19, %v961_v59  ;;  %v6616_v59 = vld [vmem:[#allocation49_spill] sm:$0xff]  ;;  %v6617_v19 = vld [vmem:[#allocation50_spill] sm:$0xff] }
 0x179   : > { %v4734_v52 = vpop.permute.xlu2 %1201 }
 0x17a   : > { %v1440_v27 = vmax.f32 %v1344_v34, 0.0  ;;  %v1441_v41 = vmax.f32 %v1345_v33, 0.0  ;;  %v4737_v14 = vadd.f32 %v4734_v52, %v987_v53  ;;  %v567_v34 = vmul.f32 %v4406_v45, %v6614_v54  ;;  %v6618_v33 = vld [vmem:[#allocation47_spill] sm:$0xff] }
 0x17b   : > { %1750 = vperm.xlu0 %3787, %v1668_v35   ;;  %v593_v53 = vmul.f32 %v4406_v45, %v6618_v33  ;;  %v1434_v35 = vmax.f32 %v1338_v5, 0.0  ;;  %v888_v5 = vmul.f32 %v4412_v23, %v4677_v26 }
 0x17c   : > { %v1622_v28 = vpack.c.bf16 %v1442_v16, %v1440_v27  ;;  %v4748_v32 = vpack.c.bf16 %v1443_v7, %v1441_v41  ;;  %v6619_v7 = vld [vmem:[#allocation51_spill] sm:$0xff]  ;;  %v956_v41 = vadd.f32 %v860_v60, %v566_v51  ;;  %v957_v47 = vadd.f32 %v861_v4, %v567_v34  ;;  %v4792_v51 = vpop.permute.xlu0 %1106  ;;  %v6623_v60 = vld [vmem:[#allocation25_spill] sm:$0xff]  ;;  %v1677_v34 = vld [vmem:[%s6440_s4 + $0x88] sm:$0xff] }
 0x17d   : > { %3777 = vset.pattern.permute.xlu1 %v6584_v11  ;;  %v1342_v27 = vadd.f32 %v4690_v50, %v6619_v7  ;;  %v595_v4 = vmul.f32 %v4406_v45, %v6623_v60 }
 0x17e   : > { %811 = vperm.xlu1 %3777, %v6613_v36   ;;  %1296 = vperm.xlu2 %3776, %v1078_v2   ;;  %v887_v2 = vmul.f32 %v4408_v9, %v6620_v63 }
 0x17f   : > { %2334 = vmatpush.bf16.msra.mxu0 %v1622_v28  ;;  %3672 = vmatpush.bf16.msra.mxu2 %v1622_v28  ;;  %v1212_v42 = vpop.permute.xlu1 %1211  ;;  %v1438_v54 = vmax.f32 %v1342_v27, 0.0  ;;  %v1074_v27 = vld [vmem:[%s6438_s2 + $0x130] sm:$0xff] }
 0x180   : > { %v1374_v39 = vadd.f32 %v1212_v42, %v990_v61  ;;  %v1375_v58 = vadd.f32 %v1212_v42, %v991_v1  ;;  %v983_v36 = vadd.f32 %v887_v2, %v593_v53  ;;  %v1674_v61 = vld [vmem:[%s6440_s4 + $0x70] sm:$0xff]  ;;  %v596_v1 = vmul.f32 %v4410_v46, %v6611_v22 }
 0x181   : > { %v1117_v29 = vpop.permute.xlu2 %1116  ;;  %v889_v42 = vmul.f32 %v4408_v9, %v4677_v26  ;;  %v594_v22 = vmul.f32 %v4410_v46, %v6623_v60  ;;  %v592_v2 = vmul.f32 %v4410_v46, %v6618_v33  ;;  %v885_v33 = vmul.f32 %v4408_v9, %v4657_v57 }
 0x182   : > { %v1470_v21 = vmax.f32 %v1374_v39, 0.0  ;;  %v1471_v56 = vmax.f32 %v1375_v58, 0.0  ;;  %v1336_v44 = vadd.f32 %v1117_v29, %v6616_v59  ;;  %v1337_v0 = vadd.f32 %v1117_v29, %v6617_v19 }
 0x183   : > { %1765 = vperm.xlu0 %3787, %v1671_v12   ;;  %v1439_v39 = vmax.f32 %v4700_v43, 0.0  ;;  %v986_v26 = vadd.f32 %v890_v13, %v596_v1  ;;  %v1077_v43 = vld [vmem:[%s6438_s2 + $0x148] sm:$0xff]  ;;  %v985_v59 = vadd.f32 %v889_v42, %v595_v4  ;;  %v6625_v13 = vld [vmem:[#allocation23_spill] sm:$0xff] }
 0x184   : > { %v1432_v62 = vmax.f32 %v1336_v44, 0.0  ;;  %v1433_v30 = vmax.f32 %v1337_v0, 0.0  ;;  %v1636_v17 = vpack.c.bf16 %v1470_v21, %v1468_v49  ;;  %v4770_v16 = vpack.c.bf16 %v1471_v56, %v1469_v6  ;;  %v1076_v49 = vld [vmem:[%s6438_s2 + $0x140] sm:$0xff]  ;;  %v6627_v42 = vld [vmem:[#allocation18_spill] sm:$0xff] }
 0x185   : > { %v1370_v21 = vadd.f32 %v4734_v52, %v986_v26  ;;  %v984_v56 = vadd.f32 %v888_v5, %v594_v22  ;;  %v1467_v52 = vmax.f32 %v4737_v14, 0.0  ;;  %v3789_v14 = vld [vmem:[%s6437_s1 + $0x128] sm:$0xff]  ;;  %v1683_v26 = vld [vmem:[%s6440_s4 + $0xb8] sm:$0xff] }
 0x186   : > { %799 = vperm.xlu1 %3777, %v6621_v25   ;;  %3779 = vset.pattern.permute.xlu2 %v6584_v11  ;;  %v1618_v38 = vpack.c.bf16 %v1434_v35, %v1432_v62  ;;  %v4778_v40 = vpack.c.bf16 %v1435_v48, %v1433_v30  ;;  %v4821_v30 = vpop.permute.xlu0 %1181 }
 0x187   : > { %803 = vperm.xlu2 %3779, %v6622_v20   ;;  %2464 = vmatpush.bf16.msra.mxu1 %v1636_v17  ;;  %v1127_v28 = vpop.permute.xlu1 %1126  ;;  %v1466_v53 = vmax.f32 %v1370_v21, 0.0 }
 0x188   : > { %3681 = vmatpush.bf16.msra.mxu3 %v1636_v17  ;;  %v1340_v50 = vadd.f32 %v1127_v28, %v956_v41  ;;  %v1341_v55 = vadd.f32 %v1127_v28, %v957_v47  ;;  %v1680_v47 = vld [vmem:[%s6440_s4 + $0xa0] sm:$0xff] }
 0x189   : > { %v4794_v37 = vpop.permute.xlu2 %1191 }
 0x18a   : > { %v1436_v58 = vmax.f32 %v1340_v50, 0.0  ;;  %v1437_v12 = vmax.f32 %v1341_v55, 0.0  ;;  %v4798_v8 = vadd.f32 %v4794_v37, %v983_v36  ;;  %v588_v50 = vmul.f32 %v4410_v46, %v6625_v13 }
 0x18b   : > { %1780 = vperm.xlu0 %3787, %v1674_v61   ;;  %v886_v55 = vmul.f32 %v4412_v23, %v6620_v63  ;;  %v884_v36 = vmul.f32 %v4412_v23, %v4657_v57  ;;  %v6626_v61 = vld [vmem:[#allocation30_spill] sm:$0xff]  ;;  %v1075_v63 = vld [vmem:[%s6438_s2 + $0x138] sm:$0xff] }
 0x18c   : > { %v1620_v6 = vpack.c.bf16 %v1438_v54, %v1436_v58  ;;  %v4807_v29 = vpack.c.bf16 %v1439_v39, %v1437_v12  ;;  %v880_v1 = vmul.f32 %v4412_v23, %v6626_v61  ;;  %v590_v54 = vmul.f32 %v4410_v46, %v6627_v42 }
 0x18d   : > { %v591_v39 = vmul.f32 %v4406_v45, %v6627_v42  ;;  %v982_v58 = vadd.f32 %v886_v55, %v592_v2  ;;  %v1073_v42 = vld [vmem:[%s6438_s2 + $0x128] sm:$0xff] }
 0x18e   : > { %3780 = vset.pattern.permute.xlu1 %v6587_v24  ;;  %2335 = vmatpush.bf16.msra.mxu0 %v1620_v6  ;;  %v4855_v5 = vpop.permute.xlu0 %1166  ;;  %v980_v22 = vadd.f32 %v884_v36, %v590_v54  ;;  %v6631_v36 = vld [vmem:[#allocation12_spill] sm:$0xff] }
 0x18f   : > { %1286 = vperm.xlu1 %3780, %v1076_v49   ;;  %3781 = vset.pattern.permute.xlu2 %v6587_v24  ;;  %v1197_v44 = vpop.permute.xlu1 %1196  ;;  %v1366_v57 = vadd.f32 %v4794_v37, %v982_v58  ;;  %v981_v4 = vadd.f32 %v885_v33, %v591_v39  ;;  %v3790_v49 = vld [vmem:[%s6437_s1 + $0x110] sm:$0xff]  ;;  %v844_v33 = vmul.f32 %v4412_v23, %v6631_v36 }
 0x190   : > { %3673 = vmatpush.bf16.msra.mxu2 %v1620_v6  ;;  %1291 = vperm.xlu2 %3781, %v1077_v43   ;;  %v1368_v19 = vadd.f32 %v1197_v44, %v984_v56  ;;  %v1369_v0 = vadd.f32 %v1197_v44, %v985_v59  ;;  %v6628_v59 = vld [vmem:[#allocation46_spill] sm:$0xff]  ;;  %v845_v54 = vmul.f32 %v4408_v9, %v6631_v36 }
 0x191   : > { %v846_v44 = vmul.f32 %v4412_v23, %v6628_v59 }
 0x192   : > { %v1464_v35 = vmax.f32 %v1368_v19, 0.0  ;;  %v1465_v48 = vmax.f32 %v1369_v0, 0.0  ;;  %v4819_v62 = vpop.permute.xlu2 %715  ;;  %2336 = vmatpush.bf16.msra.mxu0 %v1618_v38  ;;  %v847_v19 = vmul.f32 %v4408_v9, %v6628_v59 }
 0x193   : > { %1795 = vperm.xlu0 %3787, %v1677_v34   ;;  %v1462_v34 = vmax.f32 %v1366_v57, 0.0 }
 0x194   : > { %3674 = vmatpush.bf16.msra.mxu2 %v1618_v38  ;;  %v1634_v17 = vpack.c.bf16 %v1466_v53, %v1464_v35  ;;  %v4823_v7 = vpack.c.bf16 %v1467_v52, %v1465_v48  ;;  %v6624_v38 = vld [vmem:[#allocation44_spill] sm:$0xff]  ;;  %v1463_v53 = vmax.f32 %v4798_v8, 0.0 }
 0x195   : > { %v586_v20 = vmul.f32 %v4410_v46, %v6624_v38  ;;  %v6629_v48 = vld [vmem:[#allocation32_spill] sm:$0xff] }
 0x196   : > { %2465 = vmatpush.bf16.msra.mxu1 %v1634_v17  ;;  %3682 = vmatpush.bf16.msra.mxu3 %v1634_v17  ;;  %v550_v17 = vmul.f32 %v4410_v46, %v6629_v48 }
 0x197   : > { %3782 = vset.pattern.permute.xlu1 %v6584_v11  ;;  %v976_v60 = vadd.f32 %v880_v1, %v586_v20  ;;  %v1072_v20 = vld [vmem:[%s6438_s2 + $0x120] sm:$0xff]  ;;  %v1092_v1 = vpop.permute.xlu0 %1091 }
 0x198   : > { %795 = vperm.xlu1 %3782, %v3789_v14   ;;  %1276 = vperm.xlu2 %3781, %v1074_v27   ;;  %v4832_v41 = vpop.permute.xlu1 %723  ;;  %v551_v27 = vmul.f32 %v4406_v45, %v6629_v48  ;;  %v6630_v14 = vld [vmem:[#allocation34_spill] sm:$0xff]  ;;  %v1070_v48 = vld [vmem:[%s6438_s2 + $0x110] sm:$0xff] }
 0x199   : > { %v882_v25 = vmul.f32 %v4412_v23, %v4832_v41  ;;  %v553_v2 = vmul.f32 %v4406_v45, %v6630_v14 }
 0x19b   : > { %v4843_v28 = vpop.permute.xlu2 %1176  ;;  %1810 = vperm.xlu0 %3787, %v1680_v47   ;;  %v978_v12 = vadd.f32 %v882_v25, %v588_v50  ;;  %v552_v47 = vmul.f32 %v4410_v46, %v6630_v14  ;;  %v943_v58 = vadd.f32 %v847_v19, %v553_v2  ;;  %v1689_v2 = vld [vmem:[%s6440_s4 + $0xe8] sm:$0xff] }
 0x19c   : > { %v1360_v43 = vadd.f32 %v4843_v28, %v976_v60 }
 0x19d   : > { %v1362_v56 = vadd.f32 %v4821_v30, %v978_v12  ;;  %v942_v39 = vadd.f32 %v846_v44, %v552_v47  ;;  %v1686_v12 = vld [vmem:[%s6440_s4 + $0xd0] sm:$0xff]  ;;  %v1327_v57 = vadd.f32 %v1092_v1, %v943_v58  ;;  %v6634_v44 = vld [vmem:[#allocation14_spill] sm:$0xff] }
 0x19e   : > { %v1456_v25 = vmax.f32 %v1360_v43, 0.0  ;;  %v854_v19 = vmul.f32 %v4412_v23, %v6634_v44 }
 0x19f   : > { %v1458_v50 = vmax.f32 %v1362_v56, 0.0  ;;  %v1326_v60 = vadd.f32 %v1092_v1, %v942_v39  ;;  %v6633_v56 = vld [vmem:[#allocation5_spill] sm:$0xff]  ;;  %v6638_v39 = vld [vmem:[#allocation40_spill] sm:$0xff] }
 0x1a0   : > { %3783 = vset.pattern.permute.xlu1 %v6587_v24  ;;  %3784 = vset.pattern.permute.xlu2 %v6584_v11  ;;  %v558_v59 = vmul.f32 %v4410_v46, %v6633_v56  ;;  %v848_v58 = vmul.f32 %v4412_v23, %v6638_v39 }
 0x1a1   : > { %1281 = vperm.xlu1 %3783, %v1075_v63   ;;  %783 = vperm.xlu2 %3784, %v3790_v49   ;;  %v1187_v6 = vpop.permute.xlu1 %1186  ;;  %v940_v63 = vadd.f32 %v844_v33, %v550_v17  ;;  %v6635_v17 = vld [vmem:[#allocation7_spill] sm:$0xff]  ;;  %v6636_v33 = vld [vmem:[#allocation48_spill] sm:$0xff] }
 0x1a2   : > { %v1364_v37 = vadd.f32 %v1187_v6, %v980_v22  ;;  %v1365_v21 = vadd.f32 %v1187_v6, %v981_v4  ;;  %v941_v4 = vadd.f32 %v845_v54, %v551_v27  ;;  %v6632_v6 = vld [vmem:[#allocation42_spill] sm:$0xff]  ;;  %v560_v27 = vmul.f32 %v4410_v46, %v6635_v17  ;;  %v6637_v54 = vld [vmem:[#allocation13_spill] sm:$0xff] }
 0x1a3   : > { %v4879_v0 = vpop.permute.xlu2 %1101  ;;  %1825 = vperm.xlu0 %3787, %v1683_v26   ;;  %v1630_v26 = vpack.c.bf16 %v1458_v50, %v1456_v25  ;;  %v852_v43 = vmul.f32 %v4412_v23, %v6632_v6  ;;  %v850_v1 = vmul.f32 %v4412_v23, %v6636_v33 }
 0x1a4   : > { %v1460_v52 = vmax.f32 %v1364_v37, 0.0  ;;  %v1461_v35 = vmax.f32 %v1365_v21, 0.0  ;;  %v950_v50 = vadd.f32 %v854_v19, %v560_v27  ;;  %v878_v27 = vmul.f32 %v4412_v23, %v4819_v62 }
 0x1a5   : > { %v948_v14 = vadd.f32 %v852_v43, %v558_v59  ;;  %v1068_v43 = vld [vmem:[%s6438_s2 + $0x100] sm:$0xff] }
 0x1a6   : > { %v1632_v8 = vpack.c.bf16 %v1462_v34, %v1460_v52  ;;  %v4893_v55 = vpack.c.bf16 %v1463_v53, %v1461_v35  ;;  %v1422_v34 = vmax.f32 %v1326_v60, 0.0  ;;  %v1423_v53 = vmax.f32 %v1327_v57, 0.0  ;;  %v1069_v57 = vld [vmem:[%s6438_s2 + $0x108] sm:$0xff] }
 0x1a8   : > { %2466 = vmatpush.bf16.msra.mxu1 %v1632_v8  ;;  %3683 = vmatpush.bf16.msra.mxu3 %v1632_v8  ;;  %v3791_v8 = vld [vmem:[%s6437_s1 + $0x108] sm:$0xff] }
 0x1a9   : > { %1266 = vperm.xlu1 %3783, %v1072_v20   ;;  %3785 = vset.pattern.permute.xlu2 %v6587_v24  ;;  %v1332_v20 = vadd.f32 %v4792_v51, %v948_v14 }
 0x1aa   : > { %1271 = vperm.xlu2 %3785, %v1073_v42   ;;  %v4906_v22 = vpop.permute.xlu1 %711 }
 0x1ab   : > { %v1087_v49 = vpop.permute.xlu2 %1086  ;;  %1840 = vperm.xlu0 %3787, %v1686_v12   ;;  %v1428_v12 = vmax.f32 %v1332_v20, 0.0  ;;  %v876_v19 = vmul.f32 %v4412_v23, %v4906_v22 }
 0x1ac   : > { %v1324_v37 = vadd.f32 %v1087_v49, %v940_v63  ;;  %v1325_v21 = vadd.f32 %v1087_v49, %v941_v4  ;;  %2467 = vmatpush.bf16.msra.mxu1 %v1630_v26  ;;  %3684 = vmatpush.bf16.msra.mxu3 %v1630_v26  ;;  %v6639_v4 = vld [vmem:[#allocation11_spill] sm:$0xff] }
 0x1ad   : > { %v554_v26 = vmul.f32 %v4410_v46, %v6639_v4 }
 0x1ae   : > { %v1420_v52 = vmax.f32 %v1324_v37, 0.0  ;;  %v1421_v35 = vmax.f32 %v1325_v21, 0.0  ;;  %v1692_v21 = vld [vmem:[%s6440_s4 + $0x100] sm:$0xff] }
 0x1b0   : > { %v4919_v47 = vpack.c.bf16 %v1422_v34, %v1420_v52  ;;  %v4924_v25 = vpack.c.bf16 %v1423_v53, %v1421_v35  ;;  %v944_v34 = vadd.f32 %v848_v58, %v554_v26  ;;  %v6640_v52 = vld [vmem:[#allocation22_spill] sm:$0xff] }
 0x1b1   : > { %3786 = vset.pattern.permute.xlu1 %v6584_v11  ;;  %v556_v11 = vmul.f32 %v4410_v46, %v6637_v54  ;;  %v582_v35 = vmul.f32 %v4410_v46, %v6640_v52  ;;  %v3599_v26 = vld [vmem:[%s6439_s3 + $0x8] sm:$0xf0] }
 0x1b2   : > { %779 = vperm.xlu1 %3786, %v3791_v8   ;;  %1256 = vperm.xlu2 %3785, %v1070_v48   ;;  %v1661_v8 = vld [vmem:[%s6440_s4 + $0x8] sm:$0xff] }
 0x1b3   : > { %v4931_v36 = vpop.permute.xlu1 %1111  ;;  %1855 = vperm.xlu0 %3787, %v1689_v2   ;;  %v946_v49 = vadd.f32 %v850_v1, %v556_v11  ;;  %v972_v2 = vadd.f32 %v876_v19, %v582_v35  ;;  %v1660_v11 = vld [vmem:[%s6440_s4] sm:$0xff] }
 0x1b4   : > { %v1334_v42 = vadd.f32 %v4931_v36, %v950_v50  ;;  %v6641_v50 = vld [vmem:[#allocation15_spill] sm:$0xff] }
 0x1b5   : > { %v4940_v60 = vpop.permute.xlu2 %835  ;;  %v1330_v59 = vadd.f32 %v4879_v0, %v946_v49  ;;  %v584_v1 = vmul.f32 %v4410_v46, %v6641_v50  ;;  %v1356_v49 = vadd.f32 %v4855_v5, %v972_v2  ;;  %v3598_v2 = vld [vmem:[%s6439_s3 + $0x4] sm:$0xf] }
 0x1b6   : > { %v1430_v63 = vmax.f32 %v1334_v42, 0.0  ;;  %v4971_v42 = vpop.permute.xlu0 %1301 }
 0x1b7   : > { %v1426_v14 = vmax.f32 %v1330_v59, 0.0 }
 0x1b8   : > { %v1616_v37 = vpack.c.bf16 %v1430_v63, %v1428_v12  ;;  %v1695_v12 = vld [vmem:[%s6440_s4 + $0x118] sm:$0xff]  ;;  %v974_v63 = vadd.f32 %v878_v27, %v584_v1 }
 0x1ba   : > { %3788 = vset.pattern.permute.xlu1 %v6587_v24  ;;  %1251 = vperm.xlu2 %3785, %v1069_v57   ;;  %v3308_v57 = vld [vmem:[%s6439_s3] sm:$0xf] }
 0x1bb   : > { %1246 = vperm.xlu1 %3788, %v1068_v43   ;;  %2337 = vmatpush.bf16.msra.mxu0 %v1616_v37  ;;  %v4957_v53 = vpop.permute.xlu1 %1096  ;;  %v4995_v19 = vor.u32 %v3599_v26, %v3308_v57  ;;  %v855_v57 = vmul.f32 %v4408_v9, %v6634_v44  ;;  %v883_v26 = vmul.f32 %v4408_v9, %v4832_v41 }
 0x1bc   : > { %3675 = vmatpush.bf16.msra.mxu2 %v1616_v37  ;;  %v1328_v48 = vadd.f32 %v4957_v53, %v944_v34  ;;  %1870 = vperm.xlu0 %3787, %v1692_v21   ;;  %v3452_v37 = vld [vmem:[%s6439_s3 + $0x120] sm:$0xf]  ;;  %v3635_v21 = vld [vmem:[%s6439_s3 + $0x128] sm:$0xf0]  ;;  %v559_v41 = vmul.f32 %v4406_v45, %v6633_v56  ;;  %v557_v44 = vmul.f32 %v4406_v45, %v6637_v54  ;;  %v6644_v54 = vld [vmem:[#allocation35_spill] sm:$0xff] }
 0x1bd   : > { %v4998_v35 = vor.u32 %v3635_v21, %v3452_v37  ;;  %v561_v37 = vmul.f32 %v4406_v45, %v6635_v17  ;;  %v589_v21 = vmul.f32 %v4406_v45, %v6625_v13  ;;  %v1667_v13 = vld [vmem:[%s6440_s4 + $0x38] sm:$0xff]  ;;  %v853_v56 = vmul.f32 %v4408_v9, %v6632_v6 }
 0x1be   : > { %v1424_v20 = vmax.f32 %v1328_v48, 0.0  ;;  %v4964_v24 = vpop.permute.xlu2 %1316  ;;  %v1452_v48 = vmax.f32 %v1356_v49, 0.0  ;;  %v587_v49 = vmul.f32 %v4406_v45, %v6624_v38  ;;  %v881_v38 = vmul.f32 %v4408_v9, %v6626_v61  ;;  %v1666_v61 = vld [vmem:[%s6440_s4 + $0x30] sm:$0xff] }
 0x1bf   : > { %6642 = vst [vmem:[#allocation16_spill] sm:$0xff] %v4998_v35  ;;  %v979_v17 = vadd.f32 %v883_v26, %v589_v21  ;;  %v949_v26 = vadd.f32 %v853_v56, %v559_v41 }
 0x1c0   : > { %v1614_v58 = vpack.c.bf16 %v1426_v14, %v1424_v20  ;;  %v1664_v14 = vld [vmem:[%s6440_s4 + $0x20] sm:$0xff]  ;;  %v3310_v20 = vld [vmem:[%s6439_s3 + $0xc] sm:$0xf0]  ;;  %v977_v6 = vadd.f32 %v881_v38, %v587_v49  ;;  %v3464_v49 = vld [vmem:[%s6439_s3 + $0x138] sm:$0xf] }
 0x1c1   : > { %v1363_v21 = vadd.f32 %v4821_v30, %v979_v17 }
 0x1c2   : > { %1715 = vperm.xlu2 %3785, %v1661_v8   ;;  %2338 = vmatpush.bf16.msra.mxu0 %v1614_v58  ;;  %v1663_v8 = vld [vmem:[%s6440_s4 + $0x18] sm:$0xff] }
 0x1c3   : > { %1710 = vperm.xlu1 %3788, %v1660_v11   ;;  %3676 = vmatpush.bf16.msra.mxu2 %v1614_v58  ;;  %v4986_v43 = vpop.permute.xlu1 %1171  ;;  %v5023_v11 = vpop.permute.xlu0 %823  ;;  %v5026_v58 = vor.u32 %v3598_v2, %v3310_v20  ;;  %v6645_v2 = vld [vmem:[#allocation37_spill] sm:$0xff] }
 0x1c4   : > { %v1358_v59 = vadd.f32 %v4986_v43, %v974_v63  ;;  %1885 = vperm.xlu0 %3787, %v1695_v12   ;;  %v1698_v12 = vld [vmem:[%s6440_s4 + $0x130] sm:$0xff]  ;;  %v5083_v20 = vmul.f32 %v4410_v46, %v6645_v2 }
 0x1c6   : > { %v1454_v34 = vmax.f32 %v1358_v59, 0.0  ;;  %2339 = vmatpush.bf16.msra.mxu0 %v4919_v47 }
 0x1c7   : > { %v5000_v27 = vpop.permute.xlu2 %815  ;;  %3677 = vmatpush.bf16.msra.mxu2 %v4919_v47  ;;  %v3454_v47 = vld [vmem:[%s6439_s3 + $0x12c] sm:$0xf0] }
 0x1c8   : > { %v1628_v1 = vpack.c.bf16 %v1454_v34, %v1452_v48  ;;  %v583_v48 = vmul.f32 %v4406_v45, %v6640_v52  ;;  %v879_v52 = vmul.f32 %v4408_v9, %v4819_v62  ;;  %v3320_v62 = vld [vmem:[%s6439_s3 + $0x18] sm:$0xf] }
 0x1c9   : > { %2340 = vmatmul.bf16.vlgmr.msra.gmra.mxu0 %v4995_v19 }
 0x1ca   : > { %2848 = vmatpush.bf16.msrb.mxu0 %v4599_v31  ;;  %v3634_v31 = vld [vmem:[%s6439_s3 + $0x124] sm:$0xf]  ;;  %1730 = vperm.xlu2 %3785, %v1664_v14   ;;  %v5074_v14 = vmul.f32 %v4410_v46, %v6644_v54 }
 0x1cb   : > { %2400 = vmatmul.bf16.vlgmr.msra.gmra.mxu2 %v4998_v35  ;;  %1725 = vperm.xlu1 %3788, %v1663_v8   ;;  %v5031_v63 = vor.u32 %v3634_v31, %v3454_v47  ;;  %v1701_v8 = vld [vmem:[%s6440_s4 + $0x148] sm:$0xff]  ;;  %v877_v31 = vmul.f32 %v4408_v9, %v4906_v22  ;;  %v5113_v22 = vpop.permute.xlu0 %819 }
 0x1cc   : > { %2468 = vmatpush.bf16.msra.mxu1 %v1628_v1  ;;  %3685 = vmatpush.bf16.msra.mxu3 %v1628_v1  ;;  %v1361_v1 = vadd.f32 %v4843_v28, %v977_v6 }
 0x1cd   : > { %6643 = vst [vmem:[#allocation20_spill] sm:$0xff] %v5031_v63  ;;  %1900 = vperm.xlu0 %3787, %v1698_v12   ;;  %v6646_v12 = vld [vmem:[#allocation41_spill] sm:$0xff]  ;;  %v973_v30 = vadd.f32 %v877_v31, %v583_v48  ;;  %v1459_v31 = vmax.f32 %v1363_v21, 0.0 }
 0x1ce   : > { %2849 = vmatpush.bf16.msrb.mxu0 %v4602_v10  ;;  %v832_v59 = vpop.permute.xlu1 %831  ;;  %v555_v10 = vmul.f32 %v4406_v45, %v6639_v4  ;;  %v951_v4 = vadd.f32 %v855_v57, %v561_v37  ;;  %v5107_v57 = vmul.f32 %v4410_v46, %v6646_v12  ;;  %v5111_v28 = vmul.f32 %v4406_v45, %v6646_v12  ;;  %v3638_v37 = vld [vmem:[%s6439_s3 + $0x140] sm:$0xf0] }
 0x1cf   : > { %2469 = vmatmul.bf16.vlgmr.msra.gmra.mxu1 %v5026_v58  ;;  %2529 = vmatmul.bf16.vlgmr.msra.gmra.mxu3 %v5031_v63  ;;  %v937_v41 = vmul.f32 %v4408_v9, %v832_v59  ;;  %v1457_v6 = vmax.f32 %v1361_v1, 0.0  ;;  %v3466_v1 = vld [vmem:[%s6439_s3 + $0x144] sm:$0xf0]  ;;  %v938_v12 = vmul.f32 %v4412_v23, %v4940_v60  ;;  %v1357_v21 = vadd.f32 %v4855_v5, %v973_v30 }
 0x1d0   : > { %2719 = vmatpush.bf16.msrb.mxu3 %v4625_v3  ;;  %v849_v3 = vmul.f32 %v4408_v9, %v6638_v39  ;;  %v5062_v34 = vpop.permute.xlu2 %1311  ;;  %v585_v39 = vmul.f32 %v4406_v45, %v6641_v50  ;;  %v851_v50 = vmul.f32 %v4408_v9, %v6636_v33  ;;  %v3602_v33 = vld [vmem:[%s6439_s3 + $0x20] sm:$0xf0]  ;;  %v1335_v17 = vadd.f32 %v4931_v36, %v951_v4 }
 0x1d1   : > { %v1333_v4 = vadd.f32 %v4792_v51, %v949_v26  ;;  %v939_v26 = vmul.f32 %v4408_v9, %v4940_v60 }
 0x1d2   : > { %2850 = vmatpush.bf16.msrb.mxu0 %v4654_v18  ;;  %v5079_v18 = vmul.f32 %v4406_v45, %v6644_v54  ;;  %1745 = vperm.xlu2 %3785, %v1667_v13   ;;  %v945_v47 = vadd.f32 %v849_v3, %v555_v10  ;;  %v6647_v10 = vld [vmem:[#allocation43_spill] sm:$0xff]  ;;  %v936_v3 = vmul.f32 %v4412_v23, %v832_v59 }
 0x1d3   : > { %1740 = vperm.xlu1 %3788, %v1666_v61   ;;  %v642_v38 = vmul.f32 %v4410_v46, %v6647_v10  ;;  %v947_v13 = vadd.f32 %v851_v50, %v557_v44  ;;  %v975_v56 = vadd.f32 %v879_v52, %v585_v39  ;;  %v5130_v54 = vor.u32 %v3602_v33, %v3320_v62  ;;  %v3322_v44 = vld [vmem:[%s6439_s3 + $0x24] sm:$0xf0]  ;;  %v6649_v39 = vld [vmem:[#allocation57_spill] sm:$0xff]  ;;  %v5190_v5 = vpop.permute.xlu0 %807 }
 0x1d4   : > { %2720 = vmatpush.bf16.msrb.mxu3 %v4667_v15  ;;  %v5094_v15 = vmul.f32 %v4406_v45, %v6645_v2  ;;  %v1670_v2 = vld [vmem:[%s6440_s4 + $0x50] sm:$0xff]  ;;  %v5136_v59 = vor.u32 %v3638_v37, %v3464_v49  ;;  %v640_v50 = vmul.f32 %v4410_v46, %v6649_v39  ;;  %v641_v36 = vmul.f32 %v4406_v45, %v6649_v39  ;;  %v1669_v52 = vld [vmem:[%s6440_s4 + $0x48] sm:$0xff] }
 0x1d5   : > { %1915 = vperm.xlu0 %3787, %v1701_v8   ;;  %v3637_v8 = vld [vmem:[%s6439_s3 + $0x13c] sm:$0xf]  ;;  %v5162_v62 = vadd.f32 %v4879_v0, %v947_v13  ;;  %v1359_v51 = vadd.f32 %v4986_v43, %v975_v56  ;;  %v1032_v33 = vadd.f32 %v936_v3, %v642_v38  ;;  %v1704_v0 = vld [vmem:[%s6440_s4 + $0x160] sm:$0xff]  ;;  %v1431_v43 = vmax.f32 %v1335_v17, 0.0  ;;  %v1673_v17 = vld [vmem:[%s6440_s4 + $0x68] sm:$0xff] }
 0x1d6   : > { %2851 = vmatpush.bf16.msrb.mxu0 %v4770_v16  ;;  %v643_v16 = vmul.f32 %v4406_v45, %v6647_v10  ;;  %v828_v61 = vpop.permute.xlu1 %827  ;;  %6648 = vst [vmem:[#allocation10_spill] sm:$0xff] %v5136_v59  ;;  %v1329_v37 = vadd.f32 %v4957_v53, %v945_v47  ;;  %v1429_v60 = vmax.f32 %v1333_v4, 0.0  ;;  %v932_v10 = vmul.f32 %v4412_v23, %v5023_v11 }
 0x1d7   : > { %v933_v38 = vmul.f32 %v4408_v9, %v5023_v11  ;;  %v1631_v3 = vpack.c.bf16 %v1459_v31, %v1457_v6  ;;  %v1455_v53 = vmax.f32 %v1359_v51, 0.0  ;;  %v1416_v47 = vadd.f32 %v4964_v24, %v1032_v33 }
 0x1d8   : > { %2721 = vmatpush.bf16.msrb.mxu3 %v4748_v32  ;;  %v3601_v32 = vld [vmem:[%s6439_s3 + $0x1c] sm:$0xf]  ;;  %v5149_v48 = vpop.permute.xlu2 %1296  ;;  %v934_v13 = vmul.f32 %v4412_v23, %v828_v61  ;;  %v935_v56 = vmul.f32 %v4408_v9, %v828_v61  ;;  %v1034_v11 = vadd.f32 %v938_v12, %v5083_v20  ;;  %v1425_v6 = vmax.f32 %v1329_v37, 0.0 }
 0x1d9   : > { %2345 = vmatmul.bf16.gmra.mxu0 %v5130_v54  ;;  %v5171_v49 = vor.u32 %v3601_v32, %v3322_v44  ;;  %v931_v20 = vmul.f32 %v4408_v9, %v5113_v22  ;;  %v1672_v44 = vld [vmem:[%s6440_s4 + $0x60] sm:$0xff]  ;;  %v929_v39 = vmul.f32 %v4408_v9, %v5000_v27  ;;  %v6651_v12 = vld [vmem:[#allocation56_spill] sm:$0xff] }
 0x1da   : > { %2852 = vmatpush.bf16.msrb.mxu0 %v4823_v7  ;;  %v1033_v7 = vadd.f32 %v937_v41, %v643_v16  ;;  %1760 = vperm.xlu2 %3785, %v1670_v2   ;;  %v1427_v41 = vmax.f32 %v5162_v62, 0.0  ;;  %v1453_v2 = vmax.f32 %v1357_v21, 0.0  ;;  %v1031_v31 = vadd.f32 %v935_v56, %v641_v36  ;;  %v3604_v56 = vld [vmem:[%s6439_s3 + $0x34] sm:$0xf] }
 0x1db   : > { %1755 = vperm.xlu1 %3788, %v1669_v52   ;;  %2405 = vmatmul.bf16.gmra.mxu2 %v5136_v59  ;;  %v1512_v52 = vmax.f32 %v1416_v47, 0.0  ;;  %v1027_v47 = vadd.f32 %v931_v20, %v5111_v28  ;;  %v1675_v28 = vld [vmem:[%s6440_s4 + $0x78] sm:$0xff] }
 0x1dc   : > { %2722 = vmatpush.bf16.msrb.mxu3 %v4807_v29  ;;  %v5178_v29 = vor.u32 %v3637_v8, %v3466_v1  ;;  %v1417_v16 = vadd.f32 %v4964_v24, %v1033_v7  ;;  %v1617_v24 = vpack.c.bf16 %v1431_v43, %v1429_v60  ;;  %v1629_v4 = vpack.c.bf16 %v1455_v53, %v1453_v2  ;;  %v3605_v7 = vld [vmem:[%s6439_s3 + $0x38] sm:$0xf0] }
 0x1dd   : > { %1930 = vperm.xlu0 %3787, %v1704_v0   ;;  %v1030_v1 = vadd.f32 %v934_v13, %v640_v50  ;;  %v635_v50 = vmul.f32 %v4406_v45, %v6651_v12  ;;  %v1615_v36 = vpack.c.bf16 %v1427_v41, %v1425_v6  ;;  %v1028_v0 = vadd.f32 %v932_v10, %v5074_v14  ;;  %v3641_v53 = vld [vmem:[%s6439_s3 + $0x158] sm:$0xf0] }
 0x1de   : > { %6650 = vst [vmem:[#allocation45_spill] sm:$0xff] %v5178_v29  ;;  %2853 = vmatpush.bf16.msrb.mxu0 %v4893_v55  ;;  %v1035_v55 = vadd.f32 %v939_v26, %v5094_v15  ;;  %v928_v15 = vmul.f32 %v4412_v23, %v5000_v27  ;;  %v1513_v8 = vmax.f32 %v1417_v16, 0.0  ;;  %v1707_v27 = vld [vmem:[%s6440_s4 + $0x178] sm:$0xff]  ;;  %v634_v26 = vmul.f32 %v4410_v46, %v6651_v12  ;;  %v1676_v16 = vld [vmem:[%s6440_s4 + $0x80] sm:$0xff] }
 0x1df   : > { %2474 = vmatmul.bf16.gmra.mxu1 %v5171_v49  ;;  %v1322_v30 = vpop.permute.xlu1 %1321  ;;  %2534 = vmatmul.bf16.gmra.mxu3 %v5178_v29  ;;  %v1029_v60 = vadd.f32 %v933_v38, %v5079_v18  ;;  %v1414_v18 = vadd.f32 %v5062_v34, %v1030_v1  ;;  %v1415_v10 = vadd.f32 %v5062_v34, %v1031_v31 }
 0x1e0   : > { %2723 = vmatpush.bf16.msrb.mxu3 %v4778_v40  ;;  %v930_v40 = vmul.f32 %v4412_v23, %v5113_v22  ;;  %v1418_v61 = vadd.f32 %v1322_v30, %v1034_v11  ;;  %v1419_v32 = vadd.f32 %v1322_v30, %v1035_v55  ;;  %v3332_v22 = vld [vmem:[%s6439_s3 + $0x30] sm:$0xf]  ;;  %v1024_v41 = vadd.f32 %v928_v15, %v634_v26  ;;  %v5252_v11 = vpop.permute.xlu0 %791  ;;  %v3334_v30 = vld [vmem:[%s6439_s3 + $0x3c] sm:$0xf0] }
 0x1e1   : > { %v5215_v33 = vpop.permute.xlu2 %803  ;;  %v5237_v14 = vor.u32 %v3605_v7, %v3332_v22  ;;  %v1679_v7 = vld [vmem:[%s6440_s4 + $0x98] sm:$0xff] }
 0x1e2   : > { %2854 = vmatpush.bf16.msrb.mxu0 %v1631_v3  ;;  %v1514_v62 = vmax.f32 %v1418_v61, 0.0  ;;  %v1515_v51 = vmax.f32 %v1419_v32, 0.0  ;;  %1775 = vperm.xlu2 %3785, %v1673_v17   ;;  %v1026_v43 = vadd.f32 %v930_v40, %v5107_v57  ;;  %v3476_v3 = vld [vmem:[%s6439_s3 + $0x150] sm:$0xf]  ;;  %v1025_v57 = vadd.f32 %v929_v39, %v635_v50  ;;  %v3478_v17 = vld [vmem:[%s6439_s3 + $0x15c] sm:$0xf0] }
 0x1e3   : > { %1770 = vperm.xlu1 %3788, %v1672_v44   ;;  %v5247_v13 = vor.u32 %v3641_v53, %v3476_v3  ;;  %v1408_v55 = vadd.f32 %v5149_v48, %v1024_v41  ;;  %v1510_v32 = vmax.f32 %v1414_v18, 0.0  ;;  %v1511_v44 = vmax.f32 %v1415_v10, 0.0  ;;  %v3344_v50 = vld [vmem:[%s6439_s3 + $0x48] sm:$0xf]  ;;  %v3607_v3 = vld [vmem:[%s6439_s3 + $0x4c] sm:$0xf] }
 0x1e4   : > { %2724 = vmatpush.bf16.msrb.mxu3 %v1617_v24  ;;  %v1658_v37 = vpack.c.bf16 %v1514_v62, %v1512_v52  ;;  %v1659_v21 = vpack.c.bf16 %v1515_v51, %v1513_v8  ;;  %v1409_v34 = vadd.f32 %v5149_v48, %v1025_v57  ;;  %v3640_v24 = vld [vmem:[%s6439_s3 + $0x154] sm:$0xf]  ;;  %v1410_v2 = vadd.f32 %v4971_v42, %v1026_v43  ;;  %v3346_v18 = vld [vmem:[%s6439_s3 + $0x54] sm:$0xf0]  ;;  %v3643_v10 = vld [vmem:[%s6439_s3 + $0x16c] sm:$0xf] }
 0x1e5   : > { %1945 = vperm.xlu0 %3787, %v1707_v27   ;;  %6652 = vst [vmem:[#allocation52_spill] sm:$0xff] %v5247_v13  ;;  %v1411_v48 = vadd.f32 %v4971_v42, %v1027_v47  ;;  %v5272_v39 = vor.u32 %v3604_v56, %v3334_v30  ;;  %v1678_v27 = vld [vmem:[%s6440_s4 + $0x90] sm:$0xff]  ;;  %v925_v30 = vmul.f32 %v4408_v9, %v5190_v5 }
 0x1e6   : > { %2855 = vmatpush.bf16.msrb.mxu0 %v1629_v4  ;;  %2590 = vmatpush.bf16.msrb.mxu2 %v1658_v37  ;;  %v5274_v4 = vor.u32 %v3640_v24, %v3478_v17  ;;  %v1505_v52 = vmax.f32 %v1409_v34, 0.0  ;;  %v1506_v22 = vmax.f32 %v1410_v2, 0.0  ;;  %v3644_v43 = vld [vmem:[%s6439_s3 + $0x170] sm:$0xf0]  ;;  %v5331_v34 = vor.u32 %v3607_v3, %v3346_v18  ;;  %v3610_v18 = vld [vmem:[%s6439_s3 + $0x64] sm:$0xf] }
 0x1e7   : > { %2977 = vmatpush.bf16.msrb.mxu1 %v1659_v21  ;;  %v1307_v38 = vpop.permute.xlu1 %1306  ;;  %v1507_v1 = vmax.f32 %v1411_v48, 0.0  ;;  %v1682_v21 = vld [vmem:[%s6440_s4 + $0xb0] sm:$0xff] }
 0x1e8   : > { %2725 = vmatpush.bf16.msrb.mxu3 %v1615_v36  ;;  %v1412_v40 = vadd.f32 %v1307_v38, %v1028_v0  ;;  %v1413_v6 = vadd.f32 %v1307_v38, %v1029_v60  ;;  %6653 = vst [vmem:[#allocation19_spill] sm:$0xff] %v5274_v4  ;;  %v5284_v12 = vpop.permute.xlu0 %787  ;;  %v3608_v36 = vld [vmem:[%s6439_s3 + $0x50] sm:$0xf0]  ;;  %v3488_v0 = vld [vmem:[%s6439_s3 + $0x168] sm:$0xf] }
 0x1e9   : > { %2350 = vmatmul.bf16.gmra.mxu0 %v5237_v14  ;;  %v1655_v51 = vpack.c.bf16 %v1507_v1, %v1505_v52  ;;  %v5300_v37 = vor.u32 %v3608_v36, %v3344_v50  ;;  %v1681_v60 = vld [vmem:[%s6440_s4 + $0xa8] sm:$0xff]  ;;  %v5313_v57 = vor.u32 %v3644_v43, %v3488_v0  ;;  %v3490_v38 = vld [vmem:[%s6439_s3 + $0x174] sm:$0xf0]  ;;  %v6657_v48 = vld [vmem:[#allocation39_spill] sm:$0xff] }
 0x1ea   : > { %v1508_v20 = vmax.f32 %v1412_v40, 0.0  ;;  %v1509_v15 = vmax.f32 %v1413_v6, 0.0  ;;  %1790 = vperm.xlu2 %3785, %v1676_v16   ;;  %v5269_v61 = vpop.permute.xlu2 %1291  ;;  %v6655_v16 = vld [vmem:[#allocation33_spill] sm:$0xff]  ;;  %v5333_v40 = vor.u32 %v3643_v10, %v3490_v38  ;;  %v924_v6 = vmul.f32 %v4412_v23, %v5190_v5  ;;  %v1685_v5 = vld [vmem:[%s6440_s4 + $0xc8] sm:$0xff]  ;;  %v3358_v38 = vld [vmem:[%s6439_s3 + $0x6c] sm:$0xf0] }
 0x1eb   : > { %1785 = vperm.xlu1 %3788, %v1675_v28   ;;  %2410 = vmatmul.bf16.gmra.mxu2 %v5247_v13  ;;  %6654 = vst [vmem:[#allocation21_spill] sm:$0xff] %v5313_v57  ;;  %v632_v28 = vmul.f32 %v4410_v46, %v6655_v16  ;;  %v633_v56 = vmul.f32 %v4406_v45, %v6655_v16  ;;  %v3647_v0 = vld [vmem:[%s6439_s3 + $0x188] sm:$0xf0]  ;;  %v3646_v16 = vld [vmem:[%s6439_s3 + $0x184] sm:$0xf] }
 0x1ec   : > { %2726 = vmatpush.bf16.msrb.mxu3 %v4924_v25  ;;  %v1504_v25 = vmax.f32 %v1408_v55, 0.0  ;;  %v1656_v8 = vpack.c.bf16 %v1510_v32, %v1508_v20  ;;  %v1657_v42 = vpack.c.bf16 %v1511_v44, %v1509_v15  ;;  %6656 = vst [vmem:[#allocation29_spill] sm:$0xff] %v5333_v40  ;;  %v630_v20 = vmul.f32 %v4410_v46, %v6657_v48 }
 0x1ed   : > { %v631_v15 = vmul.f32 %v4406_v45, %v6657_v48 }
 0x1ee   : > { %2591 = vmatpush.bf16.msrb.mxu2 %v1656_v8  ;;  %2978 = vmatpush.bf16.msrb.mxu1 %v1657_v42  ;;  %v1654_v62 = vpack.c.bf16 %v1506_v22, %v1504_v25  ;;  %v1020_v32 = vadd.f32 %v924_v6, %v630_v20  ;;  %v1684_v25 = vld [vmem:[%s6440_s4 + $0xc0] sm:$0xff]  ;;  %v5401_v20 = vor.u32 %v3610_v18, %v3358_v38  ;;  %v6665_v18 = vld [vmem:[#allocation54_spill] sm:$0xff] }
 0x1ef   : > { %2479 = vmatmul.bf16.gmra.mxu1 %v5272_v39  ;;  %2539 = vmatmul.bf16.gmra.mxu3 %v5274_v4  ;;  %v1021_v44 = vadd.f32 %v925_v30, %v631_v15  ;;  %v6659_v30 = vld [vmem:[#allocation31_spill] sm:$0xff]  ;;  %v622_v38 = vmul.f32 %v4410_v46, %v6665_v18 }
 0x1f0   : > { %v812_v31 = vpop.permute.xlu1 %811  ;;  %v5339_v24 = vpop.permute.xlu0 %775  ;;  %v627_v48 = vmul.f32 %v4406_v45, %v6659_v30 }
 0x1f1   : > { %v926_v53 = vmul.f32 %v4412_v23, %v812_v31  ;;  %v927_v47 = vmul.f32 %v4408_v9, %v812_v31  ;;  %v3356_v31 = vld [vmem:[%s6439_s3 + $0x60] sm:$0xf] }
 0x1f2   : > { %2592 = vmatpush.bf16.msrb.mxu2 %v1654_v62  ;;  %2979 = vmatpush.bf16.msrb.mxu1 %v1655_v51  ;;  %v5286_v26 = vpop.permute.xlu2 %1276  ;;  %v3611_v62 = vld [vmem:[%s6439_s3 + $0x68] sm:$0xf0] }
 0x1f3   : > { %1805 = vperm.xlu2 %3785, %v1679_v7   ;;  %1800 = vperm.xlu1 %3788, %v1678_v27   ;;  %v1022_v17 = vadd.f32 %v926_v53, %v632_v28  ;;  %v1023_v2 = vadd.f32 %v927_v47, %v633_v56  ;;  %v5372_v3 = vor.u32 %v3611_v62, %v3356_v31  ;;  %v1688_v53 = vld [vmem:[%s6440_s4 + $0xe0] sm:$0xff]  ;;  %v1687_v47 = vld [vmem:[%s6440_s4 + $0xd8] sm:$0xff]  ;;  %v3502_v28 = vld [vmem:[%s6439_s3 + $0x18c] sm:$0xf0] }
 0x1f4   : > { %v5403_v15 = vor.u32 %v3646_v16, %v3502_v28  ;;  %v916_v16 = vmul.f32 %v4412_v23, %v5252_v11  ;;  %v917_v28 = vmul.f32 %v4408_v9, %v5252_v11  ;;  %v3614_v11 = vld [vmem:[%s6439_s3 + $0x80] sm:$0xf0] }
 0x1f5   : > { %v1406_v52 = vadd.f32 %v5269_v61, %v1022_v17  ;;  %v1407_v8 = vadd.f32 %v5269_v61, %v1023_v2  ;;  %v3500_v61 = vld [vmem:[%s6439_s3 + $0x180] sm:$0xf]  ;;  %v626_v17 = vmul.f32 %v4410_v46, %v6659_v30 }
 0x1f6   : > { %v5383_v10 = vor.u32 %v3647_v0, %v3500_v61  ;;  %6660 = vst [vmem:[#allocation9_spill] sm:$0xff] %v5403_v15 }
 0x1f7   : > { %v1502_v50 = vmax.f32 %v1406_v52, 0.0  ;;  %v1503_v36 = vmax.f32 %v1407_v8, 0.0  ;;  %v6662_v8 = vld [vmem:[#allocation28_spill] sm:$0xff] }
 0x1f8   : > { %v800_v41 = vpop.permute.xlu1 %799  ;;  %v5370_v43 = vpop.permute.xlu0 %1261  ;;  %6658 = vst [vmem:[#allocation8_spill] sm:$0xff] %v5383_v10 }
 0x1f9   : > { %2355 = vmatmul.bf16.gmra.mxu0 %v5300_v37  ;;  %v920_v56 = vmul.f32 %v4412_v23, %v800_v41  ;;  %v921_v6 = vmul.f32 %v4408_v9, %v800_v41 }
 0x1fb   : > { %1820 = vperm.xlu2 %3785, %v1682_v21   ;;  %1815 = vperm.xlu1 %3788, %v1681_v60   ;;  %v5329_v55 = vpop.permute.xlu2 %783  ;;  %v1016_v41 = vadd.f32 %v920_v56, %v626_v17 }
 0x1fc   : > { %2415 = vmatmul.bf16.gmra.mxu2 %v5313_v57 }
 0x1fd   : > { %v1400_v61 = vadd.f32 %v5286_v26, %v1016_v41  ;;  %v912_v41 = vmul.f32 %v4412_v23, %v5329_v55 }
 0x1ff   : > { %2484 = vmatmul.bf16.gmra.mxu1 %v5331_v34  ;;  %2544 = vmatmul.bf16.gmra.mxu3 %v5333_v40 }
 0x200   : > { %v5412_v52 = vpop.permute.xlu0 %1720 }
 0x201   : > { %v1287_v42 = vpop.permute.xlu1 %1286  ;;  %6661 = vst [vmem:[#allocation17_spill] sm:$0xff] %v5412_v52 }
 0x202   : > { %v1404_v22 = vadd.f32 %v1287_v42, %v1020_v32  ;;  %v1405_v1 = vadd.f32 %v1287_v42, %v1021_v44  ;;  %v1017_v44 = vadd.f32 %v921_v6, %v627_v48  ;;  %v620_v42 = vmul.f32 %v4410_v46, %v6662_v8  ;;  %v3368_v48 = vld [vmem:[%s6439_s3 + $0x78] sm:$0xf] }
 0x203   : > { %1835 = vperm.xlu2 %3785, %v1685_v5   ;;  %1830 = vperm.xlu1 %3788, %v1684_v25   ;;  %v922_v5 = vmul.f32 %v4412_v23, %v5215_v33  ;;  %v923_v25 = vmul.f32 %v4408_v9, %v5215_v33  ;;  %v1691_v33 = vld [vmem:[%s6440_s4 + $0xf8] sm:$0xff]  ;;  %v915_v6 = vmul.f32 %v4408_v9, %v5284_v12 }
 0x204   : > { %v1500_v51 = vmax.f32 %v1404_v22, 0.0  ;;  %v1501_v7 = vmax.f32 %v1405_v1, 0.0  ;;  %v5362_v27 = vpop.permute.xlu2 %1271  ;;  %v621_v22 = vmul.f32 %v4406_v45, %v6662_v8  ;;  %v6663_v1 = vld [vmem:[#allocation55_spill] sm:$0xff]  ;;  %v1401_v0 = vadd.f32 %v5286_v26, %v1017_v44  ;;  %v3650_v8 = vld [vmem:[%s6439_s3 + $0x1a0] sm:$0xf0] }
 0x205   : > { %v628_v31 = vmul.f32 %v4410_v46, %v6663_v1  ;;  %v629_v62 = vmul.f32 %v4406_v45, %v6663_v1  ;;  %v914_v26 = vmul.f32 %v4412_v23, %v5284_v12  ;;  %v913_v44 = vmul.f32 %v4408_v9, %v5329_v55 }
 0x206   : > { %v1652_v21 = vpack.c.bf16 %v1502_v50, %v1500_v51  ;;  %v1653_v60 = vpack.c.bf16 %v1503_v36, %v1501_v7  ;;  %v1690_v51 = vld [vmem:[%s6440_s4 + $0xf0] sm:$0xff]  ;;  %v6664_v7 = vld [vmem:[#allocation38_spill] sm:$0xff]  ;;  %v1497_v12 = vmax.f32 %v1401_v0, 0.0 }
 0x207   : > { %v624_v50 = vmul.f32 %v4410_v46, %v6664_v7  ;;  %v625_v36 = vmul.f32 %v4406_v45, %v6664_v7  ;;  %v1694_v0 = vld [vmem:[%s6440_s4 + $0x110] sm:$0xff] }
 0x208   : > { %2593 = vmatpush.bf16.msrb.mxu2 %v1652_v21  ;;  %2980 = vmatpush.bf16.msrb.mxu1 %v1653_v60 }
 0x209   : > { %2360 = vmatmul.bf16.gmra.mxu0 %v5372_v3 }
 0x20a   : > { %v796_v2 = vpop.permute.xlu1 %795 }
 0x20b   : > { %1850 = vperm.xlu2 %3785, %v1688_v53   ;;  %1845 = vperm.xlu1 %3788, %v1687_v47   ;;  %v918_v21 = vmul.f32 %v4412_v23, %v796_v2  ;;  %v919_v60 = vmul.f32 %v4408_v9, %v796_v2  ;;  %v1018_v53 = vadd.f32 %v922_v5, %v628_v31  ;;  %v1496_v5 = vmax.f32 %v1400_v61, 0.0 }
 0x20c   : > { %2420 = vmatmul.bf16.gmra.mxu2 %v5383_v10  ;;  %v5406_v32 = vpop.permute.xlu2 %1256  ;;  %v1019_v47 = vadd.f32 %v923_v25, %v629_v62  ;;  %v3512_v25 = vld [vmem:[%s6439_s3 + $0x198] sm:$0xf]  ;;  %v623_v61 = vmul.f32 %v4406_v45, %v6665_v18 }
 0x20d   : > { %v1014_v1 = vadd.f32 %v918_v21, %v624_v50  ;;  %v1015_v31 = vadd.f32 %v919_v60, %v625_v36  ;;  %v1693_v50 = vld [vmem:[%s6440_s4 + $0x108] sm:$0xff]  ;;  %v1012_v36 = vadd.f32 %v916_v16, %v622_v38  ;;  %v3613_v21 = vld [vmem:[%s6439_s3 + $0x7c] sm:$0xf]  ;;  %v5481_v60 = vpop.permute.xlu0 %1735  ;;  %v5485_v18 = vor.u32 %v3650_v8, %v3512_v25 }
 0x20e   : > { %6667 = vst [vmem:[#allocation49_spill] sm:$0xff] %v5481_v60  ;;  %v3649_v38 = vld [vmem:[%s6439_s3 + $0x19c] sm:$0xf]  ;;  %v3514_v16 = vld [vmem:[%s6439_s3 + $0x1a4] sm:$0xf0] }
 0x20f   : > { %2489 = vmatmul.bf16.gmra.mxu1 %v5401_v20  ;;  %2549 = vmatmul.bf16.gmra.mxu3 %v5403_v15  ;;  %6668 = vst [vmem:[#allocation50_spill] sm:$0xff] %v5485_v18  ;;  %v1399_v25 = vadd.f32 %v5362_v27, %v1015_v31  ;;  %v5501_v10 = vor.u32 %v3649_v38, %v3514_v16  ;;  %v3380_v16 = vld [vmem:[%s6439_s3 + $0x90] sm:$0xf]  ;;  %v3562_v15 = vld [vmem:[%s6439_s3 + $0x204] sm:$0xf0] }
 0x211   : > { %6669 = vst [vmem:[#allocation47_spill] sm:$0xff] %v5501_v10  ;;  %v1495_v31 = vmax.f32 %v1399_v25, 0.0 }
 0x213   : > { %1865 = vperm.xlu2 %3785, %v1691_v33   ;;  %1860 = vperm.xlu1 %3788, %v1690_v51   ;;  %v1282_v56 = vpop.permute.xlu1 %1281  ;;  %v6666_v51 = vld [vmem:[#allocation36_spill] sm:$0xff] }
 0x214   : > { %v1402_v30 = vadd.f32 %v1282_v56, %v1018_v53  ;;  %v1403_v17 = vadd.f32 %v1282_v56, %v1019_v47  ;;  %v5448_v2 = vpop.permute.xlu2 %1251  ;;  %v618_v7 = vmul.f32 %v4410_v46, %v6666_v51  ;;  %v619_v55 = vmul.f32 %v4406_v45, %v6666_v51 }
 0x215   : > { %v5483_v56 = vor.u32 %v3614_v11, %v3368_v48  ;;  %v1011_v51 = vadd.f32 %v915_v6, %v621_v22  ;;  %v1398_v11 = vadd.f32 %v5362_v27, %v1014_v1 }
 0x216   : > { %v1498_v62 = vmax.f32 %v1402_v30, 0.0  ;;  %v1499_v33 = vmax.f32 %v1403_v17, 0.0  ;;  %v3370_v30 = vld [vmem:[%s6439_s3 + $0x84] sm:$0xf0]  ;;  %v1010_v17 = vadd.f32 %v914_v26, %v620_v42  ;;  %v1009_v48 = vadd.f32 %v913_v44, %v619_v55 }
 0x217   : > { %v1395_v6 = vadd.f32 %v5370_v43, %v1011_v51  ;;  %v1494_v1 = vmax.f32 %v1398_v11, 0.0  ;;  %v6671_v11 = vld [vmem:[#allocation53_spill] sm:$0xff] }
 0x218   : > { %v1650_v53 = vpack.c.bf16 %v1498_v62, %v1496_v5  ;;  %v1651_v47 = vpack.c.bf16 %v1499_v33, %v1497_v12  ;;  %v1008_v5 = vadd.f32 %v912_v41, %v618_v7  ;;  %v1013_v12 = vadd.f32 %v917_v28, %v623_v61 }
 0x219   : > { %v5499_v33 = vor.u32 %v3613_v21, %v3370_v30  ;;  %v1393_v42 = vadd.f32 %v5406_v32, %v1009_v48  ;;  %2365 = vmatmul.bf16.gmra.mxu0 %v5483_v56  ;;  %v1394_v27 = vadd.f32 %v5370_v43, %v1010_v17  ;;  %v1696_v43 = vld [vmem:[%s6440_s4 + $0x120] sm:$0xff]  ;;  %v5518_v21 = vpop.permute.xlu0 %1750  ;;  %v3653_v48 = vld [vmem:[%s6439_s3 + $0x1b8] sm:$0xf0]  ;;  %v616_v25 = vmul.f32 %v4410_v46, %v6671_v11 }
 0x21a   : > { %2594 = vmatpush.bf16.msrb.mxu2 %v1650_v53  ;;  %2981 = vmatpush.bf16.msrb.mxu1 %v1651_v47  ;;  %v1392_v8 = vadd.f32 %v5406_v32, %v1008_v5  ;;  %v3617_v5 = vld [vmem:[%s6439_s3 + $0x98] sm:$0xf0] }
 0x21b   : > { %1880 = vperm.xlu2 %3785, %v1694_v0   ;;  %1875 = vperm.xlu1 %3788, %v1693_v50   ;;  %v1267_v62 = vpop.permute.xlu1 %1266  ;;  %v1489_v7 = vmax.f32 %v1393_v42, 0.0  ;;  %v1697_v0 = vld [vmem:[%s6440_s4 + $0x128] sm:$0xff]  ;;  %v1490_v50 = vmax.f32 %v1394_v27, 0.0  ;;  %v909_v42 = vmul.f32 %v4408_v9, %v5339_v24  ;;  %v3616_v27 = vld [vmem:[%s6439_s3 + $0x94] sm:$0xf] }
 0x21c   : > { %v1396_v22 = vadd.f32 %v1267_v62, %v1012_v36  ;;  %v1397_v28 = vadd.f32 %v1267_v62, %v1013_v12  ;;  %2425 = vmatmul.bf16.gmra.mxu2 %v5485_v18  ;;  %v5506_v26 = vpop.permute.xlu2 %1715  ;;  %v1488_v32 = vmax.f32 %v1392_v8, 0.0  ;;  %v1491_v36 = vmax.f32 %v1395_v6, 0.0  ;;  %v3524_v12 = vld [vmem:[%s6439_s3 + $0x1b0] sm:$0xf]  ;;  %v3418_v18 = vld [vmem:[%s6439_s3 + $0xe4] sm:$0xf0] }
 0x21d   : > { %v617_v8 = vmul.f32 %v4406_v45, %v6671_v11  ;;  %v908_v62 = vmul.f32 %v4412_v23, %v5339_v24  ;;  %v3652_v24 = vld [vmem:[%s6439_s3 + $0x1b4] sm:$0xf] }
 0x21e   : > { %v1492_v41 = vmax.f32 %v1396_v22, 0.0  ;;  %v1493_v44 = vmax.f32 %v1397_v28, 0.0  ;;  %v1646_v30 = vpack.c.bf16 %v1490_v50, %v1488_v32  ;;  %v1647_v38 = vpack.c.bf16 %v1491_v36, %v1489_v7  ;;  %v1700_v22 = vld [vmem:[%s6440_s4 + $0x140] sm:$0xff]  ;;  %v1699_v28 = vld [vmem:[%s6440_s4 + $0x138] sm:$0xff] }
 0x21f   : > { %2494 = vmatmul.bf16.gmra.mxu1 %v5499_v33  ;;  %2554 = vmatmul.bf16.gmra.mxu3 %v5501_v10  ;;  %v3661_v10 = vld [vmem:[%s6439_s3 + $0x1fc] sm:$0xf] }
 0x220   : > { %v1648_v55 = vpack.c.bf16 %v1494_v1, %v1492_v41  ;;  %v1649_v61 = vpack.c.bf16 %v1495_v31, %v1493_v44  ;;  %v5553_v44 = vor.u32 %v3617_v5, %v3380_v16  ;;  %v3526_v1 = vld [vmem:[%s6439_s3 + $0x1bc] sm:$0xf0]  ;;  %v6673_v31 = vld [vmem:[#allocation24_spill] sm:$0xff]  ;;  %v1702_v5 = vld [vmem:[%s6440_s4 + $0x150] sm:$0xff] }
 0x221   : > { %v614_v32 = vmul.f32 %v4410_v46, %v6673_v31  ;;  %v615_v7 = vmul.f32 %v4406_v45, %v6673_v31  ;;  %v3394_v31 = vld [vmem:[%s6439_s3 + $0xb4] sm:$0xf0] }
 0x222   : > { %2595 = vmatpush.bf16.msrb.mxu2 %v1648_v55  ;;  %2982 = vmatpush.bf16.msrb.mxu1 %v1649_v61 }
 0x223   : > { %1895 = vperm.xlu2 %3785, %v1697_v0   ;;  %1890 = vperm.xlu1 %3788, %v1696_v43   ;;  %v1004_v55 = vadd.f32 %v908_v62, %v614_v32  ;;  %v5572_v0 = vor.u32 %v3652_v24, %v3526_v1  ;;  %v5574_v43 = vpop.permute.xlu0 %1765  ;;  %v1005_v36 = vadd.f32 %v909_v42, %v615_v7  ;;  %v3620_v42 = vld [vmem:[%s6439_s3 + $0xb0] sm:$0xf0]  ;;  %v3655_v32 = vld [vmem:[%s6439_s3 + $0x1cc] sm:$0xf]  ;;  %v3538_v7 = vld [vmem:[%s6439_s3 + $0x1d4] sm:$0xf0] }
 0x224   : > { %v780_v53 = vpop.permute.xlu1 %779  ;;  %v5520_v47 = vpop.permute.xlu2 %1730 }
 0x225   : > { %6670 = vst [vmem:[#allocation51_spill] sm:$0xff] %v5520_v47  ;;  %v910_v17 = vmul.f32 %v4412_v23, %v780_v53  ;;  %v911_v51 = vmul.f32 %v4408_v9, %v780_v53  ;;  %v5555_v23 = vor.u32 %v3653_v48, %v3524_v12  ;;  %v3382_v9 = vld [vmem:[%s6439_s3 + $0x9c] sm:$0xf0] }
 0x226   : > { %2596 = vmatpush.bf16.msrb.mxu2 %v1646_v30  ;;  %2983 = vmatpush.bf16.msrb.mxu1 %v1647_v38  ;;  %v5570_v61 = vor.u32 %v3616_v27, %v3382_v9  ;;  %6674 = vst [vmem:[#allocation6_spill] sm:$0xff] %v5572_v0  ;;  %v3619_v9 = vld [vmem:[%s6439_s3 + $0xac] sm:$0xf] }
 0x227   : > { %v1006_v6 = vadd.f32 %v910_v17, %v616_v25  ;;  %v1007_v41 = vadd.f32 %v911_v51, %v617_v8  ;;  %6672 = vst [vmem:[#allocation26_spill] sm:$0xff] %v5555_v23  ;;  %v1703_v51 = vld [vmem:[%s6440_s4 + $0x158] sm:$0xff]  ;;  %v3392_v8 = vld [vmem:[%s6439_s3 + $0xa8] sm:$0xf] }
 0x228   : > { %v5617_v24 = vor.u32 %v3620_v42, %v3392_v8  ;;  %v3406_v42 = vld [vmem:[%s6439_s3 + $0xcc] sm:$0xf0] }
 0x229   : > { %2370 = vmatmul.bf16.gmra.mxu0 %v5553_v44  ;;  %v1390_v46 = vadd.f32 %v5448_v2, %v1006_v6  ;;  %v1391_v45 = vadd.f32 %v5448_v2, %v1007_v41  ;;  %v1706_v6 = vld [vmem:[%s6440_s4 + $0x170] sm:$0xff]  ;;  %v1705_v41 = vld [vmem:[%s6440_s4 + $0x168] sm:$0xff] }
 0x22b   : > { %1910 = vperm.xlu2 %3785, %v1700_v22   ;;  %1905 = vperm.xlu1 %3788, %v1699_v28   ;;  %v1486_v12 = vmax.f32 %v1390_v46, 0.0  ;;  %v1487_v48 = vmax.f32 %v1391_v45, 0.0  ;;  %v3536_v22 = vld [vmem:[%s6439_s3 + $0x1c8] sm:$0xf]  ;;  %v3656_v28 = vld [vmem:[%s6439_s3 + $0x1d0] sm:$0xf0]  ;;  %v5606_v27 = vpop.permute.xlu0 %1780 }
 0x22c   : > { %2430 = vmatmul.bf16.gmra.mxu2 %v5555_v23  ;;  %v5578_v50 = vpop.permute.xlu2 %1745  ;;  %v5619_v1 = vor.u32 %v3656_v28, %v3536_v22  ;;  %v3658_v22 = vld [vmem:[%s6439_s3 + $0x1e4] sm:$0xf]  ;;  %v3550_v28 = vld [vmem:[%s6439_s3 + $0x1ec] sm:$0xf0] }
 0x22d   : > { %v1247_v53 = vpop.permute.xlu1 %1246 }
 0x22e   : > { %v1388_v30 = vadd.f32 %v1247_v53, %v1004_v55  ;;  %v1389_v38 = vadd.f32 %v1247_v53, %v1005_v36  ;;  %6675 = vst [vmem:[#allocation27_spill] sm:$0xff] %v5619_v1  ;;  %v5630_v55 = vor.u32 %v3619_v9, %v3394_v31  ;;  %v5632_v36 = vor.u32 %v3655_v32, %v3538_v7 }
 0x22f   : > { %2499 = vmatmul.bf16.gmra.mxu1 %v5570_v61  ;;  %2559 = vmatmul.bf16.gmra.mxu3 %v5572_v0  ;;  %v5681_v31 = vor.u32 %v3658_v22, %v3550_v28  ;;  %v3416_v22 = vld [vmem:[%s6439_s3 + $0xd8] sm:$0xf] }
 0x230   : > { %v1484_v16 = vmax.f32 %v1388_v30, 0.0  ;;  %v1485_v17 = vmax.f32 %v1389_v38, 0.0  ;;  %6676 = vst [vmem:[#allocation25_spill] sm:$0xff] %v5632_v36  ;;  %v3404_v38 = vld [vmem:[%s6439_s3 + $0xc0] sm:$0xf] }
 0x231   : > { %6679 = vst [vmem:[#allocation30_spill] sm:$0xff] %v5681_v31 }
 0x232   : > { %v1644_v2 = vpack.c.bf16 %v1486_v12, %v1484_v16  ;;  %v1645_v11 = vpack.c.bf16 %v1487_v48, %v1485_v17  ;;  %v3623_v17 = vld [vmem:[%s6439_s3 + $0xc8] sm:$0xf0]  ;;  %v3622_v48 = vld [vmem:[%s6439_s3 + $0xc4] sm:$0xf] }
 0x233   : > { %1925 = vperm.xlu2 %3785, %v1703_v51   ;;  %1920 = vperm.xlu1 %3788, %v1702_v5   ;;  %v5642_v53 = vpop.permute.xlu0 %1795  ;;  %v3548_v51 = vld [vmem:[%s6439_s3 + $0x1e0] sm:$0xf]  ;;  %v3659_v5 = vld [vmem:[%s6439_s3 + $0x1e8] sm:$0xf0]  ;;  %v5679_v9 = vor.u32 %v3622_v48, %v3406_v42 }
 0x234   : > { %2597 = vmatpush.bf16.msrb.mxu2 %v1644_v2  ;;  %2984 = vmatpush.bf16.msrb.mxu1 %v1645_v11  ;;  %v5590_v25 = vpop.permute.xlu2 %1760  ;;  %v5664_v11 = vor.u32 %v3623_v17, %v3404_v38  ;;  %v5666_v8 = vor.u32 %v3659_v5, %v3548_v51 }
 0x235   : > { %v5595_v62 = vpop.permute.xlu1 %1710 }
 0x236   : > { %6678 = vst [vmem:[#allocation23_spill] sm:$0xff] %v5666_v8 }
 0x239   : > { %2375 = vmatmul.bf16.gmra.mxu0 %v5617_v24 }
 0x23b   : > { %1940 = vperm.xlu2 %3785, %v1706_v6   ;;  %1935 = vperm.xlu1 %3788, %v1705_v41   ;;  %v5677_v6 = vpop.permute.xlu0 %1810 }
 0x23c   : > { %2435 = vmatmul.bf16.gmra.mxu2 %v5619_v1  ;;  %v5636_v46 = vpop.permute.xlu2 %1775  ;;  %v3625_v1 = vld [vmem:[%s6439_s3 + $0xdc] sm:$0xf] }
 0x23d   : > { %v5638_v45 = vpop.permute.xlu1 %1725  ;;  %v5735_v13 = vor.u32 %v3625_v1, %v3418_v18 }
 0x23e   : > { %6677 = vst [vmem:[#allocation44_spill] sm:$0xff] %v5638_v45 }
 0x23f   : > { %2504 = vmatmul.bf16.gmra.mxu1 %v5630_v55  ;;  %2564 = vmatmul.bf16.gmra.mxu3 %v5632_v36 }
 0x243   : > { %v5698_v42 = vpop.permute.xlu0 %1825 }
 0x244   : > { %v5644_v30 = vpop.permute.xlu2 %1790 }
 0x245   : > { %v5649_v16 = vpop.permute.xlu1 %1740 }
 0x246   : > { %v2341_v12 = vpop.f32.mrf.mxu0 }
 0x247   : > { %v2342_v2 = vadd.f32 %v2341_v12, %v5595_v62 }
 0x249   : > { %2380 = vmatmul.bf16.gmra.mxu0 %v5664_v11 }
 0x24c   : > { %v2470_v41 = vpop.f32.mrf.mxu1  ;;  %2440 = vmatmul.bf16.gmra.mxu2 %v5666_v8  ;;  %v3626_v8 = vld [vmem:[%s6439_s3 + $0xe0] sm:$0xf0] }
 0x24d   : > { %v5685_v32 = vadd.f32 %v2470_v41, %v2342_v2  ;;  %v5687_v7 = vpop.permute.xlu2 %1805  ;;  %v5689_v38 = vpop.permute.xlu1 %1755  ;;  %v5722_v23 = vor.u32 %v3626_v8, %v3416_v22  ;;  %v5737_v8 = vor.u32 %v3661_v10, %v3562_v15 }
 0x24e   : > { %v5691_v17 = vpop.f32.mrf.mxu2  ;;  %v2343_v51 = vpop.f32.mrf.mxu0 }
 0x24f   : > { %2509 = vmatmul.bf16.gmra.mxu1 %v5679_v9  ;;  %2569 = vmatmul.bf16.gmra.mxu3 %v5681_v31  ;;  %v2344_v5 = vadd.f32 %v2343_v51, %v5506_v26  ;;  %v3560_v51 = vld [vmem:[%s6439_s3 + $0x1f8] sm:$0xf]  ;;  %6681 = vst [vmem:[#allocation46_spill] sm:$0xff] %v5737_v8 }
 0x252   : > { %v5696_v12 = vpop.f32.mrf.mxu3 }
 0x254   : > { %v2472_v48 = vpop.f32.mrf.mxu1 }
 0x255   : > { %v5700_v2 = vadd.f32 %v2472_v48, %v2344_v5  ;;  %v5705_v28 = vpop.permute.xlu2 %1820  ;;  %v5707_v41 = vpop.permute.xlu1 %1770  ;;  %v3662_v5 = vld [vmem:[%s6439_s3 + $0x200] sm:$0xf0] }
 0x256   : > { %v2403_v48 = vpop.f32.mrf.mxu2  ;;  %v2346_v31 = vpop.f32.mrf.mxu0  ;;  %v5724_v0 = vor.u32 %v3662_v5, %v3560_v51 }
 0x257   : > { %v2347_v36 = vadd.f32 %v2346_v31, %v5412_v52  ;;  %v5747_v5 = vpop.permute.xlu0 %1840 }
 0x258   : > { %6680 = vst [vmem:[#allocation18_spill] sm:$0xff] %v5724_v0 }
 0x259   : > { %2385 = vmatmul.bf16.gmra.mxu0 %v5722_v23  ;;  %6684 = vst [vmem:[#allocation12_spill] sm:$0xff] %v5747_v5 }
 0x25a   : > { %v2532_v57 = vpop.f32.mrf.mxu3 }
 0x25c   : > { %v2475_v40 = vpop.f32.mrf.mxu1  ;;  %2445 = vmatmul.bf16.gmra.mxu2 %v5724_v0 }
 0x25d   : > { %v5741_v31 = vadd.f32 %v2475_v40, %v2347_v36  ;;  %v5743_v22 = vpop.permute.xlu2 %1835  ;;  %v5745_v51 = vpop.permute.xlu1 %1785 }
 0x25e   : > { %6683 = vst [vmem:[#allocation34_spill] sm:$0xff] %v5743_v22  ;;  %v2404_v4 = vadd.f32 %v2403_v48, %v5743_v22  ;;  %v2406_v59 = vpop.f32.mrf.mxu2  ;;  %v2348_v10 = vpop.f32.mrf.mxu0  ;;  %v3428_v48 = vld [vmem:[%s6439_s3 + $0xf0] sm:$0xf]  ;;  %v3574_v22 = vld [vmem:[%s6439_s3 + $0x21c] sm:$0xf0] }
 0x25f   : > { %6682 = vst [vmem:[#allocation32_spill] sm:$0xff] %v5741_v31  ;;  %v2407_v18 = vadd.f32 %v2406_v59, %v5747_v5  ;;  %2514 = vmatmul.bf16.gmra.mxu1 %v5735_v13  ;;  %2574 = vmatmul.bf16.gmra.mxu3 %v5737_v8  ;;  %v2349_v15 = vadd.f32 %v2348_v10, %v5638_v45  ;;  %v3629_v5 = vld [vmem:[%s6439_s3 + $0xf8] sm:$0xf0]  ;;  %v3628_v10 = vld [vmem:[%s6439_s3 + $0xf4] sm:$0xf] }
 0x260   : > { %v5754_v40 = vadd.f32 %v2532_v57, %v2404_v4  ;;  %v3572_v4 = vld [vmem:[%s6439_s3 + $0x210] sm:$0xf]  ;;  %v3665_v57 = vld [vmem:[%s6439_s3 + $0x218] sm:$0xf0]  ;;  %v3664_v8 = vld [vmem:[%s6439_s3 + $0x214] sm:$0xf] }
 0x262   : > { %6685 = vst [vmem:[#allocation42_spill] sm:$0xff] %v5754_v40  ;;  %v2535_v1 = vpop.f32.mrf.mxu3 }
 0x263   : > { %v5756_v36 = vadd.f32 %v2535_v1, %v2407_v18  ;;  %v5779_v1 = vor.u32 %v3665_v57, %v3572_v4 }
 0x264   : > { %v2477_v0 = vpop.f32.mrf.mxu1 }
 0x265   : > { %6686 = vst [vmem:[#allocation5_spill] sm:$0xff] %v5756_v36  ;;  %v5758_v29 = vadd.f32 %v2477_v0, %v2349_v15  ;;  %v5763_v59 = vpop.permute.xlu1 %1800  ;;  %v5777_v15 = vor.u32 %v3629_v5, %v3428_v48  ;;  %v3430_v36 = vld [vmem:[%s6439_s3 + $0xfc] sm:$0xf0]  ;;  %v5793_v5 = vor.u32 %v3664_v8, %v3574_v22  ;;  %v5801_v45 = vpop.permute.xlu2 %1850 }
 0x266   : > { %v2408_v0 = vpop.f32.mrf.mxu2  ;;  %v2351_v18 = vpop.f32.mrf.mxu0  ;;  %6689 = vst [vmem:[#allocation48_spill] sm:$0xff] %v5779_v1  ;;  %v5791_v63 = vor.u32 %v3628_v10, %v3430_v36 }
 0x267   : > { %6687 = vst [vmem:[#allocation14_spill] sm:$0xff] %v5758_v29  ;;  %v2352_v40 = vadd.f32 %v2351_v18, %v5520_v47 }
 0x268   : > { %6688 = vst [vmem:[#allocation7_spill] sm:$0xff] %v5777_v15 }
 0x269   : > { %6690 = vst [vmem:[#allocation13_spill] sm:$0xff] %v5791_v63  ;;  %2390 = vmatmul.bf16.gmra.mxu0 %v5777_v15 }
 0x26a   : > { %v2537_v35 = vpop.f32.mrf.mxu3  ;;  %6691 = vst [vmem:[#allocation40_spill] sm:$0xff] %v5793_v5 }
 0x26b   : > { %6693 = vst [vmem:[#allocation22_spill] sm:$0xff] %v5801_v45 }
 0x26c   : > { %2450 = vmatmul.bf16.gmra.mxu2 %v5779_v1  ;;  %v2480_v48 = vpop.f32.mrf.mxu1 }
 0x26d   : > { %v5797_v4 = vadd.f32 %v2480_v48, %v2352_v40  ;;  %v5799_v57 = vpop.permute.xlu1 %1815  ;;  %v3440_v40 = vld [vmem:[%s6439_s3 + $0x108] sm:$0xf] }
 0x26e   : > { %v2411_v29 = vpop.f32.mrf.mxu2  ;;  %v2353_v8 = vpop.f32.mrf.mxu0 }
 0x26f   : > { %6692 = vst [vmem:[#allocation11_spill] sm:$0xff] %v5797_v4  ;;  %v2412_v52 = vadd.f32 %v2411_v29, %v5801_v45  ;;  %2519 = vmatmul.bf16.gmra.mxu1 %v5791_v63  ;;  %2579 = vmatmul.bf16.gmra.mxu3 %v5793_v5  ;;  %v2354_v22 = vadd.f32 %v2353_v8, %v5481_v60  ;;  %v3632_v29 = vld [vmem:[%s6439_s3 + $0x110] sm:$0xf0]  ;;  %v3584_v8 = vld [vmem:[%s6439_s3 + $0x228] sm:$0xf] }
 0x270   : > { %v5832_v5 = vor.u32 %v3632_v29, %v3440_v40 }
 0x272   : > { %v2540_v36 = vpop.f32.mrf.mxu3 }
 0x273   : > { %v5807_v18 = vadd.f32 %v2540_v36, %v2412_v52  ;;  %v3668_v52 = vld [vmem:[%s6439_s3 + $0x230] sm:$0xf0] }
 0x274   : > { %v2482_v10 = vpop.f32.mrf.mxu1  ;;  %v5834_v60 = vor.u32 %v3668_v52, %v3584_v8 }
 0x275   : > { %6694 = vst [vmem:[#allocation15_spill] sm:$0xff] %v5807_v18  ;;  %v5812_v48 = vadd.f32 %v2482_v10, %v2354_v22  ;;  %v5814_v1 = vpop.permute.xlu1 %1830  ;;  %v3631_v10 = vld [vmem:[%s6439_s3 + $0x10c] sm:$0xf]  ;;  %v5830_v18 = vpop.permute.xlu0 %1855 }
 0x276   : > { %6696 = vst [vmem:[#allocation37_spill] sm:$0xff] %v5814_v1  ;;  %v2402_v36 = vadd.f32 %v5691_v17, %v5814_v1  ;;  %v2413_v45 = vpop.f32.mrf.mxu2  ;;  %v2356_v22 = vpop.f32.mrf.mxu0  ;;  %v3667_v17 = vld [vmem:[%s6439_s3 + $0x22c] sm:$0xf]  ;;  %v3586_v1 = vld [vmem:[%s6439_s3 + $0x234] sm:$0xf0] }
 0x277   : > { %6695 = vst [vmem:[#allocation35_spill] sm:$0xff] %v5812_v48  ;;  %v3442_v48 = vld [vmem:[%s6439_s3 + $0x114] sm:$0xf0]  ;;  %v2414_v40 = vadd.f32 %v2413_v45, %v5830_v18  ;;  %v2357_v29 = vadd.f32 %v2356_v22, %v5649_v16  ;;  %v5854_v15 = vor.u32 %v3667_v17, %v3586_v1 }
 0x278   : > { %6697 = vst [vmem:[#allocation41_spill] sm:$0xff] %v5830_v18  ;;  %v5846_v47 = vadd.f32 %v5696_v12, %v2402_v36  ;;  %v5852_v4 = vor.u32 %v3631_v10, %v3442_v48 }
 0x279   : > { %6698 = vst [vmem:[#allocation43_spill] sm:$0xff] %v5834_v60  ;;  %2395 = vmatmul.bf16.gmra.mxu0 %v5832_v5 }
 0x27a   : > { %v2542_v8 = vpop.f32.mrf.mxu3  ;;  %6700 = vst [vmem:[#allocation56_spill] sm:$0xff] %v5854_v15 }
 0x27b   : > { %v5850_v52 = vadd.f32 %v2542_v8, %v2414_v40 }
 0x27c   : > { %2455 = vmatmul.bf16.gmra.mxu2 %v5834_v60  ;;  %v2485_v63 = vpop.f32.mrf.mxu1  ;;  %v5879_v60 = vpop.permute.xlu2 %1865 }
 0x27d   : > { %6699 = vst [vmem:[#allocation57_spill] sm:$0xff] %v5850_v52  ;;  %v5858_v31 = vadd.f32 %v2485_v63, %v2357_v29  ;;  %v5860_v12 = vpop.permute.xlu1 %1845  ;;  %v3600_v29 = vld [vmem:[%s6439_s3 + $0x10] sm:$0xf0] }
 0x27e   : > { %6701 = vst [vmem:[#allocation33_spill] sm:$0xff] %v5860_v12  ;;  %v2409_v45 = vadd.f32 %v2408_v0, %v5860_v12  ;;  %v2358_v48 = vpop.f32.mrf.mxu0  ;;  %v3316_v0 = vld [vmem:[%s6439_s3 + $0x8] sm:$0xf] }
 0x27f   : > { %v2416_v36 = vpop.f32.mrf.mxu2  ;;  %2524 = vmatmul.bf16.gmra.mxu1 %v5852_v4  ;;  %2584 = vmatmul.bf16.gmra.mxu3 %v5854_v15  ;;  %v2359_v10 = vadd.f32 %v2358_v48, %v5578_v50  ;;  %v3317_v48 = vor.u32 %v3600_v29, %v3316_v0 }
 0x280   : > { %v5865_v22 = vadd.f32 %v2537_v35, %v2409_v45 }
 0x282   : > { %6702 = vst [vmem:[#allocation39_spill] sm:$0xff] %v5865_v22  ;;  %v2545_v1 = vpop.f32.mrf.mxu3 }
 0x284   : > { %v2487_v17 = vpop.f32.mrf.mxu1 }
 0x285   : > { %v5868_v40 = vadd.f32 %v2487_v17, %v2359_v10  ;;  %v5870_v63 = vpop.permute.xlu1 %1860 }
 0x286   : > { %6703 = vst [vmem:[#allocation31_spill] sm:$0xff] %v5870_v63  ;;  %v2417_v8 = vadd.f32 %v2416_v36, %v5870_v63  ;;  %v2361_v45 = vpop.f32.mrf.mxu0 }
 0x287   : > { %v2418_v35 = vpop.f32.mrf.mxu2  ;;  %v2362_v18 = vadd.f32 %v2361_v45, %v5518_v21 }
 0x288   : > { %v5881_v15 = vadd.f32 %v2545_v1, %v2417_v8  ;;  %v2419_v10 = vadd.f32 %v2418_v35, %v5879_v60  ;;  %v5891_v1 = vpop.permute.xlu0 %1870 }
 0x289   : > { %2856 = vmatmul.bf16.vlgmr.msrb.gmra.mxu0 %v5026_v58  ;;  %6704 = vst [vmem:[#allocation28_spill] sm:$0xff] %v5891_v1  ;;  %v3328_v58 = vld [vmem:[%s6439_s3 + $0x20] sm:$0xf] }
 0x28a   : > { %v2547_v17 = vpop.f32.mrf.mxu3 }
 0x28b   : > { %v5885_v52 = vadd.f32 %v2547_v17, %v2419_v10 }
 0x28c   : > { %2598 = vmatmul.bf16.vlgmr.msrb.gmra.mxu2 %v3317_v48  ;;  %v2490_v12 = vpop.f32.mrf.mxu1 }
 0x28d   : > { %v5888_v22 = vadd.f32 %v2490_v12, %v2362_v18  ;;  %v5905_v12 = vpop.permute.xlu1 %1875 }
 0x28e   : > { %v2363_v63 = vpop.f32.mrf.mxu0  ;;  %6706 = vst [vmem:[#allocation38_spill] sm:$0xff] %v5905_v12 }
 0x28f   : > { %v2421_v36 = vpop.f32.mrf.mxu2  ;;  %2727 = vmatmul.bf16.vlgmr.msrb.gmra.mxu3 %v4995_v19  ;;  %2985 = vmatmul.bf16.vlgmr.msrb.gmra.mxu1 %v3317_v48  ;;  %v2364_v8 = vadd.f32 %v2363_v63, %v5689_v38  ;;  %v3603_v19 = vld [vmem:[%s6439_s3 + $0x28] sm:$0xf0] }
 0x290   : > { %v2422_v0 = vadd.f32 %v2421_v36, %v5891_v1  ;;  %v3329_v48 = vor.u32 %v3603_v19, %v3328_v58 }
 0x292   : > { %v2550_v29 = vpop.f32.mrf.mxu3 }
 0x293   : > { %v5895_v35 = vadd.f32 %v2550_v29, %v2422_v0 }
 0x294   : > { %v2492_v45 = vpop.f32.mrf.mxu1 }
 0x295   : > { %6705 = vst [vmem:[#allocation55_spill] sm:$0xff] %v5895_v35  ;;  %v5897_v10 = vadd.f32 %v2492_v45, %v2364_v8  ;;  %v5915_v35 = vpop.permute.xlu2 %1880 }
 0x296   : > { %v2366_v63 = vpop.f32.mrf.mxu0  ;;  %6708 = vst [vmem:[#allocation36_spill] sm:$0xff] %v5915_v35 }
 0x297   : > { %v2423_v18 = vpop.f32.mrf.mxu2  ;;  %v2367_v0 = vadd.f32 %v2366_v63, %v5590_v25 }
 0x298   : > { %v2424_v17 = vadd.f32 %v2423_v18, %v5905_v12 }
 0x299   : > { %2861 = vmatmul.bf16.gmra.mxu0 %v5171_v49  ;;  %v3340_v49 = vld [vmem:[%s6439_s3 + $0x38] sm:$0xf] }
 0x29a   : > { %v2552_v36 = vpop.f32.mrf.mxu3 }
 0x29b   : > { %v5909_v29 = vadd.f32 %v2552_v36, %v2424_v17 }
 0x29c   : > { %2603 = vmatmul.bf16.gmra.mxu2 %v3329_v48  ;;  %v2495_v8 = vpop.f32.mrf.mxu1 }
 0x29d   : > { %6707 = vst [vmem:[#allocation54_spill] sm:$0xff] %v5909_v29  ;;  %v5912_v45 = vadd.f32 %v2495_v8, %v2367_v0  ;;  %v5929_v0 = vpop.permute.xlu0 %1885  ;;  %v5939_v29 = vpop.permute.xlu1 %1890 }
 0x29e   : > { %v2368_v19 = vpop.f32.mrf.mxu0  ;;  %6710 = vst [vmem:[#allocation24_spill] sm:$0xff] %v5929_v0 }
 0x29f   : > { %v2426_v1 = vpop.f32.mrf.mxu2  ;;  %2732 = vmatmul.bf16.gmra.mxu3 %v5130_v54  ;;  %2990 = vmatmul.bf16.gmra.mxu1 %v3329_v48  ;;  %v2369_v63 = vadd.f32 %v2368_v19, %v5574_v43  ;;  %v3606_v54 = vld [vmem:[%s6439_s3 + $0x40] sm:$0xf0]  ;;  %6712 = vst [vmem:[#allocation59_spill] sm:$0xff] %v5939_v29 }
 0x2a0   : > { %v2427_v58 = vadd.f32 %v2426_v1, %v5915_v35  ;;  %v3341_v1 = vor.u32 %v3606_v54, %v3340_v49 }
 0x2a2   : > { %v2555_v18 = vpop.f32.mrf.mxu3 }
 0x2a3   : > { %v5919_v17 = vadd.f32 %v2555_v18, %v2427_v58 }
 0x2a4   : > { %v2497_v36 = vpop.f32.mrf.mxu1 }
 0x2a5   : > { %6709 = vst [vmem:[#allocation53_spill] sm:$0xff] %v5919_v17  ;;  %v5921_v12 = vadd.f32 %v2497_v36, %v2369_v63 }
 0x2a6   : > { %v2371_v19 = vpop.f32.mrf.mxu0 }
 0x2a7   : > { %v2428_v48 = vpop.f32.mrf.mxu2  ;;  %v2372_v18 = vadd.f32 %v2371_v19, %v5707_v41 }
 0x2a8   : > { %v2429_v8 = vadd.f32 %v2428_v48, %v5929_v0 }
 0x2a9   : > { %2866 = vmatmul.bf16.gmra.mxu0 %v5272_v39  ;;  %v3352_v39 = vld [vmem:[%s6439_s3 + $0x50] sm:$0xf] }
 0x2aa   : > { %v2557_v58 = vpop.f32.mrf.mxu3 }
 0x2ab   : > { %v5933_v63 = vadd.f32 %v2557_v58, %v2429_v8 }
 0x2ac   : > { %2608 = vmatmul.bf16.gmra.mxu2 %v3341_v1  ;;  %v2500_v36 = vpop.f32.mrf.mxu1 }
 0x2ad   : > { %6711 = vst [vmem:[#allocation58_spill] sm:$0xff] %v5933_v63  ;;  %v5936_v35 = vadd.f32 %v2500_v36, %v2372_v18  ;;  %v5953_v18 = vpop.permute.xlu2 %1895  ;;  %v5963_v63 = vpop.permute.xlu0 %1900 }
 0x2ae   : > { %v2373_v54 = vpop.f32.mrf.mxu0  ;;  %6714 = vst [vmem:[#allocation61_spill] sm:$0xff] %v5953_v18 }
 0x2af   : > { %v2431_v17 = vpop.f32.mrf.mxu2  ;;  %2737 = vmatmul.bf16.gmra.mxu3 %v5237_v14  ;;  %2995 = vmatmul.bf16.gmra.mxu1 %v3341_v1  ;;  %v2374_v19 = vadd.f32 %v2373_v54, %v5636_v46  ;;  %v3609_v14 = vld [vmem:[%s6439_s3 + $0x58] sm:$0xf0]  ;;  %6716 = vst [vmem:[#allocation63_spill] sm:$0xff] %v5963_v63 }
 0x2b0   : > { %v2432_v49 = vadd.f32 %v2431_v17, %v5939_v29  ;;  %v3353_v17 = vor.u32 %v3609_v14, %v3352_v39 }
 0x2b2   : > { %v2560_v48 = vpop.f32.mrf.mxu3 }
 0x2b3   : > { %v5943_v8 = vadd.f32 %v2560_v48, %v2432_v49 }
 0x2b4   : > { %v2502_v58 = vpop.f32.mrf.mxu1 }
 0x2b5   : > { %6713 = vst [vmem:[#allocation60_spill] sm:$0xff] %v5943_v8  ;;  %v5945_v0 = vadd.f32 %v2502_v58, %v2374_v19 }
 0x2b6   : > { %v2376_v54 = vpop.f32.mrf.mxu0 }
 0x2b7   : > { %v2433_v1 = vpop.f32.mrf.mxu2  ;;  %v2377_v48 = vadd.f32 %v2376_v54, %v5606_v27 }
 0x2b8   : > { %v2434_v36 = vadd.f32 %v2433_v1, %v5953_v18 }
 0x2b9   : > { %2871 = vmatmul.bf16.gmra.mxu0 %v5331_v34  ;;  %v3364_v34 = vld [vmem:[%s6439_s3 + $0x68] sm:$0xf] }
 0x2ba   : > { %v2562_v49 = vpop.f32.mrf.mxu3 }
 0x2bb   : > { %v5957_v19 = vadd.f32 %v2562_v49, %v2434_v36 }
 0x2bc   : > { %2613 = vmatmul.bf16.gmra.mxu2 %v3353_v17  ;;  %v2505_v58 = vpop.f32.mrf.mxu1 }
 0x2bd   : > { %6715 = vst [vmem:[#allocation62_spill] sm:$0xff] %v5957_v19  ;;  %v5960_v29 = vadd.f32 %v2505_v58, %v2377_v48  ;;  %v5977_v48 = vpop.permute.xlu1 %1905  ;;  %v5987_v19 = vpop.permute.xlu2 %1910 }
 0x2be   : > { %v2378_v14 = vpop.f32.mrf.mxu0  ;;  %6718 = vst [vmem:[#allocation65_spill] sm:$0xff] %v5977_v48 }
 0x2bf   : > { %v2436_v8 = vpop.f32.mrf.mxu2  ;;  %2742 = vmatmul.bf16.gmra.mxu3 %v5300_v37  ;;  %3000 = vmatmul.bf16.gmra.mxu1 %v3353_v17  ;;  %v2379_v54 = vadd.f32 %v2378_v14, %v5745_v51  ;;  %v3612_v37 = vld [vmem:[%s6439_s3 + $0x70] sm:$0xf0]  ;;  %6720 = vst [vmem:[#allocation67_spill] sm:$0xff] %v5987_v19 }
 0x2c0   : > { %v2437_v39 = vadd.f32 %v2436_v8, %v5963_v63  ;;  %v3365_v8 = vor.u32 %v3612_v37, %v3364_v34 }
 0x2c2   : > { %v2565_v1 = vpop.f32.mrf.mxu3 }
 0x2c3   : > { %v5967_v36 = vadd.f32 %v2565_v1, %v2437_v39 }
 0x2c4   : > { %v2507_v49 = vpop.f32.mrf.mxu1 }
 0x2c5   : > { %6717 = vst [vmem:[#allocation64_spill] sm:$0xff] %v5967_v36  ;;  %v5969_v18 = vadd.f32 %v2507_v49, %v2379_v54 }
 0x2c6   : > { %v2381_v14 = vpop.f32.mrf.mxu0 }
 0x2c7   : > { %v2438_v17 = vpop.f32.mrf.mxu2  ;;  %v2382_v1 = vadd.f32 %v2381_v14, %v5644_v30 }
 0x2c8   : > { %v2439_v58 = vadd.f32 %v2438_v17, %v5977_v48 }
 0x2c9   : > { %2876 = vmatmul.bf16.gmra.mxu0 %v5401_v20  ;;  %v3376_v20 = vld [vmem:[%s6439_s3 + $0x80] sm:$0xf] }
 0x2ca   : > { %v2567_v39 = vpop.f32.mrf.mxu3 }
 0x2cb   : > { %v5981_v54 = vadd.f32 %v2567_v39, %v2439_v58 }
 0x2cc   : > { %2618 = vmatmul.bf16.gmra.mxu2 %v3365_v8  ;;  %v2510_v49 = vpop.f32.mrf.mxu1 }
 0x2cd   : > { %6719 = vst [vmem:[#allocation66_spill] sm:$0xff] %v5981_v54  ;;  %v5984_v63 = vadd.f32 %v2510_v49, %v2382_v1  ;;  %v6001_v1 = vpop.permute.xlu0 %1915  ;;  %v6011_v54 = vpop.permute.xlu1 %1920 }
 0x2ce   : > { %v2383_v37 = vpop.f32.mrf.mxu0  ;;  %6722 = vst [vmem:[#allocation69_spill] sm:$0xff] %v6001_v1 }
 0x2cf   : > { %v2441_v36 = vpop.f32.mrf.mxu2  ;;  %2747 = vmatmul.bf16.gmra.mxu3 %v5372_v3  ;;  %3005 = vmatmul.bf16.gmra.mxu1 %v3365_v8  ;;  %v2384_v14 = vadd.f32 %v2383_v37, %v5642_v53  ;;  %v3615_v3 = vld [vmem:[%s6439_s3 + $0x88] sm:$0xf0]  ;;  %6724 = vst [vmem:[#allocation71_spill] sm:$0xff] %v6011_v54 }
 0x2d0   : > { %v2442_v34 = vadd.f32 %v2441_v36, %v5987_v19  ;;  %v3377_v36 = vor.u32 %v3615_v3, %v3376_v20 }
 0x2d2   : > { %v2570_v17 = vpop.f32.mrf.mxu3 }
 0x2d3   : > { %v5991_v58 = vadd.f32 %v2570_v17, %v2442_v34 }
 0x2d4   : > { %v2512_v39 = vpop.f32.mrf.mxu1 }
 0x2d5   : > { %6721 = vst [vmem:[#allocation68_spill] sm:$0xff] %v5991_v58  ;;  %v5993_v48 = vadd.f32 %v2512_v39, %v2384_v14 }
 0x2d6   : > { %v2386_v37 = vpop.f32.mrf.mxu0 }
 0x2d7   : > { %v2443_v8 = vpop.f32.mrf.mxu2  ;;  %v2387_v17 = vadd.f32 %v2386_v37, %v5763_v59 }
 0x2d8   : > { %v2444_v49 = vadd.f32 %v2443_v8, %v6001_v1 }
 0x2d9   : > { %2881 = vmatmul.bf16.gmra.mxu0 %v5499_v33  ;;  %v3388_v33 = vld [vmem:[%s6439_s3 + $0x98] sm:$0xf] }
 0x2da   : > { %v2572_v34 = vpop.f32.mrf.mxu3 }
 0x2db   : > { %v6005_v14 = vadd.f32 %v2572_v34, %v2444_v49 }
 0x2dc   : > { %2623 = vmatmul.bf16.gmra.mxu2 %v3377_v36  ;;  %v2515_v39 = vpop.f32.mrf.mxu1 }
 0x2dd   : > { %6723 = vst [vmem:[#allocation70_spill] sm:$0xff] %v6005_v14  ;;  %v6008_v19 = vadd.f32 %v2515_v39, %v2387_v17  ;;  %v6025_v17 = vpop.permute.xlu2 %1925  ;;  %v6035_v14 = vpop.permute.xlu0 %1930 }
 0x2de   : > { %v2388_v3 = vpop.f32.mrf.mxu0  ;;  %6726 = vst [vmem:[#allocation73_spill] sm:$0xff] %v6025_v17 }
 0x2df   : > { %v2446_v58 = vpop.f32.mrf.mxu2  ;;  %2752 = vmatmul.bf16.gmra.mxu3 %v5483_v56  ;;  %3010 = vmatmul.bf16.gmra.mxu1 %v3377_v36  ;;  %v2389_v37 = vadd.f32 %v2388_v3, %v5687_v7  ;;  %v3618_v56 = vld [vmem:[%s6439_s3 + $0xa0] sm:$0xf0]  ;;  %6727 = vst [vmem:[#allocation74_spill] sm:$0xff] %v6035_v14 }
 0x2e0   : > { %v2447_v20 = vadd.f32 %v2446_v58, %v6011_v54  ;;  %v3389_v58 = vor.u32 %v3618_v56, %v3388_v33 }
 0x2e2   : > { %v2575_v8 = vpop.f32.mrf.mxu3 }
 0x2e3   : > { %v6015_v49 = vadd.f32 %v2575_v8, %v2447_v20 }
 0x2e4   : > { %v2517_v34 = vpop.f32.mrf.mxu1 }
 0x2e5   : > { %6725 = vst [vmem:[#allocation72_spill] sm:$0xff] %v6015_v49  ;;  %v6017_v1 = vadd.f32 %v2517_v34, %v2389_v37 }
 0x2e6   : > { %v2391_v3 = vpop.f32.mrf.mxu0 }
 0x2e7   : > { %v2448_v36 = vpop.f32.mrf.mxu2  ;;  %v2392_v8 = vadd.f32 %v2391_v3, %v5677_v6 }
 0x2e8   : > { %v2449_v39 = vadd.f32 %v2448_v36, %v6025_v17 }
 0x2e9   : > { %2886 = vmatmul.bf16.gmra.mxu0 %v5570_v61  ;;  %v3400_v61 = vld [vmem:[%s6439_s3 + $0xb0] sm:$0xf] }
 0x2ea   : > { %v2577_v20 = vpop.f32.mrf.mxu3 }
 0x2eb   : > { %v6029_v37 = vadd.f32 %v2577_v20, %v2449_v39 }
 0x2ec   : > { %2628 = vmatmul.bf16.gmra.mxu2 %v3389_v58  ;;  %v2520_v34 = vpop.f32.mrf.mxu1 }
 0x2ed   : > { %v6032_v54 = vadd.f32 %v2520_v34, %v2392_v8  ;;  %v6049_v8 = vpop.permute.xlu1 %1935 }
 0x2ee   : > { %v2393_v56 = vpop.f32.mrf.mxu0  ;;  %6729 = vst [vmem:[#allocation76_spill] sm:$0xff] %v6049_v8 }
 0x2ef   : > { %v2451_v49 = vpop.f32.mrf.mxu2  ;;  %2757 = vmatmul.bf16.gmra.mxu3 %v5553_v44  ;;  %3015 = vmatmul.bf16.gmra.mxu1 %v3389_v58  ;;  %v2394_v3 = vadd.f32 %v2393_v56, %v5799_v57  ;;  %v3621_v44 = vld [vmem:[%s6439_s3 + $0xb8] sm:$0xf0] }
 0x2f0   : > { %v2452_v33 = vadd.f32 %v2451_v49, %v6035_v14  ;;  %v3401_v49 = vor.u32 %v3621_v44, %v3400_v61  ;;  %v6059_v61 = vpop.permute.xlu2 %1940 }
 0x2f1   : > { %6731 = vst [vmem:[#allocation78_spill] sm:$0xff] %v6059_v61 }
 0x2f2   : > { %v2580_v36 = vpop.f32.mrf.mxu3 }
 0x2f3   : > { %v6039_v39 = vadd.f32 %v2580_v36, %v2452_v33 }
 0x2f4   : > { %v2522_v20 = vpop.f32.mrf.mxu1 }
 0x2f5   : > { %6728 = vst [vmem:[#allocation75_spill] sm:$0xff] %v6039_v39  ;;  %v6041_v17 = vadd.f32 %v2522_v20, %v2394_v3 }
 0x2f6   : > { %v2396_v56 = vpop.f32.mrf.mxu0 }
 0x2f7   : > { %v2453_v58 = vpop.f32.mrf.mxu2  ;;  %v2397_v36 = vadd.f32 %v2396_v56, %v5705_v28 }
 0x2f8   : > { %v2454_v34 = vadd.f32 %v2453_v58, %v6049_v8 }
 0x2f9   : > { %2891 = vmatmul.bf16.gmra.mxu0 %v5630_v55 }
 0x2fa   : > { %v2582_v33 = vpop.f32.mrf.mxu3 }
 0x2fb   : > { %v6053_v3 = vadd.f32 %v2582_v33, %v2454_v34 }
 0x2fc   : > { %2633 = vmatmul.bf16.gmra.mxu2 %v3401_v49  ;;  %v2525_v20 = vpop.f32.mrf.mxu1 }
 0x2fd   : > { %6730 = vst [vmem:[#allocation77_spill] sm:$0xff] %v6053_v3  ;;  %v6056_v14 = vadd.f32 %v2525_v20, %v2397_v36  ;;  %v3412_v36 = vld [vmem:[%s6439_s3 + $0xc8] sm:$0xf] }
 0x2fe   : > { %v2398_v58 = vpop.f32.mrf.mxu0 }
 0x2ff   : > { %v2456_v39 = vpop.f32.mrf.mxu2  ;;  %2762 = vmatmul.bf16.gmra.mxu3 %v5617_v24  ;;  %3020 = vmatmul.bf16.gmra.mxu1 %v3401_v49  ;;  %v2399_v34 = vadd.f32 %v2398_v58, %v5698_v42  ;;  %v3624_v24 = vld [vmem:[%s6439_s3 + $0xd0] sm:$0xf0] }
 0x300   : > { %v2457_v44 = vadd.f32 %v2456_v39, %v6059_v61  ;;  %v6073_v39 = vpop.permute.xlu0 %1945  ;;  %v3413_v20 = vor.u32 %v3624_v24, %v3412_v36 }
 0x301   : > { %6733 = vst [vmem:[#allocation80_spill] sm:$0xff] %v6073_v39 }
 0x302   : > { %v2585_v56 = vpop.f32.mrf.mxu3 }
 0x303   : > { %v6063_v33 = vadd.f32 %v2585_v56, %v2457_v44 }
 0x304   : > { %v2527_v8 = vpop.f32.mrf.mxu1 }
 0x305   : > { %6732 = vst [vmem:[#allocation79_spill] sm:$0xff] %v6063_v33  ;;  %v6065_v55 = vadd.f32 %v2527_v8, %v2399_v34 }
 0x306   : > { %v2857_v44 = vpop.f32.mrf.mxu0 }
 0x307   : > { %v2458_v49 = vpop.f32.mrf.mxu2 }
 0x308   : > { %v2459_v58 = vadd.f32 %v2458_v49, %v6073_v39 }
 0x309   : > { %2896 = vmatmul.bf16.gmra.mxu0 %v5679_v9  ;;  %v3424_v9 = vld [vmem:[%s6439_s3 + $0xe0] sm:$0xf] }
 0x30a   : > { %v2587_v56 = vpop.f32.mrf.mxu3 }
 0x30b   : > { %v6077_v61 = vadd.f32 %v2587_v56, %v2459_v58 }
 0x30c   : > { %2638 = vmatmul.bf16.gmra.mxu2 %v3413_v20  ;;  %v2986_v8 = vpop.f32.mrf.mxu1 }
 0x30d   : > { %6734 = vst [vmem:[#allocation81_spill] sm:$0xff] %v6077_v61 }
 0x30e   : > { %v2859_v36 = vpop.f32.mrf.mxu0 }
 0x30f   : > { %v2599_v34 = vpop.f32.mrf.mxu2  ;;  %2767 = vmatmul.bf16.gmra.mxu3 %v5664_v11  ;;  %3025 = vmatmul.bf16.gmra.mxu1 %v3413_v20  ;;  %v3627_v11 = vld [vmem:[%s6439_s3 + $0xe8] sm:$0xf0] }
 0x310   : > { %v2600_v33 = vadd.f32 %v2599_v34, %v5685_v32  ;;  %v3425_v39 = vor.u32 %v3627_v11, %v3424_v9  ;;  %v6736_v11 = vld [vmem:[#allocation17_spill] sm:$0xff] }
 0x312   : > { %3106 = vst [vmem:[%s6084_s11] sm:$0xff] %v2600_v33  ;;  %v2728_v24 = vpop.f32.mrf.mxu3 }
 0x313   : > { %v2729_v49 = vadd.f32 %v2728_v24, %v5595_v62 }
 0x314   : > { %v2988_v58 = vpop.f32.mrf.mxu1 }
 0x315   : > { %v2858_v56 = vadd.f32 %v2857_v44, %v2729_v49 }
 0x316   : > { %v2862_v33 = vpop.f32.mrf.mxu0 }
 0x317   : > { %v2601_v32 = vpop.f32.mrf.mxu2  ;;  %v2987_v20 = vadd.f32 %v2986_v8, %v2858_v56 }
 0x318   : > { %v2602_v34 = vadd.f32 %v2601_v32, %v5700_v2  ;;  %v6735_v2 = vld [vmem:[#allocation32_spill] sm:$0xff] }
 0x319   : > { %3107 = vst [vmem:[%s6084_s11 + $0x8] sm:$0xff] %v2987_v20  ;;  %2901 = vmatmul.bf16.gmra.mxu0 %v5735_v13  ;;  %v3436_v13 = vld [vmem:[%s6439_s3 + $0xf8] sm:$0xf] }
 0x31a   : > { %3108 = vst [vmem:[%s6084_s11 + $0x10] sm:$0xff] %v2602_v34  ;;  %v2730_v62 = vpop.f32.mrf.mxu3 }
 0x31b   : > { %v2731_v44 = vadd.f32 %v2730_v62, %v5506_v26 }
 0x31c   : > { %2643 = vmatmul.bf16.gmra.mxu2 %v3425_v39  ;;  %v2991_v24 = vpop.f32.mrf.mxu1 }
 0x31d   : > { %v2860_v49 = vadd.f32 %v2859_v36, %v2731_v44 }
 0x31e   : > { %v2864_v56 = vpop.f32.mrf.mxu0 }
 0x31f   : > { %v2604_v61 = vpop.f32.mrf.mxu2  ;;  %v2989_v3 = vadd.f32 %v2988_v58, %v2860_v49  ;;  %2772 = vmatmul.bf16.gmra.mxu3 %v5722_v23  ;;  %3030 = vmatmul.bf16.gmra.mxu1 %v3425_v39  ;;  %v3630_v23 = vld [vmem:[%s6439_s3 + $0x100] sm:$0xf0] }
 0x320   : > { %v2605_v8 = vadd.f32 %v2604_v61, %v6735_v2  ;;  %v6737_v61 = vld [vmem:[#allocation14_spill] sm:$0xff]  ;;  %v6739_v2 = vld [vmem:[#allocation13_spill] sm:$0xff] }
 0x321   : > { %3109 = vst [vmem:[%s6084_s11 + $0x18] sm:$0xff] %v2989_v3  ;;  %v3437_v3 = vor.u32 %v3630_v23, %v3436_v13 }
 0x322   : > { %3110 = vst [vmem:[%s6084_s11 + $0x20] sm:$0xff] %v2605_v8  ;;  %v2733_v9 = vpop.f32.mrf.mxu3 }
 0x323   : > { %v2734_v26 = vadd.f32 %v2733_v9, %v6736_v11 }
 0x324   : > { %v2993_v32 = vpop.f32.mrf.mxu1 }
 0x325   : > { %v2863_v20 = vadd.f32 %v2862_v33, %v2734_v26  ;;  %v6738_v33 = vld [vmem:[#allocation44_spill] sm:$0xff]  ;;  %v6740_v26 = vld [vmem:[#allocation7_spill] sm:$0xff] }
 0x326   : > { %v2867_v34 = vpop.f32.mrf.mxu0 }
 0x327   : > { %v2606_v39 = vpop.f32.mrf.mxu2  ;;  %v2992_v36 = vadd.f32 %v2991_v24, %v2863_v20  ;;  %v6741_v24 = vld [vmem:[#allocation11_spill] sm:$0xff] }
 0x328   : > { %v2607_v58 = vadd.f32 %v2606_v39, %v6737_v61  ;;  %v6742_v39 = vld [vmem:[#allocation51_spill] sm:$0xff] }
 0x329   : > { %3111 = vst [vmem:[%s6084_s11 + $0x28] sm:$0xff] %v2992_v36  ;;  %2906 = vmatmul.bf16.gmra.mxu0 %v6739_v2 }
 0x32a   : > { %3112 = vst [vmem:[%s6084_s11 + $0x30] sm:$0xff] %v2607_v58  ;;  %v2735_v62 = vpop.f32.mrf.mxu3 }
 0x32b   : > { %v2736_v44 = vadd.f32 %v2735_v62, %v6738_v33  ;;  %v6743_v33 = vld [vmem:[#allocation35_spill] sm:$0xff] }
 0x32c   : > { %2648 = vmatmul.bf16.gmra.mxu2 %v3437_v3  ;;  %v2996_v49 = vpop.f32.mrf.mxu1 }
 0x32d   : > { %v2865_v8 = vadd.f32 %v2864_v56, %v2736_v44  ;;  %v3448_v56 = vld [vmem:[%s6439_s3 + $0x110] sm:$0xf] }
 0x32e   : > { %v2869_v13 = vpop.f32.mrf.mxu0 }
 0x32f   : > { %v2609_v9 = vpop.f32.mrf.mxu2  ;;  %v2994_v11 = vadd.f32 %v2993_v32, %v2865_v8  ;;  %2777 = vmatmul.bf16.gmra.mxu3 %v6740_v26  ;;  %3035 = vmatmul.bf16.gmra.mxu1 %v3437_v3  ;;  %v3633_v32 = vld [vmem:[%s6439_s3 + $0x118] sm:$0xf0] }
 0x330   : > { %v2610_v20 = vadd.f32 %v2609_v9, %v6741_v24  ;;  %v3449_v2 = vor.u32 %v3633_v32, %v3448_v56 }
 0x331   : > { %3113 = vst [vmem:[%s6084_s11 + $0x38] sm:$0xff] %v2994_v11 }
 0x332   : > { %3114 = vst [vmem:[%s6084_s11 + $0x40] sm:$0xff] %v2610_v20  ;;  %v2738_v23 = vpop.f32.mrf.mxu3 }
 0x333   : > { %v2739_v36 = vadd.f32 %v2738_v23, %v6742_v39 }
 0x334   : > { %v2998_v61 = vpop.f32.mrf.mxu1 }
 0x335   : > { %v2868_v58 = vadd.f32 %v2867_v34, %v2739_v36  ;;  %v6744_v34 = vld [vmem:[#allocation49_spill] sm:$0xff] }
 0x336   : > { %v2872_v8 = vpop.f32.mrf.mxu0 }
 0x337   : > { %v2611_v3 = vpop.f32.mrf.mxu2  ;;  %v2997_v62 = vadd.f32 %v2996_v49, %v2868_v58 }
 0x338   : > { %v2612_v44 = vadd.f32 %v2611_v3, %v6743_v33 }
 0x339   : > { %3115 = vst [vmem:[%s6084_s11 + $0x48] sm:$0xff] %v2997_v62  ;;  %2911 = vmatmul.bf16.gmra.mxu0 %v5852_v4  ;;  %v3460_v4 = vld [vmem:[%s6439_s3 + $0x128] sm:$0xf] }
 0x33a   : > { %3116 = vst [vmem:[%s6084_s11 + $0x50] sm:$0xff] %v2612_v44  ;;  %v2740_v9 = vpop.f32.mrf.mxu3 }
 0x33b   : > { %v2741_v11 = vadd.f32 %v2740_v9, %v6744_v34 }
 0x33c   : > { %2653 = vmatmul.bf16.gmra.mxu2 %v3449_v2  ;;  %v3001_v26 = vpop.f32.mrf.mxu1 }
 0x33d   : > { %v2870_v24 = vadd.f32 %v2869_v13, %v2741_v11  ;;  %v6746_v11 = vld [vmem:[#allocation16_spill] sm:$0xff] }
 0x33e   : > { %v2874_v39 = vpop.f32.mrf.mxu0 }
 0x33f   : > { %v2614_v20 = vpop.f32.mrf.mxu2  ;;  %v2999_v23 = vadd.f32 %v2998_v61, %v2870_v24  ;;  %2782 = vmatmul.bf16.gmra.mxu3 %v5832_v5  ;;  %3040 = vmatmul.bf16.gmra.mxu1 %v3449_v2  ;;  %v3636_v5 = vld [vmem:[%s6439_s3 + $0x130] sm:$0xf0]  ;;  %v6745_v2 = vld [vmem:[#allocation20_spill] sm:$0xff] }
 0x340   : > { %v2615_v49 = vadd.f32 %v2614_v20, %v5858_v31  ;;  %v3461_v3 = vor.u32 %v3636_v5, %v3460_v4 }
 0x341   : > { %3117 = vst [vmem:[%s6084_s11 + $0x58] sm:$0xff] %v2999_v23 }
 0x342   : > { %3118 = vst [vmem:[%s6084_s11 + $0x60] sm:$0xff] %v2615_v49  ;;  %v2743_v36 = vpop.f32.mrf.mxu3  ;;  %v3472_v49 = vld [vmem:[%s6439_s3 + $0x140] sm:$0xf] }
 0x343   : > { %v2744_v58 = vadd.f32 %v2743_v36, %v5649_v16 }
 0x344   : > { %v3003_v56 = vpop.f32.mrf.mxu1 }
 0x345   : > { %v2873_v32 = vadd.f32 %v2872_v8, %v2744_v58 }
 0x346   : > { %v2877_v62 = vpop.f32.mrf.mxu0 }
 0x347   : > { %v2616_v13 = vpop.f32.mrf.mxu2  ;;  %v3002_v61 = vadd.f32 %v3001_v26, %v2873_v32 }
 0x348   : > { %v2617_v31 = vadd.f32 %v2616_v13, %v5868_v40  ;;  %v6747_v13 = vld [vmem:[#allocation45_spill] sm:$0xff] }
 0x349   : > { %3119 = vst [vmem:[%s6084_s11 + $0x68] sm:$0xff] %v3002_v61  ;;  %2916 = vmatmul.bf16.gmra.mxu0 %v6745_v2 }
 0x34a   : > { %3120 = vst [vmem:[%s6084_s11 + $0x70] sm:$0xff] %v2617_v31  ;;  %v2745_v16 = vpop.f32.mrf.mxu3 }
 0x34b   : > { %v2746_v33 = vadd.f32 %v2745_v16, %v5578_v50 }
 0x34c   : > { %2658 = vmatmul.bf16.gmra.mxu2 %v3461_v3  ;;  %v3006_v44 = vpop.f32.mrf.mxu1 }
 0x34d   : > { %v2875_v8 = vadd.f32 %v2874_v39, %v2746_v33  ;;  %v3639_v39 = vld [vmem:[%s6439_s3 + $0x148] sm:$0xf0] }
 0x34e   : > { %v2879_v26 = vpop.f32.mrf.mxu0 }
 0x34f   : > { %v2619_v9 = vpop.f32.mrf.mxu2  ;;  %v3004_v34 = vadd.f32 %v3003_v56, %v2875_v8  ;;  %2787 = vmatmul.bf16.gmra.mxu3 %v6746_v11  ;;  %3045 = vmatmul.bf16.gmra.mxu1 %v3461_v3  ;;  %v3473_v56 = vor.u32 %v3639_v39, %v3472_v49  ;;  %v3484_v8 = vld [vmem:[%s6439_s3 + $0x158] sm:$0xf] }
 0x350   : > { %v2620_v40 = vadd.f32 %v2619_v9, %v5888_v22  ;;  %v3642_v9 = vld [vmem:[%s6439_s3 + $0x160] sm:$0xf0] }
 0x351   : > { %3121 = vst [vmem:[%s6084_s11 + $0x78] sm:$0xff] %v3004_v34 }
 0x352   : > { %3122 = vst [vmem:[%s6084_s11 + $0x80] sm:$0xff] %v2620_v40  ;;  %v2748_v24 = vpop.f32.mrf.mxu3  ;;  %v3485_v40 = vor.u32 %v3642_v9, %v3484_v8 }
 0x353   : > { %v2749_v50 = vadd.f32 %v2748_v24, %v5518_v21 }
 0x354   : > { %v3008_v20 = vpop.f32.mrf.mxu1 }
 0x355   : > { %v2878_v23 = vadd.f32 %v2877_v62, %v2749_v50  ;;  %v6748_v62 = vld [vmem:[#allocation10_spill] sm:$0xff] }
 0x356   : > { %v2882_v32 = vpop.f32.mrf.mxu0 }
 0x357   : > { %v2621_v36 = vpop.f32.mrf.mxu2  ;;  %v3007_v58 = vadd.f32 %v3006_v44, %v2878_v23 }
 0x358   : > { %v2622_v22 = vadd.f32 %v2621_v36, %v5897_v10  ;;  %v6750_v36 = vld [vmem:[#allocation52_spill] sm:$0xff] }
 0x359   : > { %3123 = vst [vmem:[%s6084_s11 + $0x88] sm:$0xff] %v3007_v58  ;;  %2921 = vmatmul.bf16.gmra.mxu0 %v6747_v13 }
 0x35a   : > { %3124 = vst [vmem:[%s6084_s11 + $0x90] sm:$0xff] %v2622_v22  ;;  %v2750_v21 = vpop.f32.mrf.mxu3 }
 0x35b   : > { %v2751_v4 = vadd.f32 %v2750_v21, %v5689_v38  ;;  %v3496_v21 = vld [vmem:[%s6439_s3 + $0x170] sm:$0xf] }
 0x35c   : > { %2663 = vmatmul.bf16.gmra.mxu2 %v3473_v56  ;;  %v3011_v5 = vpop.f32.mrf.mxu1 }
 0x35d   : > { %v2880_v61 = vadd.f32 %v2879_v26, %v2751_v4  ;;  %v3645_v4 = vld [vmem:[%s6439_s3 + $0x178] sm:$0xf0] }
 0x35e   : > { %v2884_v16 = vpop.f32.mrf.mxu0 }
 0x35f   : > { %v2624_v31 = vpop.f32.mrf.mxu2  ;;  %v3009_v3 = vadd.f32 %v3008_v20, %v2880_v61  ;;  %2792 = vmatmul.bf16.gmra.mxu3 %v6748_v62  ;;  %3050 = vmatmul.bf16.gmra.mxu1 %v3473_v56  ;;  %v6749_v20 = vld [vmem:[#allocation19_spill] sm:$0xff]  ;;  %v3497_v61 = vor.u32 %v3645_v4, %v3496_v21  ;;  %v3651_v21 = vld [vmem:[%s6439_s3 + $0x1a8] sm:$0xf0] }
 0x360   : > { %v2625_v10 = vadd.f32 %v2624_v31, %v5912_v45 }
 0x361   : > { %3125 = vst [vmem:[%s6084_s11 + $0x98] sm:$0xff] %v3009_v3 }
 0x362   : > { %3126 = vst [vmem:[%s6084_s11 + $0xa0] sm:$0xff] %v2625_v10  ;;  %v2753_v33 = vpop.f32.mrf.mxu3  ;;  %v6751_v10 = vld [vmem:[#allocation29_spill] sm:$0xff] }
 0x363   : > { %v2754_v38 = vadd.f32 %v2753_v33, %v5590_v25 }
 0x364   : > { %v3013_v44 = vpop.f32.mrf.mxu1 }
 0x365   : > { %v2883_v2 = vadd.f32 %v2882_v32, %v2754_v38 }
 0x366   : > { %v2887_v26 = vpop.f32.mrf.mxu0 }
 0x367   : > { %v2626_v34 = vpop.f32.mrf.mxu2  ;;  %v3012_v11 = vadd.f32 %v3011_v5, %v2883_v2 }
 0x368   : > { %v2627_v45 = vadd.f32 %v2626_v34, %v5921_v12 }
 0x369   : > { %3127 = vst [vmem:[%s6084_s11 + $0xa8] sm:$0xff] %v3012_v11  ;;  %2926 = vmatmul.bf16.gmra.mxu0 %v6749_v20  ;;  %v3508_v11 = vld [vmem:[%s6439_s3 + $0x188] sm:$0xf] }
 0x36a   : > { %3128 = vst [vmem:[%s6084_s11 + $0xb0] sm:$0xff] %v2627_v45  ;;  %v2755_v25 = vpop.f32.mrf.mxu3  ;;  %v3648_v45 = vld [vmem:[%s6439_s3 + $0x190] sm:$0xf0] }
 0x36b   : > { %v2756_v24 = vadd.f32 %v2755_v25, %v5574_v43  ;;  %v3509_v25 = vor.u32 %v3648_v45, %v3508_v11 }
 0x36c   : > { %2668 = vmatmul.bf16.gmra.mxu2 %v3485_v40  ;;  %v3016_v50 = vpop.f32.mrf.mxu1 }
 0x36d   : > { %v2885_v23 = vadd.f32 %v2884_v16, %v2756_v24 }
 0x36e   : > { %v2889_v58 = vpop.f32.mrf.mxu0 }
 0x36f   : > { %v2629_v49 = vpop.f32.mrf.mxu2  ;;  %v3014_v39 = vadd.f32 %v3013_v44, %v2885_v23  ;;  %2797 = vmatmul.bf16.gmra.mxu3 %v6750_v36  ;;  %3055 = vmatmul.bf16.gmra.mxu1 %v3485_v40  ;;  %v6752_v44 = vld [vmem:[#allocation21_spill] sm:$0xff] }
 0x370   : > { %v2630_v12 = vadd.f32 %v2629_v49, %v5936_v35  ;;  %v6753_v23 = vld [vmem:[#allocation9_spill] sm:$0xff] }
 0x371   : > { %3129 = vst [vmem:[%s6084_s11 + $0xb8] sm:$0xff] %v3014_v39 }
 0x372   : > { %3130 = vst [vmem:[%s6084_s11 + $0xc0] sm:$0xff] %v2630_v12  ;;  %v2758_v22 = vpop.f32.mrf.mxu3  ;;  %v6754_v12 = vld [vmem:[#allocation8_spill] sm:$0xff] }
 0x373   : > { %v2759_v43 = vadd.f32 %v2758_v22, %v5707_v41 }
 0x374   : > { %v3018_v56 = vpop.f32.mrf.mxu1 }
 0x375   : > { %v2888_v32 = vadd.f32 %v2887_v26, %v2759_v43 }
 0x376   : > { %v2892_v31 = vpop.f32.mrf.mxu0 }
 0x377   : > { %v2631_v5 = vpop.f32.mrf.mxu2  ;;  %v3017_v13 = vadd.f32 %v3016_v50, %v2888_v32  ;;  %v3520_v32 = vld [vmem:[%s6439_s3 + $0x1a0] sm:$0xf] }
 0x378   : > { %v2632_v35 = vadd.f32 %v2631_v5, %v5945_v0 }
 0x379   : > { %3131 = vst [vmem:[%s6084_s11 + $0xc8] sm:$0xff] %v3017_v13  ;;  %2931 = vmatmul.bf16.gmra.mxu0 %v6751_v10  ;;  %v3521_v13 = vor.u32 %v3651_v21, %v3520_v32 }
 0x37a   : > { %3132 = vst [vmem:[%s6084_s11 + $0xd0] sm:$0xff] %v2632_v35  ;;  %v2760_v41 = vpop.f32.mrf.mxu3 }
 0x37b   : > { %v2761_v3 = vadd.f32 %v2760_v41, %v5636_v46  ;;  %v6755_v41 = vld [vmem:[#allocation47_spill] sm:$0xff] }
 0x37c   : > { %2673 = vmatmul.bf16.gmra.mxu2 %v3497_v61  ;;  %v3021_v62 = vpop.f32.mrf.mxu1 }
 0x37d   : > { %v2890_v16 = vadd.f32 %v2889_v58, %v2761_v3 }
 0x37e   : > { %v2894_v2 = vpop.f32.mrf.mxu0 }
 0x37f   : > { %v2634_v33 = vpop.f32.mrf.mxu2  ;;  %v3019_v38 = vadd.f32 %v3018_v56, %v2890_v16  ;;  %2802 = vmatmul.bf16.gmra.mxu3 %v6752_v44  ;;  %3060 = vmatmul.bf16.gmra.mxu1 %v3497_v61  ;;  %v6756_v16 = vld [vmem:[#allocation50_spill] sm:$0xff] }
 0x380   : > { %v2635_v0 = vadd.f32 %v2634_v33, %v5960_v29 }
 0x381   : > { %3133 = vst [vmem:[%s6084_s11 + $0xd8] sm:$0xff] %v3019_v38 }
 0x382   : > { %3134 = vst [vmem:[%s6084_s11 + $0xe0] sm:$0xff] %v2635_v0  ;;  %v2763_v8 = vpop.f32.mrf.mxu3 }
 0x383   : > { %v2764_v46 = vadd.f32 %v2763_v8, %v5606_v27  ;;  %v3654_v8 = vld [vmem:[%s6439_s3 + $0x1c0] sm:$0xf0] }
 0x384   : > { %v3023_v9 = vpop.f32.mrf.mxu1 }
 0x385   : > { %v2893_v34 = vadd.f32 %v2892_v31, %v2764_v46 }
 0x386   : > { %v2897_v24 = vpop.f32.mrf.mxu0 }
 0x387   : > { %v2636_v40 = vpop.f32.mrf.mxu2  ;;  %v3022_v26 = vadd.f32 %v3021_v62, %v2893_v34 }
 0x388   : > { %v2637_v29 = vadd.f32 %v2636_v40, %v5969_v18 }
 0x389   : > { %3135 = vst [vmem:[%s6084_s11 + $0xe8] sm:$0xff] %v3022_v26  ;;  %2936 = vmatmul.bf16.gmra.mxu0 %v6753_v23  ;;  %v6757_v26 = vld [vmem:[#allocation6_spill] sm:$0xff] }
 0x38a   : > { %3136 = vst [vmem:[%s6084_s11 + $0xf0] sm:$0xff] %v2637_v29  ;;  %v2765_v27 = vpop.f32.mrf.mxu3 }
 0x38b   : > { %v2766_v50 = vadd.f32 %v2765_v27, %v5745_v51  ;;  %v6758_v27 = vld [vmem:[#allocation26_spill] sm:$0xff] }
 0x38c   : > { %2678 = vmatmul.bf16.gmra.mxu2 %v3509_v25  ;;  %v3026_v20 = vpop.f32.mrf.mxu1 }
 0x38d   : > { %v2895_v49 = vadd.f32 %v2894_v2, %v2766_v50  ;;  %v3532_v2 = vld [vmem:[%s6439_s3 + $0x1b8] sm:$0xf] }
 0x38e   : > { %v2899_v58 = vpop.f32.mrf.mxu0  ;;  %v3533_v34 = vor.u32 %v3654_v8, %v3532_v2 }
 0x38f   : > { %v2639_v39 = vpop.f32.mrf.mxu2  ;;  %v3024_v36 = vadd.f32 %v3023_v9, %v2895_v49  ;;  %2807 = vmatmul.bf16.gmra.mxu3 %v6754_v12  ;;  %3065 = vmatmul.bf16.gmra.mxu1 %v3509_v25 }
 0x390   : > { %v2640_v18 = vadd.f32 %v2639_v39, %v5984_v63  ;;  %v3544_v39 = vld [vmem:[%s6439_s3 + $0x1d0] sm:$0xf] }
 0x391   : > { %3137 = vst [vmem:[%s6084_s11 + $0xf8] sm:$0xff] %v3024_v36  ;;  %v3657_v36 = vld [vmem:[%s6439_s3 + $0x1d8] sm:$0xf0] }
 0x392   : > { %3138 = vst [vmem:[%s6084_s11 + $0x100] sm:$0xff] %v2640_v18  ;;  %v2768_v22 = vpop.f32.mrf.mxu3 }
 0x393   : > { %v2769_v51 = vadd.f32 %v2768_v22, %v5644_v30 }
 0x394   : > { %v3028_v43 = vpop.f32.mrf.mxu1 }
 0x395   : > { %v2898_v56 = vadd.f32 %v2897_v24, %v2769_v51 }
 0x396   : > { %v2902_v35 = vpop.f32.mrf.mxu0 }
 0x397   : > { %v2641_v4 = vpop.f32.mrf.mxu2  ;;  %v3027_v5 = vadd.f32 %v3026_v20, %v2898_v56  ;;  %v6759_v56 = vld [vmem:[#allocation25_spill] sm:$0xff] }
 0x398   : > { %v2642_v63 = vadd.f32 %v2641_v4, %v5993_v48 }
 0x399   : > { %3139 = vst [vmem:[%s6084_s11 + $0x108] sm:$0xff] %v3027_v5  ;;  %2941 = vmatmul.bf16.gmra.mxu0 %v6755_v41  ;;  %v6760_v5 = vld [vmem:[#allocation27_spill] sm:$0xff] }
 0x39a   : > { %3140 = vst [vmem:[%s6084_s11 + $0x110] sm:$0xff] %v2642_v63  ;;  %v2770_v30 = vpop.f32.mrf.mxu3 }
 0x39b   : > { %v2771_v61 = vadd.f32 %v2770_v30, %v5642_v53 }
 0x39c   : > { %2683 = vmatmul.bf16.gmra.mxu2 %v3521_v13  ;;  %v3031_v31 = vpop.f32.mrf.mxu1 }
 0x39d   : > { %v2900_v3 = vadd.f32 %v2899_v58, %v2771_v61  ;;  %v3545_v58 = vor.u32 %v3657_v36, %v3544_v39  ;;  %v3556_v61 = vld [vmem:[%s6439_s3 + $0x1e8] sm:$0xf]  ;;  %v6768_v39 = vld [vmem:[#allocation5_spill] sm:$0xff] }
 0x39e   : > { %v2904_v33 = vpop.f32.mrf.mxu0 }
 0x39f   : > { %v2644_v62 = vpop.f32.mrf.mxu2  ;;  %v3029_v10 = vadd.f32 %v3028_v43, %v2900_v3  ;;  %2812 = vmatmul.bf16.gmra.mxu3 %v6756_v16  ;;  %3070 = vmatmul.bf16.gmra.mxu1 %v3521_v13 }
 0x3a0   : > { %v2645_v48 = vadd.f32 %v2644_v62, %v6008_v19 }
 0x3a1   : > { %3141 = vst [vmem:[%s6084_s11 + $0x118] sm:$0xff] %v3029_v10 }
 0x3a2   : > { %3142 = vst [vmem:[%s6084_s11 + $0x120] sm:$0xff] %v2645_v48  ;;  %v2773_v38 = vpop.f32.mrf.mxu3 }
 0x3a3   : > { %v2774_v53 = vadd.f32 %v2773_v38, %v5763_v59 }
 0x3a4   : > { %v3033_v44 = vpop.f32.mrf.mxu1 }
 0x3a5   : > { %v2903_v0 = vadd.f32 %v2902_v35, %v2774_v53 }
 0x3a6   : > { %v2907_v11 = vpop.f32.mrf.mxu0 }
 0x3a7   : > { %v2646_v46 = vpop.f32.mrf.mxu2  ;;  %v3032_v9 = vadd.f32 %v3031_v31, %v2903_v0  ;;  %v3660_v31 = vld [vmem:[%s6439_s3 + $0x1f0] sm:$0xf0] }
 0x3a8   : > { %v2647_v19 = vadd.f32 %v2646_v46, %v6017_v1  ;;  %v3557_v62 = vor.u32 %v3660_v31, %v3556_v61  ;;  %v6762_v0 = vld [vmem:[#allocation23_spill] sm:$0xff]  ;;  %v6763_v46 = vld [vmem:[#allocation37_spill] sm:$0xff] }
 0x3a9   : > { %3143 = vst [vmem:[%s6084_s11 + $0x128] sm:$0xff] %v3032_v9  ;;  %2946 = vmatmul.bf16.gmra.mxu0 %v6757_v26 }
 0x3aa   : > { %3144 = vst [vmem:[%s6084_s11 + $0x130] sm:$0xff] %v2647_v19  ;;  %v2775_v59 = vpop.f32.mrf.mxu3 }
 0x3ab   : > { %v2776_v45 = vadd.f32 %v2775_v59, %v5687_v7 }
 0x3ac   : > { %2688 = vmatmul.bf16.gmra.mxu2 %v3533_v34  ;;  %v3036_v40 = vpop.f32.mrf.mxu1 }
 0x3ad   : > { %v2905_v29 = vadd.f32 %v2904_v33, %v2776_v45  ;;  %v6761_v33 = vld [vmem:[#allocation30_spill] sm:$0xff] }
 0x3ae   : > { %v2909_v50 = vpop.f32.mrf.mxu0 }
 0x3af   : > { %v2649_v25 = vpop.f32.mrf.mxu2  ;;  %v3034_v24 = vadd.f32 %v3033_v44, %v2905_v29  ;;  %2817 = vmatmul.bf16.gmra.mxu3 %v6758_v27  ;;  %3075 = vmatmul.bf16.gmra.mxu1 %v3533_v34  ;;  %v3568_v34 = vld [vmem:[%s6439_s3 + $0x200] sm:$0xf] }
 0x3b0   : > { %v2650_v1 = vadd.f32 %v2649_v25, %v6032_v54 }
 0x3b1   : > { %3145 = vst [vmem:[%s6084_s11 + $0x138] sm:$0xff] %v3034_v24  ;;  %v6765_v24 = vld [vmem:[#allocation34_spill] sm:$0xff] }
 0x3b2   : > { %3146 = vst [vmem:[%s6084_s11 + $0x140] sm:$0xff] %v2650_v1  ;;  %v2778_v20 = vpop.f32.mrf.mxu3 }
 0x3b3   : > { %v2779_v7 = vadd.f32 %v2778_v20, %v5677_v6 }
 0x3b4   : > { %v3038_v23 = vpop.f32.mrf.mxu1 }
 0x3b5   : > { %v2908_v49 = vadd.f32 %v2907_v11, %v2779_v7  ;;  %v3663_v11 = vld [vmem:[%s6439_s3 + $0x208] sm:$0xf0] }
 0x3b6   : > { %v2912_v22 = vpop.f32.mrf.mxu0  ;;  %v3569_v26 = vor.u32 %v3663_v11, %v3568_v34 }
 0x3b7   : > { %v2651_v12 = vpop.f32.mrf.mxu2  ;;  %v3037_v18 = vadd.f32 %v3036_v40, %v2908_v49  ;;  %v6767_v49 = vld [vmem:[#allocation18_spill] sm:$0xff] }
 0x3b8   : > { %v2652_v54 = vadd.f32 %v2651_v12, %v6041_v17 }
 0x3b9   : > { %3147 = vst [vmem:[%s6084_s11 + $0x148] sm:$0xff] %v3037_v18  ;;  %2951 = vmatmul.bf16.gmra.mxu0 %v6759_v56 }
 0x3ba   : > { %3148 = vst [vmem:[%s6084_s11 + $0x150] sm:$0xff] %v2652_v54  ;;  %v2780_v6 = vpop.f32.mrf.mxu3  ;;  %v6769_v54 = vld [vmem:[#allocation12_spill] sm:$0xff] }
 0x3bb   : > { %v2781_v51 = vadd.f32 %v2780_v6, %v5799_v57 }
 0x3bc   : > { %2693 = vmatmul.bf16.gmra.mxu2 %v3545_v58  ;;  %v3041_v43 = vpop.f32.mrf.mxu1 }
 0x3bd   : > { %v2910_v32 = vadd.f32 %v2909_v50, %v2781_v51  ;;  %v6766_v50 = vld [vmem:[#allocation46_spill] sm:$0xff]  ;;  %v3580_v51 = vld [vmem:[%s6439_s3 + $0x218] sm:$0xf] }
 0x3be   : > { %v2914_v63 = vpop.f32.mrf.mxu0 }
 0x3bf   : > { %v2654_v21 = vpop.f32.mrf.mxu2  ;;  %v3039_v4 = vadd.f32 %v3038_v23, %v2910_v32  ;;  %2822 = vmatmul.bf16.gmra.mxu3 %v6760_v5  ;;  %3080 = vmatmul.bf16.gmra.mxu1 %v3545_v58 }
 0x3c0   : > { %v2655_v17 = vadd.f32 %v2654_v21, %v6056_v14  ;;  %v6770_v21 = vld [vmem:[#allocation39_spill] sm:$0xff] }
 0x3c1   : > { %3149 = vst [vmem:[%s6084_s11 + $0x158] sm:$0xff] %v3039_v4 }
 0x3c2   : > { %3150 = vst [vmem:[%s6084_s11 + $0x160] sm:$0xff] %v2655_v17  ;;  %v2783_v13 = vpop.f32.mrf.mxu3 }
 0x3c3   : > { %v2784_v57 = vadd.f32 %v2783_v13, %v5705_v28  ;;  %v6771_v13 = vld [vmem:[#allocation33_spill] sm:$0xff] }
 0x3c4   : > { %v3043_v35 = vpop.f32.mrf.mxu1 }
 0x3c5   : > { %v2913_v30 = vadd.f32 %v2912_v22, %v2784_v57 }
 0x3c6   : > { %v2917_v10 = vpop.f32.mrf.mxu0 }
 0x3c7   : > { %v2656_v41 = vpop.f32.mrf.mxu2  ;;  %v3042_v3 = vadd.f32 %v3041_v43, %v2913_v30  ;;  %v3666_v43 = vld [vmem:[%s6439_s3 + $0x220] sm:$0xf0]  ;;  %v6772_v30 = vld [vmem:[#allocation40_spill] sm:$0xff] }
 0x3c8   : > { %v2657_v14 = vadd.f32 %v2656_v41, %v6065_v55  ;;  %v3581_v5 = vor.u32 %v3666_v43, %v3580_v51 }
 0x3c9   : > { %3151 = vst [vmem:[%s6084_s11 + $0x168] sm:$0xff] %v3042_v3  ;;  %2956 = vmatmul.bf16.gmra.mxu0 %v6761_v33  ;;  %v6773_v3 = vld [vmem:[#allocation48_spill] sm:$0xff] }
 0x3ca   : > { %3152 = vst [vmem:[%s6084_s11 + $0x170] sm:$0xff] %v2657_v14  ;;  %v2785_v28 = vpop.f32.mrf.mxu3  ;;  %v6774_v14 = vld [vmem:[#allocation15_spill] sm:$0xff] }
 0x3cb   : > { %v2786_v16 = vadd.f32 %v2785_v28, %v5698_v42 }
 0x3cc   : > { %2698 = vmatmul.bf16.gmra.mxu2 %v3557_v62  ;;  %v3046_v48 = vpop.f32.mrf.mxu1 }
 0x3cd   : > { %v2915_v38 = vadd.f32 %v2914_v63, %v2786_v16  ;;  %v6775_v16 = vld [vmem:[#allocation22_spill] sm:$0xff] }
 0x3ce   : > { %v2919_v2 = vpop.f32.mrf.mxu0 }
 0x3cf   : > { %v2659_v53 = vpop.f32.mrf.mxu2  ;;  %v3044_v44 = vadd.f32 %v3043_v35, %v2915_v38  ;;  %2827 = vmatmul.bf16.gmra.mxu3 %v6762_v0  ;;  %3085 = vmatmul.bf16.gmra.mxu1 %v3557_v62 }
 0x3d0   : > { %v2660_v55 = vadd.f32 %v2659_v53, %v5846_v47  ;;  %v6764_v47 = vld [vmem:[#allocation42_spill] sm:$0xff]  ;;  %v3592_v53 = vld [vmem:[%s6439_s3 + $0x230] sm:$0xf] }
 0x3d1   : > { %3153 = vst [vmem:[%s6084_s11 + $0x178] sm:$0xff] %v3044_v44  ;;  %v3669_v44 = vld [vmem:[%s6439_s3 + $0x238] sm:$0xf0] }
 0x3d2   : > { %3154 = vst [vmem:[%s6084_s11 + $0x180] sm:$0xff] %v2660_v55  ;;  %v2788_v8 = vpop.f32.mrf.mxu3 }
 0x3d3   : > { %v2789_v42 = vadd.f32 %v2788_v8, %v6763_v46  ;;  %v3593_v46 = vor.u32 %v3669_v44, %v3592_v53  ;;  %v6787_v44 = vld [vmem:[#allocation58_spill] sm:$0xff] }
 0x3d4   : > { %v3048_v9 = vpop.f32.mrf.mxu1 }
 0x3d5   : > { %v2918_v19 = vadd.f32 %v2917_v10, %v2789_v42 }
 0x3d6   : > { %v2922_v29 = vpop.f32.mrf.mxu0 }
 0x3d7   : > { %v2661_v59 = vpop.f32.mrf.mxu2  ;;  %v3047_v45 = vadd.f32 %v3046_v48, %v2918_v19  ;;  %v6777_v19 = vld [vmem:[#allocation41_spill] sm:$0xff] }
 0x3d8   : > { %v2662_v40 = vadd.f32 %v2661_v59, %v6764_v47  ;;  %v6778_v59 = vld [vmem:[#allocation56_spill] sm:$0xff] }
 0x3d9   : > { %3155 = vst [vmem:[%s6084_s11 + $0x188] sm:$0xff] %v3047_v45  ;;  %2961 = vmatmul.bf16.gmra.mxu0 %v6766_v50 }
 0x3da   : > { %3156 = vst [vmem:[%s6084_s11 + $0x190] sm:$0xff] %v2662_v40  ;;  %v2790_v25 = vpop.f32.mrf.mxu3 }
 0x3db   : > { %v2791_v27 = vadd.f32 %v2790_v25, %v6765_v24 }
 0x3dc   : > { %2703 = vmatmul.bf16.gmra.mxu2 %v3569_v26  ;;  %v3051_v1 = vpop.f32.mrf.mxu1 }
 0x3dd   : > { %v2920_v20 = vadd.f32 %v2919_v2, %v2791_v27  ;;  %v6776_v2 = vld [vmem:[#allocation57_spill] sm:$0xff]  ;;  %v6780_v27 = vld [vmem:[#allocation31_spill] sm:$0xff] }
 0x3de   : > { %v2924_v12 = vpop.f32.mrf.mxu0 }
 0x3df   : > { %v2664_v7 = vpop.f32.mrf.mxu2  ;;  %v3049_v23 = vadd.f32 %v3048_v9, %v2920_v20  ;;  %2832 = vmatmul.bf16.gmra.mxu3 %v6767_v49  ;;  %3090 = vmatmul.bf16.gmra.mxu1 %v3569_v26  ;;  %v6779_v26 = vld [vmem:[#allocation43_spill] sm:$0xff] }
 0x3e0   : > { %v2665_v36 = vadd.f32 %v2664_v7, %v6768_v39 }
 0x3e1   : > { %3157 = vst [vmem:[%s6084_s11 + $0x198] sm:$0xff] %v3049_v23 }
 0x3e2   : > { %3158 = vst [vmem:[%s6084_s11 + $0x1a0] sm:$0xff] %v2665_v36  ;;  %v2793_v18 = vpop.f32.mrf.mxu3 }
 0x3e3   : > { %v2794_v58 = vadd.f32 %v2793_v18, %v6769_v54 }
 0x3e4   : > { %v3053_v22 = vpop.f32.mrf.mxu1 }
 0x3e5   : > { %v2923_v6 = vadd.f32 %v2922_v29, %v2794_v58 }
 0x3e6   : > { %v2927_v17 = vpop.f32.mrf.mxu0 }
 0x3e7   : > { %v2666_v56 = vpop.f32.mrf.mxu2  ;;  %v3052_v32 = vadd.f32 %v3051_v1, %v2923_v6 }
 0x3e8   : > { %v2667_v4 = vadd.f32 %v2666_v56, %v6770_v21  ;;  %v6782_v56 = vld [vmem:[#allocation28_spill] sm:$0xff] }
 0x3e9   : > { %3159 = vst [vmem:[%s6084_s11 + $0x1a8] sm:$0xff] %v3052_v32  ;;  %2966 = vmatmul.bf16.gmra.mxu0 %v6772_v30 }
 0x3ea   : > { %3160 = vst [vmem:[%s6084_s11 + $0x1b0] sm:$0xff] %v2667_v4  ;;  %v2795_v63 = vpop.f32.mrf.mxu3 }
 0x3eb   : > { %v2796_v57 = vadd.f32 %v2795_v63, %v6771_v13 }
 0x3ec   : > { %2708 = vmatmul.bf16.gmra.mxu2 %v3581_v5  ;;  %v3056_v35 = vpop.f32.mrf.mxu1 }
 0x3ed   : > { %v2925_v61 = vadd.f32 %v2924_v12, %v2796_v57  ;;  %v6784_v57 = vld [vmem:[#allocation38_spill] sm:$0xff] }
 0x3ee   : > { %v2929_v10 = vpop.f32.mrf.mxu0 }
 0x3ef   : > { %v2669_v31 = vpop.f32.mrf.mxu2  ;;  %v3054_v41 = vadd.f32 %v3053_v22, %v2925_v61  ;;  %2837 = vmatmul.bf16.gmra.mxu3 %v6773_v3  ;;  %3095 = vmatmul.bf16.gmra.mxu1 %v3581_v5  ;;  %v6781_v22 = vld [vmem:[#allocation55_spill] sm:$0xff]  ;;  %v6783_v5 = vld [vmem:[#allocation54_spill] sm:$0xff]  ;;  %v6785_v3 = vld [vmem:[#allocation53_spill] sm:$0xff] }
 0x3f0   : > { %v2670_v62 = vadd.f32 %v2669_v31, %v6774_v14 }
 0x3f1   : > { %3161 = vst [vmem:[%s6084_s11 + $0x1b8] sm:$0xff] %v3054_v41 }
 0x3f2   : > { %3162 = vst [vmem:[%s6084_s11 + $0x1c0] sm:$0xff] %v2670_v62  ;;  %v2798_v28 = vpop.f32.mrf.mxu3 }
 0x3f3   : > { %v2799_v48 = vadd.f32 %v2798_v28, %v6775_v16  ;;  %v6786_v28 = vld [vmem:[#allocation36_spill] sm:$0xff] }
 0x3f4   : > { %v3058_v33 = vpop.f32.mrf.mxu1 }
 0x3f5   : > { %v2928_v38 = vadd.f32 %v2927_v17, %v2799_v48 }
 0x3f6   : > { %v2932_v42 = vpop.f32.mrf.mxu0 }
 0x3f7   : > { %v2671_v0 = vpop.f32.mrf.mxu2  ;;  %v3057_v55 = vadd.f32 %v3056_v35, %v2928_v38 }
 0x3f8   : > { %v2672_v8 = vadd.f32 %v2671_v0, %v6776_v2 }
 0x3f9   : > { %3163 = vst [vmem:[%s6084_s11 + $0x1c8] sm:$0xff] %v3057_v55  ;;  %2971 = vmatmul.bf16.gmra.mxu0 %v6778_v59 }
 0x3fa   : > { %3164 = vst [vmem:[%s6084_s11 + $0x1d0] sm:$0xff] %v2672_v8  ;;  %v2800_v9 = vpop.f32.mrf.mxu3  ;;  %v6788_v8 = vld [vmem:[#allocation24_spill] sm:$0xff] }
 0x3fb   : > { %v2801_v34 = vadd.f32 %v2800_v9, %v6777_v19 }
 0x3fc   : > { %2713 = vmatmul.bf16.gmra.mxu2 %v3593_v46  ;;  %v3061_v11 = vpop.f32.mrf.mxu1 }
 0x3fd   : > { %v2930_v45 = vadd.f32 %v2929_v10, %v2801_v34 }
 0x3fe   : > { %v2934_v25 = vpop.f32.mrf.mxu0 }
 0x3ff   : > { %v2674_v47 = vpop.f32.mrf.mxu2  ;;  %v3059_v40 = vadd.f32 %v3058_v33, %v2930_v45  ;;  %2842 = vmatmul.bf16.gmra.mxu3 %v6779_v26  ;;  %3100 = vmatmul.bf16.gmra.mxu1 %v3593_v46 }
 0x400   : > { %v2675_v29 = vadd.f32 %v2674_v47, %v5881_v15 }
 0x401   : > { %3165 = vst [vmem:[%s6084_s11 + $0x1d8] sm:$0xff] %v3059_v40  ;;  %v6790_v40 = vld [vmem:[#allocation59_spill] sm:$0xff] }
 0x402   : > { %3166 = vst [vmem:[%s6084_s11 + $0x1e0] sm:$0xff] %v2675_v29  ;;  %v2803_v24 = vpop.f32.mrf.mxu3 }
 0x403   : > { %v2804_v1 = vadd.f32 %v2803_v24, %v6780_v27 }
 0x404   : > { %v3063_v50 = vpop.f32.mrf.mxu1 }
 0x405   : > { %v2933_v20 = vadd.f32 %v2932_v42, %v2804_v1  ;;  %v6791_v1 = vld [vmem:[#allocation62_spill] sm:$0xff] }
 0x406   : > { %v2937_v39 = vpop.f32.mrf.mxu0 }
 0x407   : > { %v2676_v7 = vpop.f32.mrf.mxu2  ;;  %v3062_v23 = vadd.f32 %v3061_v11, %v2933_v20  ;;  %v6789_v11 = vld [vmem:[#allocation60_spill] sm:$0xff] }
 0x408   : > { %v2677_v49 = vadd.f32 %v2676_v7, %v5885_v52 }
 0x409   : > { %3167 = vst [vmem:[%s6084_s11 + $0x1e8] sm:$0xff] %v3062_v23  ;;  %v6792_v23 = vld [vmem:[#allocation61_spill] sm:$0xff] }
 0x40a   : > { %3168 = vst [vmem:[%s6084_s11 + $0x1f0] sm:$0xff] %v2677_v49  ;;  %v2805_v36 = vpop.f32.mrf.mxu3 }
 0x40b   : > { %v2806_v15 = vadd.f32 %v2805_v36, %v5879_v60 }
 0x40c   : > { %v3066_v12 = vpop.f32.mrf.mxu1 }
 0x40d   : > { %v2935_v18 = vadd.f32 %v2934_v25, %v2806_v15 }
 0x40e   : > { %v2939_v51 = vpop.f32.mrf.mxu0 }
 0x40f   : > { %v2679_v54 = vpop.f32.mrf.mxu2  ;;  %v3064_v58 = vadd.f32 %v3063_v50, %v2935_v18  ;;  %v6793_v18 = vld [vmem:[#allocation64_spill] sm:$0xff] }
 0x410   : > { %v2680_v6 = vadd.f32 %v2679_v54, %v6781_v22 }
 0x411   : > { %3169 = vst [vmem:[%s6084_s11 + $0x1f8] sm:$0xff] %v3064_v58 }
 0x412   : > { %3170 = vst [vmem:[%s6084_s11 + $0x200] sm:$0xff] %v2680_v6  ;;  %v2808_v43 = vpop.f32.mrf.mxu3  ;;  %v6794_v6 = vld [vmem:[#allocation63_spill] sm:$0xff] }
 0x413   : > { %v2809_v52 = vadd.f32 %v2808_v43, %v6782_v56 }
 0x414   : > { %v3068_v32 = vpop.f32.mrf.mxu1 }
 0x415   : > { %v2938_v21 = vadd.f32 %v2937_v39, %v2809_v52 }
 0x416   : > { %v2942_v63 = vpop.f32.mrf.mxu0 }
 0x417   : > { %v2681_v4 = vpop.f32.mrf.mxu2  ;;  %v3067_v60 = vadd.f32 %v3066_v12, %v2938_v21  ;;  %v6795_v21 = vld [vmem:[#allocation66_spill] sm:$0xff] }
 0x418   : > { %v2682_v17 = vadd.f32 %v2681_v4, %v6783_v5 }
 0x419   : > { %3171 = vst [vmem:[%s6084_s11 + $0x208] sm:$0xff] %v3067_v60 }
 0x41a   : > { %3172 = vst [vmem:[%s6084_s11 + $0x210] sm:$0xff] %v2682_v17  ;;  %v2810_v13 = vpop.f32.mrf.mxu3  ;;  %v6796_v17 = vld [vmem:[#allocation65_spill] sm:$0xff] }
 0x41b   : > { %v2811_v35 = vadd.f32 %v2810_v13, %v6784_v57 }
 0x41c   : > { %v3071_v30 = vpop.f32.mrf.mxu1 }
 0x41d   : > { %v2940_v61 = vadd.f32 %v2939_v51, %v2811_v35 }
 0x41e   : > { %v2944_v62 = vpop.f32.mrf.mxu0 }
 0x41f   : > { %v2684_v31 = vpop.f32.mrf.mxu2  ;;  %v3069_v41 = vadd.f32 %v3068_v32, %v2940_v61  ;;  %v6797_v61 = vld [vmem:[#allocation68_spill] sm:$0xff] }
 0x420   : > { %v2685_v14 = vadd.f32 %v2684_v31, %v6785_v3 }
 0x421   : > { %3173 = vst [vmem:[%s6084_s11 + $0x218] sm:$0xff] %v3069_v41 }
 0x422   : > { %3174 = vst [vmem:[%s6084_s11 + $0x220] sm:$0xff] %v2685_v14  ;;  %v2813_v10 = vpop.f32.mrf.mxu3  ;;  %v6798_v14 = vld [vmem:[#allocation67_spill] sm:$0xff] }
 0x423   : > { %v2814_v16 = vadd.f32 %v2813_v10, %v6786_v28 }
 0x424   : > { %v3073_v48 = vpop.f32.mrf.mxu1 }
 0x425   : > { %v2943_v33 = vadd.f32 %v2942_v63, %v2814_v16 }
 0x426   : > { %v2947_v55 = vpop.f32.mrf.mxu0 }
 0x427   : > { %v2686_v38 = vpop.f32.mrf.mxu2  ;;  %v3072_v53 = vadd.f32 %v3071_v30, %v2943_v33  ;;  %v6799_v33 = vld [vmem:[#allocation70_spill] sm:$0xff] }
 0x428   : > { %v2687_v0 = vadd.f32 %v2686_v38, %v6787_v44 }
 0x429   : > { %3175 = vst [vmem:[%s6084_s11 + $0x228] sm:$0xff] %v3072_v53 }
 0x42a   : > { %3176 = vst [vmem:[%s6084_s11 + $0x230] sm:$0xff] %v2687_v0  ;;  %v2815_v2 = vpop.f32.mrf.mxu3  ;;  %v6800_v0 = vld [vmem:[#allocation69_spill] sm:$0xff] }
 0x42b   : > { %v2816_v46 = vadd.f32 %v2815_v2, %v6788_v8 }
 0x42c   : > { %v3076_v42 = vpop.f32.mrf.mxu1 }
 0x42d   : > { %v2945_v9 = vadd.f32 %v2944_v62, %v2816_v46 }
 0x42e   : > { %v2949_v45 = vpop.f32.mrf.mxu0 }
 0x42f   : > { %v2689_v19 = vpop.f32.mrf.mxu2  ;;  %v3074_v34 = vadd.f32 %v3073_v48, %v2945_v9  ;;  %v6801_v9 = vld [vmem:[#allocation72_spill] sm:$0xff] }
 0x430   : > { %v2690_v59 = vadd.f32 %v2689_v19, %v6789_v11  ;;  %v6802_v11 = vld [vmem:[#allocation71_spill] sm:$0xff] }
 0x431   : > { %3177 = vst [vmem:[%s6084_s11 + $0x238] sm:$0xff] %v3074_v34 }
 0x432   : > { %3178 = vst [vmem:[%s6084_s11 + $0x240] sm:$0xff] %v2690_v59  ;;  %v2818_v47 = vpop.f32.mrf.mxu3 }
 0x433   : > { %v2819_v26 = vadd.f32 %v2818_v47, %v6790_v40 }
 0x434   : > { %v3078_v29 = vpop.f32.mrf.mxu1 }
 0x435   : > { %v2948_v25 = vadd.f32 %v2947_v55, %v2819_v26 }
 0x436   : > { %v2952_v20 = vpop.f32.mrf.mxu0 }
 0x437   : > { %v2691_v24 = vpop.f32.mrf.mxu2  ;;  %v3077_v27 = vadd.f32 %v3076_v42, %v2948_v25 }
 0x438   : > { %v2692_v50 = vadd.f32 %v2691_v24, %v6791_v1 }
 0x439   : > { %3179 = vst [vmem:[%s6084_s11 + $0x248] sm:$0xff] %v3077_v27  ;;  %v6803_v27 = vld [vmem:[#allocation73_spill] sm:$0xff] }
 0x43a   : > { %3180 = vst [vmem:[%s6084_s11 + $0x250] sm:$0xff] %v2692_v50  ;;  %v2820_v7 = vpop.f32.mrf.mxu3 }
 0x43b   : > { %v2821_v49 = vadd.f32 %v2820_v7, %v6792_v23 }
 0x43c   : > { %v3081_v39 = vpop.f32.mrf.mxu1 }
 0x43d   : > { %v2950_v36 = vadd.f32 %v2949_v45, %v2821_v49  ;;  %v6804_v49 = vld [vmem:[#allocation75_spill] sm:$0xff] }
 0x43e   : > { %v2954_v58 = vpop.f32.mrf.mxu0 }
 0x43f   : > { %v2694_v15 = vpop.f32.mrf.mxu2  ;;  %v3079_v12 = vadd.f32 %v3078_v29, %v2950_v36 }
 0x440   : > { %v2695_v54 = vadd.f32 %v2694_v15, %v6793_v18 }
 0x441   : > { %3181 = vst [vmem:[%s6084_s11 + $0x258] sm:$0xff] %v3079_v12  ;;  %v6805_v12 = vld [vmem:[#allocation74_spill] sm:$0xff] }
 0x442   : > { %3182 = vst [vmem:[%s6084_s11 + $0x260] sm:$0xff] %v2695_v54  ;;  %v2823_v22 = vpop.f32.mrf.mxu3 }
 0x443   : > { %v2824_v51 = vadd.f32 %v2823_v22, %v6794_v6  ;;  %v6806_v22 = vld [vmem:[#allocation77_spill] sm:$0xff] }
 0x444   : > { %v3083_v43 = vpop.f32.mrf.mxu1 }
 0x445   : > { %v2953_v56 = vadd.f32 %v2952_v20, %v2824_v51 }
 0x446   : > { %v2957_v60 = vpop.f32.mrf.mxu0 }
 0x447   : > { %v2696_v52 = vpop.f32.mrf.mxu2  ;;  %v3082_v32 = vadd.f32 %v3081_v39, %v2953_v56 }
 0x448   : > { %v2697_v4 = vadd.f32 %v2696_v52, %v6795_v21  ;;  %v6807_v52 = vld [vmem:[#allocation76_spill] sm:$0xff] }
 0x449   : > { %3183 = vst [vmem:[%s6084_s11 + $0x268] sm:$0xff] %v3082_v32 }
 0x44a   : > { %3184 = vst [vmem:[%s6084_s11 + $0x270] sm:$0xff] %v2697_v4  ;;  %v2825_v5 = vpop.f32.mrf.mxu3 }
 0x44b   : > { %v2826_v63 = vadd.f32 %v2825_v5, %v6796_v17  ;;  %v6808_v5 = vld [vmem:[#allocation79_spill] sm:$0xff] }
 0x44c   : > { %v3086_v13 = vpop.f32.mrf.mxu1 }
 0x44d   : > { %v2955_v57 = vadd.f32 %v2954_v58, %v2826_v63 }
 0x44e   : > { %v2959_v41 = vpop.f32.mrf.mxu0 }
 0x44f   : > { %v2699_v35 = vpop.f32.mrf.mxu2  ;;  %v3084_v30 = vadd.f32 %v3083_v43, %v2955_v57  ;;  %v6809_v57 = vld [vmem:[#allocation78_spill] sm:$0xff] }
 0x450   : > { %v2700_v31 = vadd.f32 %v2699_v35, %v6797_v61 }
 0x451   : > { %3185 = vst [vmem:[%s6084_s11 + $0x278] sm:$0xff] %v3084_v30 }
 0x452   : > { %3186 = vst [vmem:[%s6084_s11 + $0x280] sm:$0xff] %v2700_v31  ;;  %v2828_v3 = vpop.f32.mrf.mxu3 }
 0x453   : > { %v2829_v62 = vadd.f32 %v2828_v3, %v6798_v14  ;;  %v6810_v3 = vld [vmem:[#allocation81_spill] sm:$0xff] }
 0x454   : > { %v3088_v10 = vpop.f32.mrf.mxu1 }
 0x455   : > { %v2958_v28 = vadd.f32 %v2957_v60, %v2829_v62 }
 0x456   : > { %v2962_v44 = vpop.f32.mrf.mxu0 }
 0x457   : > { %v2701_v16 = vpop.f32.mrf.mxu2  ;;  %v3087_v48 = vadd.f32 %v3086_v13, %v2958_v28 }
 0x458   : > { %v2702_v38 = vadd.f32 %v2701_v16, %v6799_v33 }
 0x459   : > { %3187 = vst [vmem:[%s6084_s11 + $0x288] sm:$0xff] %v3087_v48 }
 0x45a   : > { %3188 = vst [vmem:[%s6084_s11 + $0x290] sm:$0xff] %v2702_v38  ;;  %v2830_v53 = vpop.f32.mrf.mxu3 }
 0x45b   : > { %v2831_v55 = vadd.f32 %v2830_v53, %v6800_v0 }
 0x45c   : > { %v3091_v2 = vpop.f32.mrf.mxu1 }
 0x45d   : > { %v2960_v8 = vadd.f32 %v2959_v41, %v2831_v55 }
 0x45e   : > { %v2964_v45 = vpop.f32.mrf.mxu0 }
 0x45f   : > { %v2704_v46 = vpop.f32.mrf.mxu2  ;;  %v3089_v42 = vadd.f32 %v3088_v10, %v2960_v8  ;;  %v6811_v10 = vld [vmem:[#allocation80_spill] sm:$0xff] }
 0x460   : > { %v2705_v19 = vadd.f32 %v2704_v46, %v6801_v9 }
 0x461   : > { %3189 = vst [vmem:[%s6084_s11 + $0x298] sm:$0xff] %v3089_v42 }
 0x462   : > { %3190 = vst [vmem:[%s6084_s11 + $0x2a0] sm:$0xff] %v2705_v19  ;;  %v2833_v34 = vpop.f32.mrf.mxu3 }
 0x463   : > { %v2834_v59 = vadd.f32 %v2833_v34, %v6802_v11 }
 0x464   : > { %v3093_v40 = vpop.f32.mrf.mxu1 }
 0x465   : > { %v2963_v47 = vadd.f32 %v2962_v44, %v2834_v59 }
 0x466   : > { %v2967_v20 = vpop.f32.mrf.mxu0 }
 0x467   : > { %v2706_v26 = vpop.f32.mrf.mxu2  ;;  %v3092_v29 = vadd.f32 %v3091_v2, %v2963_v47 }
 0x468   : > { %v2707_v25 = vadd.f32 %v2706_v26, %v6029_v37 }
 0x469   : > { %3191 = vst [vmem:[%s6084_s11 + $0x2a8] sm:$0xff] %v3092_v29 }
 0x46a   : > { %3192 = vst [vmem:[%s6084_s11 + $0x2b0] sm:$0xff] %v2707_v25  ;;  %v2835_v24 = vpop.f32.mrf.mxu3 }
 0x46b   : > { %v2836_v1 = vadd.f32 %v2835_v24, %v6803_v27 }
 0x46c   : > { %v3096_v36 = vpop.f32.mrf.mxu1 }
 0x46d   : > { %v2965_v50 = vadd.f32 %v2964_v45, %v2836_v1 }
 0x46e   : > { %v2969_v51 = vpop.f32.mrf.mxu0 }
 0x46f   : > { %v2709_v7 = vpop.f32.mrf.mxu2  ;;  %v3094_v23 = vadd.f32 %v3093_v40, %v2965_v50 }
 0x470   : > { %v2710_v39 = vadd.f32 %v2709_v7, %v6804_v49 }
 0x471   : > { %3193 = vst [vmem:[%s6084_s11 + $0x2b8] sm:$0xff] %v3094_v23 }
 0x472   : > { %3194 = vst [vmem:[%s6084_s11 + $0x2c0] sm:$0xff] %v2710_v39  ;;  %v2838_v15 = vpop.f32.mrf.mxu3 }
 0x473   : > { %v2839_v37 = vadd.f32 %v2838_v15, %v6805_v12 }
 0x474   : > { %v3098_v56 = vpop.f32.mrf.mxu1 }
 0x475   : > { %v2968_v18 = vadd.f32 %v2967_v20, %v2839_v37 }
 0x476   : > { %v2972_v13 = vpop.f32.mrf.mxu0 }
 0x477   : > { %v2711_v54 = vpop.f32.mrf.mxu2  ;;  %v3097_v58 = vadd.f32 %v3096_v36, %v2968_v18 }
 0x478   : > { %v2712_v6 = vadd.f32 %v2711_v54, %v6806_v22 }
 0x479   : > { %3195 = vst [vmem:[%s6084_s11 + $0x2c8] sm:$0xff] %v3097_v58 }
 0x47a   : > { %3196 = vst [vmem:[%s6084_s11 + $0x2d0] sm:$0xff] %v2712_v6  ;;  %v2840_v43 = vpop.f32.mrf.mxu3 }
 0x47b   : > { %v2841_v32 = vadd.f32 %v2840_v43, %v6807_v52 }
 0x47c   : > { %v3101_v30 = vpop.f32.mrf.mxu1 }
 0x47d   : > { %v2970_v21 = vadd.f32 %v2969_v51, %v2841_v32 }
 0x47e   : > { %v2974_v16 = vpop.f32.mrf.mxu0 }
 0x47f   : > { %v2714_v4 = vpop.f32.mrf.mxu2  ;;  %v3099_v60 = vadd.f32 %v3098_v56, %v2970_v21 }
 0x480   : > { %v2715_v17 = vadd.f32 %v2714_v4, %v6808_v5 }
 0x481   : > { %3197 = vst [vmem:[%s6084_s11 + $0x2d8] sm:$0xff] %v3099_v60 }
 0x482   : > { %3198 = vst [vmem:[%s6084_s11 + $0x2e0] sm:$0xff] %v2715_v17  ;;  %v2843_v63 = vpop.f32.mrf.mxu3 }
 0x483   : > { %v2844_v35 = vadd.f32 %v2843_v63, %v6809_v57 }
 0x484   : > { %v3103_v33 = vpop.f32.mrf.mxu1 }
 0x485   : > { %v2973_v61 = vadd.f32 %v2972_v13, %v2844_v35 }
 0x487   : > { %v2716_v31 = vpop.f32.mrf.mxu2  ;;  %v3102_v41 = vadd.f32 %v3101_v30, %v2973_v61 }
 0x488   : > { %v2717_v14 = vadd.f32 %v2716_v31, %v6810_v3 }
 0x489   : > { %3199 = vst [vmem:[%s6084_s11 + $0x2e8] sm:$0xff] %v3102_v41 }
 0x48a   : > { %3200 = vst [vmem:[%s6084_s11 + $0x2f0] sm:$0xff] %v2717_v14  ;;  %v2845_v62 = vpop.f32.mrf.mxu3 }
 0x48b   : > { %v2846_v28 = vadd.f32 %v2845_v62, %v6811_v10 }
 0x48d   : > { %v2975_v48 = vadd.f32 %v2974_v16, %v2846_v28 }
 0x48f   : > { %v3104_v38 = vadd.f32 %v3103_v33, %v2975_v48 }
 0x491   : > { %3201 = vst [vmem:[%s6084_s11 + $0x2f8] sm:$0xff] %v3104_v38 }
 0x492   : > { %3819 = shalt.err (!%p3816_p5)
}
 0x493   : > { %s3874_s9 = smov 256   ;;  %s3875_s11 = smov 16  }
 0x494   : > { %3688 = dma.vmem_to_hbm [thread:$0]  (%p3946_p4), %s3218_s10, 12288, %s3220_s12, %s3203_s21, %s3874_s9, %s3874_s9, %s3875_s11  }
 0x495 PF: > { %p3694_p6 = scmp.ge.s32.totalorder %s3870_s23, 2  ;;  %s3234_s27 = sand.u32 1, %s3850_s18  }
 0x496   : > { %s3235_s29 = scalar_lea.sflag [#allocation3], %s3234_s27 }
 0x497   : > { %p3691_p7 = pnand %p3694_p6, %p3953_p8 }
 0x499   : > { %p3692_p9 = pneg %p3691_p7 }
 0x49b   : > { %3845 = dma.done.wait (%p3692_p9), %s3235_s29, 12288  }
 0x49c   : > { %3847 = vsyncadd (%p3692_p9), %s3235_s29, 4294955008  ;;  %s18_s23 = sadd.s32 1, %s3870_s23   ;;  %s6812_s18 = smov %s3854_s19 }
 0x49d   : > { %p15_p10 = scmp.ge.s32.totalorder %s18_s23, 4   ;;  %s6813_s19 = smov %s3858_s20 }
 0x49e   : > { %s6814_s20 = smov %s3959_s6  ;;  %s6815_s21 = smov %s3866_s22 }
 0x49f   : > { %s6816_s22 = smov %s6818_s26  ;;  %17 = sbr.rel (!%p15_p10) target bundleno = 4 (0x4), region = 75 }
 0x4a4   :  { %3241 = vsyncpa [#allocation3], 1 }
 0x4a5   :  { %3243 = vsyncpa [#allocation3 + $0x1], 1 }

</bundles_post_ra>
